<compile_context>
chip_gen: v5e
topology: v5e:2x2
jax: 0.10.0
libtpu: 0.0.40
codegen_flags: <defaults>
</compile_context>

<pallas_src>
import jax
import jax.numpy as jnp
from jax import lax
from jax.experimental import pallas as pl
from jax.experimental.pallas import tpu as pltpu

# Problem configuration (the globals `h`, `w` of the reference file).
H = 48
W = 48
CHAN = 16                  # `chan` argument of OBELISK2d.__init__
O_M = H // 3               # 16
O_N = W // 3               # 16
P = O_M * O_N              # 256 OBELISK grid positions
C_SAMP = CHAN * 8          # 128 channels after grid sampling
C_MID = CHAN * 4           # 64
C_OUT = CHAN               # 16
EPS = 1e-5                 # BatchNorm eps (PyTorch default)


def _head_kernel(x_ref, w1_ref, w2_ref, w3_ref, par_ref, o_ref, col_ref):
    inv_p = jnp.float32(1.0 / P)
    ones_p = jnp.ones((1, P), jnp.float32)

    # Single packed parameter block: rows 0..3 = g1,b1,g2,b2 (lanes 0..63),
    # bias3 stored as a column at lane C_MID (rows 0..15).
    par = par_ref[...]                                   # (16, 128) f32
    g1 = par[0:1, :C_MID]
    b1 = par[1:2, :C_MID]
    g2 = par[2:3, :C_MID]
    b2 = par[3:4, :C_MID]
    bias3 = par[:C_OUT, C_MID:C_MID + 1]                 # (16, 1)

    # ---- layer1: 1x1 conv == channel matmul (bf16 operands, f32 acc) --------
    h1 = jnp.dot(x_ref[...], w1_ref[...],
                 preferred_element_type=jnp.float32)     # (P, C_MID) f32

    # ---- batch1: merged single-pass stats on the MXU + ReLU (f32 math) ------
    st1 = jnp.dot(ones_p, jnp.concatenate([h1, h1 * h1], axis=1),
                  preferred_element_type=jnp.float32)    # (1, 2*C_MID)
    m1 = st1[:, :C_MID] * inv_p
    v1 = jnp.maximum(st1[:, C_MID:] * inv_p - m1 * m1, 0.0)
    sc1 = g1 * lax.rsqrt(v1 + EPS)
    h1 = jnp.maximum(h1 * sc1 + (b1 - m1 * sc1), 0.0)

    # ---- layer2: 3x3 conv, padding=1 -----------------------------------------
    # rows of h1 are p = i*O_N + j; neighbor (i+dy, j+dx) lives at p + dy*O_N+dx
    col_j = lax.broadcasted_iota(jnp.int32, (P, 1), 0) % O_N
    mask_l = (col_j >= 1).astype(jnp.float32)            # source column j-1 valid
    mask_r = (col_j <= O_N - 2).astype(jnp.float32)      # source column j+1 valid

    def shift_rows(x, d):
        # shifted[p] = x[p + d] (zero fill outside [0, P)); certain semantics,
        # no dependence on roll direction conventions.
        z = jnp.zeros((abs(d), x.shape[1]), x.dtype)
        if d > 0:
            return jnp.concatenate([x[d:, :], z], axis=0)
        return jnp.concatenate([z, x[:d, :]], axis=0)

    # dx taps only: [x[p-1]*mask_l | x[p] | x[p+1]*mask_r], cast to bf16.
    slab = jnp.concatenate(
        [shift_rows(h1, -1) * mask_l, h1, shift_rows(h1, 1) * mask_r],
        axis=1).astype(jnp.bfloat16)                     # (P, 3*C_MID)

    # dy taps: write the slab at row offset O_N of a zero-padded scratch so the
    # three dy reads are aligned pl.ds slices (starts 0 / 16 / 32).
    zpad = jnp.zeros((O_N, 3 * C_MID), jnp.bfloat16)
    col_ref[pl.ds(0, O_N), :] = zpad
    col_ref[pl.ds(P + O_N, O_N), :] = zpad
    col_ref[pl.ds(O_N, P), :] = slab

    kc = 3 * C_MID                                       # 192
    h2 = jnp.dot(col_ref[pl.ds(0, P), :], w2_ref[pl.ds(0, kc), :],
                 preferred_element_type=jnp.float32)              # ky = 0
    h2 = h2 + jnp.dot(col_ref[pl.ds(O_N, P), :], w2_ref[pl.ds(kc, kc), :],
                      preferred_element_type=jnp.float32)         # ky = 1
    h2 = h2 + jnp.dot(col_ref[pl.ds(2 * O_N, P), :], w2_ref[pl.ds(2 * kc, kc), :],
                      preferred_element_type=jnp.float32)         # ky = 2

    # ---- batch2: merged stats + ReLU (f32 math) ------------------------------
    st2 = jnp.dot(ones_p, jnp.concatenate([h2, h2 * h2], axis=1),
                  preferred_element_type=jnp.float32)
    m2 = st2[:, :C_MID] * inv_p
    v2 = jnp.maximum(st2[:, C_MID:] * inv_p - m2 * m2, 0.0)
    sc2 = g2 * lax.rsqrt(v2 + EPS)
    h2 = jnp.maximum(h2 * sc2 + (b2 - m2 * sc2), 0.0)

    # ---- layer3: 1x1 conv with bias, lane-dense (C_OUT, P) output ------------
    out = lax.dot_general(w3_ref[...], h2.astype(jnp.bfloat16),
                          (((1,), (1,)), ((), ())),
                          preferred_element_type=jnp.float32)     # (C_OUT, P)
    o_ref[...] = out + bias3


def obelisk_head(x_pc, w1_t, w2col, w3, par_block):
    vmem = pl.BlockSpec(memory_space=pltpu.MemorySpace.VMEM)
    return pl.pallas_call(
        _head_kernel,
        out_shape=jax.ShapeDtypeStruct((C_OUT, P), jnp.float32),
        in_specs=[vmem] * 5,
        out_specs=vmem,
        scratch_shapes=[pltpu.VMEM((P + 2 * O_N, 3 * C_MID), jnp.bfloat16)],
        cost_estimate=pl.CostEstimate(flops=24_000_000,
                                      transcendentals=2 * C_MID,
                                      bytes_accessed=182_000),
    )(x_pc, w1_t, w2col, w3, par_block)


def init_params(key):
    ks = jax.random.split(key, 6)
    return dict(
        offsets=jax.random.normal(ks[0], (2, 2 * CHAN, 2), jnp.float32) * 0.05,
        w0=jax.random.normal(ks[1], (4, 1, 5, 5), jnp.float32) * 0.1,
        g0=jnp.ones((4,), jnp.float32), b0=jnp.zeros((4,), jnp.float32),
        w1=jax.random.normal(ks[2], (C_MID, C_SAMP, 1, 1), jnp.float32) * 0.05,
        g1=jnp.ones((C_MID,), jnp.float32), b1=jnp.zeros((C_MID,), jnp.float32),
        w2=jax.random.normal(ks[3], (C_MID, C_MID, 3, 3), jnp.float32) * 0.05,
        g2=jnp.ones((C_MID,), jnp.float32), b2=jnp.zeros((C_MID,), jnp.float32),
        w3=jax.random.normal(ks[4], (C_OUT, C_MID, 1, 1), jnp.float32) * 0.05,
        bias3=jax.random.normal(ks[5], (C_OUT,), jnp.float32) * 0.01,
    )


def _tent_weights(grid_1d, offs_1d, size):
    """Separable bilinear weights for F.grid_sample (bilinear, padding_mode=
    'zeros', align_corners=False): w[k, g, t] = max(0, 1 - |coord(k,g) - t|).
    Out-of-range taps get weight 0, which reproduces zero padding exactly."""
    coord = (grid_1d[None, :] + offs_1d[:, None] + 1.0) * (0.5 * size) - 0.5   # (K, G)
    pix = jnp.arange(size, dtype=jnp.float32)
    return jnp.maximum(0.0, 1.0 - jnp.abs(coord[:, :, None] - pix))            # (K, G, size)


def _sample_set(img, wy, wx):
    """Gather-free grid sample: img (4,Hs,Ws), wy (K,O_M,Hs), wx (K,O_N,Ws)
    -> (P, 4*K) with row p = i*O_N+j and column c*K + k (matches the PyTorch
    .view(1,-1,o_m,o_n) channel order)."""
    t = jnp.einsum('cyx,kjx->kjcy', img, wx)       # contract x
    s = jnp.einsum('kiy,kjcy->ijck', wy, t)        # contract y (batched over k)
    return s.reshape(P, C_SAMP)


def obelisk2d_forward(params, input_img):
    # input_img: NCHW (1, 1, H, W), float32
    x = input_img[0, 0]                                            # (H, W)

    # F.avg_pool2d(x, 3, padding=1, stride=2), count_include_pad=True
    pooled = lax.reduce_window(x, 0.0, lax.add, (3, 3), (2, 2),
                               ((1, 1), (1, 1))) / 9.0             # (24, 24)

    # layer0: Conv2d(1, 4, 5, stride=2, padding=2, bias=False)
    img = lax.conv_general_dilated(
        pooled[None, None], params["w0"], window_strides=(2, 2),
        padding=((2, 2), (2, 2)),
        dimension_numbers=("NCHW", "OIHW", "NCHW"))                # (1, 4, 12, 12)

    # batch0 (training-mode batch stats) + ReLU
    mu = jnp.mean(img, axis=(0, 2, 3), keepdims=True)
    var = jnp.mean((img - mu) ** 2, axis=(0, 2, 3), keepdims=True)
    img = (params["g0"].reshape(1, -1, 1, 1) * (img - mu) * lax.rsqrt(var + EPS)
           + params["b0"].reshape(1, -1, 1, 1))
    img = jnp.maximum(img, 0.0)[0]                                 # (4, 12, 12)
    hs, ws = img.shape[1], img.shape[2]

    # ogrid_xy = F.affine_grid(eye(2,3), (1,1,o_m,o_n)), align_corners=False
    gx = (2.0 * jnp.arange(O_N, dtype=jnp.float32) + 1.0) / O_N - 1.0
    gy = (2.0 * jnp.arange(O_M, dtype=jnp.float32) + 1.0) / O_M - 1.0

    # grid_sample with per-offset shifts, as separable tent-weight einsums
    # (no gather HLOs); offsets last dim is (x, y).
    off = params["offsets"]
    x_pc = (_sample_set(img,
                        _tent_weights(gy, off[0, :, 1], hs),
                        _tent_weights(gx, off[0, :, 0], ws))
            - _sample_set(img,
                          _tent_weights(gy, off[1, :, 1], hs),
                          _tent_weights(gx, off[1, :, 0], ws)))    # (P, 128)

    # bf16 MXU operands (f32 accumulation happens inside the kernel).
    x_bf = x_pc.astype(jnp.bfloat16)
    w1_t = params["w1"][:, :, 0, 0].T.astype(jnp.bfloat16)         # (C_SAMP, C_MID)
    w2col = jnp.transpose(params["w2"], (2, 3, 1, 0)) \
               .reshape(9 * C_MID, C_MID).astype(jnp.bfloat16)     # (576, 64) (ky,kx,cin)
    w3 = params["w3"][:, :, 0, 0].astype(jnp.bfloat16)             # (C_OUT, C_MID)

    # Pack g1,b1,g2,b2 (rows, lanes 0..63) and bias3 (column at lane 64) into
    # one (16,128) f32 block -> a single small parameter DMA.
    par = jnp.zeros((16, 128), jnp.float32)
    par = par.at[0, :C_MID].set(params["g1"])
    par = par.at[1, :C_MID].set(params["b1"])
    par = par.at[2, :C_MID].set(params["g2"])
    par = par.at[3, :C_MID].set(params["b2"])
    par = par.at[:C_OUT, C_MID].set(params["bias3"])

    # Pallas kernel: layer1/batch1/relu -> layer2/batch2/relu -> layer3(+bias)
    out_cp = obelisk_head(x_bf, w1_t, w2col, w3, par)              # (C_OUT, P)

    # lane-dense kernel output: just reshape, no transpose needed.
    return out_cp.reshape(C_OUT, O_M, O_N)[None]                   # (1, CHAN, o_m, o_n)


if __name__ == "__main__":
    key = jax.random.PRNGKey(0)
    pkey, xkey = jax.random.split(key)
    params = init_params(pkey)
    input_img = jax.random.normal(xkey, (1, 1, H, W), jnp.float32)

    out = jax.jit(obelisk2d_forward)(params, input_img)
    out = jax.block_until_ready(out)
    assert out.shape == (1, C_OUT, O_M, O_N), out.shape
    assert bool(jnp.all(jnp.isfinite(out)))
    print("KERNEL_OK")
</pallas_src>

<mosaic_0001>
module attributes {stable_mosaic.version = 11 : i64} {
  func.func @_head_kernel(%arg0: memref<256x128xbf16, #tpu.memory_space<vmem>>, %arg1: memref<128x64xbf16, #tpu.memory_space<vmem>>, %arg2: memref<576x64xbf16, #tpu.memory_space<vmem>>, %arg3: memref<16x64xbf16, #tpu.memory_space<vmem>>, %arg4: memref<16x128xf32, #tpu.memory_space<vmem>>, %arg5: memref<16x256xf32, #tpu.memory_space<vmem>>, %arg6: memref<288x192xbf16, #tpu.memory_space<vmem>>) attributes {dimension_semantics = [], scalar_prefetch = 0 : i64, scratch_operands = 1 : i64, tpu.core_type = #tpu.core_type<tc>} {
    %cst = arith.constant 1.000000e+00 : f32
    %0 = vector.broadcast %cst : f32 to vector<1x256xf32>
    %c0 = arith.constant 0 : index
    %c0_0 = arith.constant 0 : index
    %1 = vector.load %arg4[%c0, %c0_0] : memref<16x128xf32, #tpu.memory_space<vmem>>, vector<16x128xf32>
    %2 = vector.extract_strided_slice %1 {offsets = [0, 0], sizes = [1, 64], strides = [1, 1]} : vector<16x128xf32> to vector<1x64xf32>
    %3 = vector.extract_strided_slice %1 {offsets = [1, 0], sizes = [1, 64], strides = [1, 1]} : vector<16x128xf32> to vector<1x64xf32>
    %4 = vector.extract_strided_slice %1 {offsets = [2, 0], sizes = [1, 64], strides = [1, 1]} : vector<16x128xf32> to vector<1x64xf32>
    %5 = vector.extract_strided_slice %1 {offsets = [3, 0], sizes = [1, 64], strides = [1, 1]} : vector<16x128xf32> to vector<1x64xf32>
    %6 = vector.extract_strided_slice %1 {offsets = [0, 64], sizes = [16, 1], strides = [1, 1]} : vector<16x128xf32> to vector<16x1xf32>
    %c0_1 = arith.constant 0 : index
    %c0_2 = arith.constant 0 : index
    %7 = vector.load %arg0[%c0_1, %c0_2] : memref<256x128xbf16, #tpu.memory_space<vmem>>, vector<256x128xbf16>
    %c0_3 = arith.constant 0 : index
    %c0_4 = arith.constant 0 : index
    %8 = vector.load %arg1[%c0_3, %c0_4] : memref<128x64xbf16, #tpu.memory_space<vmem>>, vector<128x64xbf16>
    %cst_5 = arith.constant dense<0.000000e+00> : vector<256x64xf32>
    %9 = tpu.matmul %7, %8, %cst_5 {dimension_numbers = #tpu.dot_dimension_numbers<[1], [0], [0], [1], [0, 0, 1, 1], [], []>} : vector<256x128xbf16>, vector<128x64xbf16>, vector<256x64xf32> -> vector<256x64xf32>
    %10 = arith.mulf %9, %9 : vector<256x64xf32>
    %11 = tpu.concatenate %9, %10 in 1 : vector<256x64xf32>, vector<256x64xf32> -> vector<256x128xf32>
    %cst_6 = arith.constant dense<0.000000e+00> : vector<1x128xf32>
    %12 = tpu.matmul %0, %11, %cst_6 {dimension_numbers = #tpu.dot_dimension_numbers<[1], [0], [0], [1], [0, 0, 1, 1], [], []>} : vector<1x256xf32>, vector<256x128xf32>, vector<1x128xf32> -> vector<1x128xf32>
    %13 = vector.extract_strided_slice %12 {offsets = [0, 0], sizes = [1, 64], strides = [1, 1]} : vector<1x128xf32> to vector<1x64xf32>
    %cst_7 = arith.constant 3.906250e-03 : f32
    %14 = vector.broadcast %cst_7 : f32 to vector<1x64xf32>
    %15 = arith.mulf %13, %14 : vector<1x64xf32>
    %16 = vector.extract_strided_slice %12 {offsets = [0, 64], sizes = [1, 64], strides = [1, 1]} : vector<1x128xf32> to vector<1x64xf32>
    %cst_8 = arith.constant 3.906250e-03 : f32
    %17 = vector.broadcast %cst_8 : f32 to vector<1x64xf32>
    %18 = arith.mulf %16, %17 : vector<1x64xf32>
    %19 = arith.mulf %15, %15 : vector<1x64xf32>
    %20 = arith.subf %18, %19 : vector<1x64xf32>
    %cst_9 = arith.constant 0.000000e+00 : f32
    %21 = vector.broadcast %cst_9 : f32 to vector<1x64xf32>
    %22 = arith.maximumf %20, %21 : vector<1x64xf32>
    %cst_10 = arith.constant 9.99999974E-6 : f32
    %23 = vector.broadcast %cst_10 : f32 to vector<1x64xf32>
    %24 = arith.addf %22, %23 : vector<1x64xf32>
    %25 = math.rsqrt %24 : vector<1x64xf32>
    %26 = arith.mulf %2, %25 : vector<1x64xf32>
    %27 = vector.broadcast %26 : vector<1x64xf32> to vector<256x64xf32>
    %28 = arith.mulf %9, %27 : vector<256x64xf32>
    %29 = arith.mulf %15, %26 : vector<1x64xf32>
    %30 = arith.subf %3, %29 : vector<1x64xf32>
    %31 = vector.broadcast %30 : vector<1x64xf32> to vector<256x64xf32>
    %32 = arith.addf %28, %31 : vector<256x64xf32>
    %cst_11 = arith.constant 0.000000e+00 : f32
    %33 = vector.broadcast %cst_11 : f32 to vector<256x64xf32>
    %34 = arith.maximumf %32, %33 : vector<256x64xf32>
    %35 = tpu.iota {dimensions = array<i32: 0>} : vector<256x1xi32>
    %c16_i32 = arith.constant 16 : i32
    %c0_i32 = arith.constant 0 : i32
    %36 = arith.cmpi eq, %c16_i32, %c0_i32 : i32
    %c1_i32 = arith.constant 1 : i32
    %37 = arith.select %36, %c1_i32, %c16_i32 : i32
    %38 = vector.broadcast %37 : i32 to vector<256x1xi32>
    %39 = arith.remsi %35, %38 : vector<256x1xi32>
    %c0_i32_12 = arith.constant 0 : i32
    %40 = vector.broadcast %c0_i32_12 : i32 to vector<256x1xi32>
    %41 = arith.cmpi ne, %39, %40 : vector<256x1xi32>
    %c0_i32_13 = arith.constant 0 : i32
    %42 = vector.broadcast %c0_i32_13 : i32 to vector<256x1xi32>
    %43 = arith.cmpi slt, %39, %42 : vector<256x1xi32>
    %c0_i32_14 = arith.constant 0 : i32
    %44 = arith.cmpi slt, %37, %c0_i32_14 : i32
    %45 = vector.broadcast %44 : i1 to vector<256x1xi1>
    %46 = vector.broadcast %45 : vector<256x1xi1> to vector<256x1xi1>
    %47 = arith.xori %43, %46 : vector<256x1xi1>
    %48 = arith.andi %47, %41 : vector<256x1xi1>
    %49 = vector.broadcast %37 : i32 to vector<256x1xi32>
    %50 = arith.addi %39, %49 : vector<256x1xi32>
    %51 = arith.select %48, %50, %39 : vector<256x1xi1>, vector<256x1xi32>
    %c1_i32_15 = arith.constant 1 : i32
    %52 = vector.broadcast %c1_i32_15 : i32 to vector<256x1xi32>
    %53 = arith.cmpi sge, %51, %52 : vector<256x1xi32>
    %54 = arith.extui %53 : vector<256x1xi1> to vector<256x1xi32>
    %55 = arith.sitofp %54 : vector<256x1xi32> to vector<256x1xf32>
    %c14_i32 = arith.constant 14 : i32
    %56 = vector.broadcast %c14_i32 : i32 to vector<256x1xi32>
    %57 = arith.cmpi sle, %51, %56 : vector<256x1xi32>
    %58 = arith.extui %57 : vector<256x1xi1> to vector<256x1xi32>
    %59 = arith.sitofp %58 : vector<256x1xi32> to vector<256x1xf32>
    %cst_16 = arith.constant 0.000000e+00 : f32
    %60 = vector.broadcast %cst_16 : f32 to vector<1x64xf32>
    %61 = vector.extract_strided_slice %34 {offsets = [0, 0], sizes = [255, 64], strides = [1, 1]} : vector<256x64xf32> to vector<255x64xf32>
    %62 = tpu.concatenate %60, %61 in 0 : vector<1x64xf32>, vector<255x64xf32> -> vector<256x64xf32>
    %63 = vector.broadcast %55 : vector<256x1xf32> to vector<256x64xf32>
    %64 = arith.mulf %62, %63 : vector<256x64xf32>
    %cst_17 = arith.constant 0.000000e+00 : f32
    %65 = vector.broadcast %cst_17 : f32 to vector<1x64xf32>
    %66 = vector.extract_strided_slice %34 {offsets = [1, 0], sizes = [255, 64], strides = [1, 1]} : vector<256x64xf32> to vector<255x64xf32>
    %67 = tpu.concatenate %66, %65 in 0 : vector<255x64xf32>, vector<1x64xf32> -> vector<256x64xf32>
    %68 = vector.broadcast %59 : vector<256x1xf32> to vector<256x64xf32>
    %69 = arith.mulf %67, %68 : vector<256x64xf32>
    %70 = tpu.concatenate %64, %34, %69 in 1 : vector<256x64xf32>, vector<256x64xf32>, vector<256x64xf32> -> vector<256x192xf32>
    %71 = arith.truncf %70 : vector<256x192xf32> to vector<256x192xbf16>
    %cst_18 = arith.constant 0.000000e+00 : bf16
    %72 = vector.broadcast %cst_18 : bf16 to vector<16x192xbf16>
    %c0_19 = arith.constant 0 : index
    %c0_20 = arith.constant 0 : index
    %73 = vector.load %arg6[%c0_19, %c0_20] : memref<288x192xbf16, #tpu.memory_space<vmem>>, vector<16x192xbf16>
    tpu.vector_store %arg6[%c0_19, %c0_20], %72 {strides = array<i32>} : memref<288x192xbf16, #tpu.memory_space<vmem>>, vector<16x192xbf16>,
    %c272 = arith.constant 272 : index
    %c0_21 = arith.constant 0 : index
    %74 = vector.load %arg6[%c272, %c0_21] : memref<288x192xbf16, #tpu.memory_space<vmem>>, vector<16x192xbf16>
    tpu.vector_store %arg6[%c272, %c0_21], %72 {strides = array<i32>} : memref<288x192xbf16, #tpu.memory_space<vmem>>, vector<16x192xbf16>,
    %c16 = arith.constant 16 : index
    %c0_22 = arith.constant 0 : index
    %75 = vector.load %arg6[%c16, %c0_22] : memref<288x192xbf16, #tpu.memory_space<vmem>>, vector<256x192xbf16>
    tpu.vector_store %arg6[%c16, %c0_22], %71 {strides = array<i32>} : memref<288x192xbf16, #tpu.memory_space<vmem>>, vector<256x192xbf16>,
    %c0_23 = arith.constant 0 : index
    %c0_24 = arith.constant 0 : index
    %76 = vector.load %arg6[%c0_23, %c0_24] : memref<288x192xbf16, #tpu.memory_space<vmem>>, vector<256x192xbf16>
    %c0_25 = arith.constant 0 : index
    %c0_26 = arith.constant 0 : index
    %77 = vector.load %arg2[%c0_25, %c0_26] : memref<576x64xbf16, #tpu.memory_space<vmem>>, vector<192x64xbf16>
    %cst_27 = arith.constant dense<0.000000e+00> : vector<256x64xf32>
    %78 = tpu.matmul %76, %77, %cst_27 {dimension_numbers = #tpu.dot_dimension_numbers<[1], [0], [0], [1], [0, 0, 1, 1], [], []>} : vector<256x192xbf16>, vector<192x64xbf16>, vector<256x64xf32> -> vector<256x64xf32>
    %c16_28 = arith.constant 16 : index
    %c0_29 = arith.constant 0 : index
    %79 = vector.load %arg6[%c16_28, %c0_29] : memref<288x192xbf16, #tpu.memory_space<vmem>>, vector<256x192xbf16>
    %c192 = arith.constant 192 : index
    %c0_30 = arith.constant 0 : index
    %80 = vector.load %arg2[%c192, %c0_30] : memref<576x64xbf16, #tpu.memory_space<vmem>>, vector<192x64xbf16>
    %cst_31 = arith.constant dense<0.000000e+00> : vector<256x64xf32>
    %81 = tpu.matmul %79, %80, %cst_31 {dimension_numbers = #tpu.dot_dimension_numbers<[1], [0], [0], [1], [0, 0, 1, 1], [], []>} : vector<256x192xbf16>, vector<192x64xbf16>, vector<256x64xf32> -> vector<256x64xf32>
    %82 = arith.addf %78, %81 : vector<256x64xf32>
    %c32 = arith.constant 32 : index
    %c0_32 = arith.constant 0 : index
    %83 = vector.load %arg6[%c32, %c0_32] : memref<288x192xbf16, #tpu.memory_space<vmem>>, vector<256x192xbf16>
    %c384 = arith.constant 384 : index
    %c0_33 = arith.constant 0 : index
    %84 = vector.load %arg2[%c384, %c0_33] : memref<576x64xbf16, #tpu.memory_space<vmem>>, vector<192x64xbf16>
    %cst_34 = arith.constant dense<0.000000e+00> : vector<256x64xf32>
    %85 = tpu.matmul %83, %84, %cst_34 {dimension_numbers = #tpu.dot_dimension_numbers<[1], [0], [0], [1], [0, 0, 1, 1], [], []>} : vector<256x192xbf16>, vector<192x64xbf16>, vector<256x64xf32> -> vector<256x64xf32>
    %86 = arith.addf %82, %85 : vector<256x64xf32>
    %87 = arith.mulf %86, %86 : vector<256x64xf32>
    %88 = tpu.concatenate %86, %87 in 1 : vector<256x64xf32>, vector<256x64xf32> -> vector<256x128xf32>
    %cst_35 = arith.constant dense<0.000000e+00> : vector<1x128xf32>
    %89 = tpu.matmul %0, %88, %cst_35 {dimension_numbers = #tpu.dot_dimension_numbers<[1], [0], [0], [1], [0, 0, 1, 1], [], []>} : vector<1x256xf32>, vector<256x128xf32>, vector<1x128xf32> -> vector<1x128xf32>
    %90 = vector.extract_strided_slice %89 {offsets = [0, 0], sizes = [1, 64], strides = [1, 1]} : vector<1x128xf32> to vector<1x64xf32>
    %cst_36 = arith.constant 3.906250e-03 : f32
    %91 = vector.broadcast %cst_36 : f32 to vector<1x64xf32>
    %92 = arith.mulf %90, %91 : vector<1x64xf32>
    %93 = vector.extract_strided_slice %89 {offsets = [0, 64], sizes = [1, 64], strides = [1, 1]} : vector<1x128xf32> to vector<1x64xf32>
    %cst_37 = arith.constant 3.906250e-03 : f32
    %94 = vector.broadcast %cst_37 : f32 to vector<1x64xf32>
    %95 = arith.mulf %93, %94 : vector<1x64xf32>
    %96 = arith.mulf %92, %92 : vector<1x64xf32>
    %97 = arith.subf %95, %96 : vector<1x64xf32>
    %cst_38 = arith.constant 0.000000e+00 : f32
    %98 = vector.broadcast %cst_38 : f32 to vector<1x64xf32>
    %99 = arith.maximumf %97, %98 : vector<1x64xf32>
    %cst_39 = arith.constant 9.99999974E-6 : f32
    %100 = vector.broadcast %cst_39 : f32 to vector<1x64xf32>
    %101 = arith.addf %99, %100 : vector<1x64xf32>
    %102 = math.rsqrt %101 : vector<1x64xf32>
    %103 = arith.mulf %4, %102 : vector<1x64xf32>
    %104 = vector.broadcast %103 : vector<1x64xf32> to vector<256x64xf32>
    %105 = arith.mulf %86, %104 : vector<256x64xf32>
    %106 = arith.mulf %92, %103 : vector<1x64xf32>
    %107 = arith.subf %5, %106 : vector<1x64xf32>
    %108 = vector.broadcast %107 : vector<1x64xf32> to vector<256x64xf32>
    %109 = arith.addf %105, %108 : vector<256x64xf32>
    %cst_40 = arith.constant 0.000000e+00 : f32
    %110 = vector.broadcast %cst_40 : f32 to vector<256x64xf32>
    %111 = arith.maximumf %109, %110 : vector<256x64xf32>
    %c0_41 = arith.constant 0 : index
    %c0_42 = arith.constant 0 : index
    %112 = vector.load %arg3[%c0_41, %c0_42] : memref<16x64xbf16, #tpu.memory_space<vmem>>, vector<16x64xbf16>
    %113 = arith.truncf %111 : vector<256x64xf32> to vector<256x64xbf16>
    %cst_43 = arith.constant dense<0.000000e+00> : vector<16x256xf32>
    %114 = tpu.matmul %112, %113, %cst_43 {dimension_numbers = #tpu.dot_dimension_numbers<[1], [1], [0], [0], [0, 0, 1, 0], [], []>} : vector<16x64xbf16>, vector<256x64xbf16>, vector<16x256xf32> -> vector<16x256xf32>
    %115 = vector.broadcast %6 : vector<16x1xf32> to vector<16x256xf32>
    %116 = arith.addf %114, %115 : vector<16x256xf32>
    %c0_44 = arith.constant 0 : index
    %c0_45 = arith.constant 0 : index
    %117 = vector.load %arg5[%c0_44, %c0_45] : memref<16x256xf32, #tpu.memory_space<vmem>>, vector<16x256xf32>
    tpu.vector_store %arg5[%c0_44, %c0_45], %116 {strides = array<i32>} : memref<16x256xf32, #tpu.memory_space<vmem>>, vector<16x256xf32>,
    return
  }
}

</mosaic_0001>

<bundles_post_ra>
// kernel: obelisk2d_forward.1
= control target key start
LH: loop header
LB: loop body
LE: loop exit
PB: predicated region body
PF: predicated region fallthrough
CT: control target
= control target key end

     0   :  { %s4531_s15 = smov 64   ;;  %vm464_vm0 = vcmask 523264   ;;  %vm1305_vm4 = vcmask 1040384   ;;  %vm1434_vm5 = vcmask 1046528   ;;  %s6486_s1 = inlined_call_operand.vmem [shape: bf16[128,64], index: 1, kind: input, shape index: {}]   ;;  %s6487_s0 = inlined_call_operand.vmem [shape: bf16[256,128], index: 0, kind: input, shape index: {}]   ;;  %s6488_s4 = inlined_call_operand.vmem [shape: f32[16,128], index: 4, kind: input, shape index: {}]   ;;  %s6489_s2 = inlined_call_operand.vmem [shape: bf16[576,64], index: 2, kind: input, shape index: {}]   ;;  %s6490_s3 = inlined_call_operand.vmem [shape: bf16[16,64], index: 3, kind: input, shape index: {}]   ;;  %s6491_s5 = inlined_call_operand.vmem [shape: f32[16,256], index: 5, kind: output, shape index: {}]  }
   0x1   :  { %v4174_v0 = vld [vmem:[%s6486_s1 + $0x38] sm:$0xff]  ;;  %v4173_v1 = vld [vmem:[%s6486_s1 + $0x30] sm:$0xff]  ;;  %v4172_v2 = vld [vmem:[%s6486_s1 + $0x28] sm:$0xff] }
   0x2   :  { %215 = vmatpush.bf16.msra.mxu0 %v4174_v0  ;;  %v4171_v3 = vld [vmem:[%s6486_s1 + $0x20] sm:$0xff]  ;;  %v4170_v4 = vld [vmem:[%s6486_s1 + $0x18] sm:$0xff]  ;;  %v4169_v5 = vld [vmem:[%s6486_s1 + $0x10] sm:$0xff] }
   0x3   :  { %v4168_v6 = vld [vmem:[%s6486_s1 + $0x8] sm:$0xff]  ;;  %v4167_v7 = vld [vmem:[%s6486_s1] sm:$0xff]  ;;  %v4153_v10 = vld [vmem:[%s6487_s0 + $0x10] sm:$0xff] }
   0x4   :  { %v4151_v8 = vld [vmem:[%s6487_s0] sm:$0xff]  ;;  %v4152_v9 = vld [vmem:[%s6487_s0 + $0x8] sm:$0xff]  ;;  %v4154_v11 = vld [vmem:[%s6487_s0 + $0x18] sm:$0xff] }
   0x5   :  { %v4155_v12 = vld [vmem:[%s6487_s0 + $0x20] sm:$0xff]  ;;  %v4156_v13 = vld [vmem:[%s6487_s0 + $0x28] sm:$0xff]  ;;  %v4157_v14 = vld [vmem:[%s6487_s0 + $0x30] sm:$0xff] }
   0x6   :  { %216 = vmatpush.bf16.msra.mxu0 %v4173_v1  ;;  %v4158_v15 = vld [vmem:[%s6487_s0 + $0x38] sm:$0xff]  ;;  %v4159_v16 = vld [vmem:[%s6487_s0 + $0x40] sm:$0xff]  ;;  %v4160_v19 = vld [vmem:[%s6487_s0 + $0x48] sm:$0xff] }
   0x7   :  { %v4161_v22 = vld [vmem:[%s6487_s0 + $0x50] sm:$0xff]  ;;  %v4162_v25 = vld [vmem:[%s6487_s0 + $0x58] sm:$0xff]  ;;  %v4163_v28 = vld [vmem:[%s6487_s0 + $0x60] sm:$0xff] }
   0x8   :  { %v4164_v31 = vld [vmem:[%s6487_s0 + $0x68] sm:$0xff]  ;;  %v4165_v34 = vld [vmem:[%s6487_s0 + $0x70] sm:$0xff]  ;;  %v4166_v37 = vld [vmem:[%s6487_s0 + $0x78] sm:$0xff] }
   0xa   :  { %217 = vmatpush.bf16.msra.mxu0 %v4172_v2 }
   0xe   :  { %218 = vmatpush.bf16.msra.mxu0 %v4171_v3 }
  0x12   :  { %219 = vmatpush.bf16.msra.mxu0 %v4170_v4 }
  0x16   :  { %220 = vmatpush.bf16.msra.mxu0 %v4169_v5 }
  0x1a   :  { %221 = vmatpush.bf16.msra.mxu0 %v4168_v6 }
  0x1e   :  { %222 = vmatpush.bf16.msra.mxu0 %v4167_v7 }
  0x21   :  { %223 = vmatmul.bf16.vlgmr.msra.gmra.mxu0 %v4151_v8 }
  0x31   :  { %228 = vmatmul.bf16.gmra.mxu0 %v4152_v9 }
  0x41   :  { %233 = vmatmul.bf16.gmra.mxu0 %v4153_v10 }
  0x51   :  { %238 = vmatmul.bf16.gmra.mxu0 %v4154_v11 }
  0x61   :  { %243 = vmatmul.bf16.gmra.mxu0 %v4155_v12 }
  0x71   :  { %248 = vmatmul.bf16.gmra.mxu0 %v4156_v13 }
  0x81   :  { %253 = vmatmul.bf16.gmra.mxu0 %v4157_v14 }
  0x91   :  { %258 = vmatmul.bf16.gmra.mxu0 %v4158_v15 }
  0x9e   :  { %v4617_v17 = vpop.f32.mrf.mxu0 }
  0xa1   :  { %263 = vmatmul.bf16.gmra.mxu0 %v4159_v16 }
  0xa6   :  { %v4619_v18 = vpop.f32.mrf.mxu0 }
  0xa7   :  { %v305_v6 = vmul.f32 %v4619_v18, %v4619_v18 }
  0xae   :  { %v4624_v20 = vpop.f32.mrf.mxu0 }
  0xb1   :  { %268 = vmatmul.bf16.gmra.mxu0 %v4160_v19 }
  0xb6   :  { %v4626_v21 = vpop.f32.mrf.mxu0 }
  0xbe   :  { %v4631_v23 = vpop.f32.mrf.mxu0 }
  0xbf   :  { %v308_v63 = vmul.f32 %v4631_v23, %v4631_v23 }
  0xc1   :  { %273 = vmatmul.bf16.gmra.mxu0 %v4161_v22 }
  0xc6   :  { %v4633_v24 = vpop.f32.mrf.mxu0 }
  0xce   :  { %v4638_v26 = vpop.f32.mrf.mxu0 }
  0xd1   :  { %278 = vmatmul.bf16.gmra.mxu0 %v4162_v25 }
  0xd6   :  { %v4640_v27 = vpop.f32.mrf.mxu0 }
  0xd7   :  { %v311_v58 = vmul.f32 %v4640_v27, %v4640_v27 }
  0xde   :  { %v4645_v29 = vpop.f32.mrf.mxu0 }
  0xdf   :  { %v312_v0 = vmul.f32 %v4645_v29, %v4645_v29 }
  0xe1   :  { %283 = vmatmul.bf16.gmra.mxu0 %v4163_v28  ;;  %v309_v28 = vmul.f32 %v4633_v24, %v4633_v24 }
  0xe6   :  { %v4647_v30 = vpop.f32.mrf.mxu0 }
  0xe7   :  { %v313_v7 = vmul.f32 %v4647_v30, %v4647_v30 }
  0xee   :  { %v4652_v32 = vpop.f32.mrf.mxu0 }
  0xef   :  { %v314_v22 = vmul.f32 %v4652_v32, %v4652_v32 }
  0xf1   :  { %288 = vmatmul.bf16.gmra.mxu0 %v4164_v31 }
  0xf6   :  { %v4654_v33 = vpop.f32.mrf.mxu0 }
  0xfe   :  { %v4659_v35 = vpop.f32.mrf.mxu0 }
  0xff   :  { %v316_v45 = vmul.f32 %v4659_v35, %v4659_v35 }
 0x101   :  { %293 = vmatmul.bf16.gmra.mxu0 %v4165_v34 }
 0x106   :  { %v4661_v36 = vpop.f32.mrf.mxu0 }
 0x107   :  { %v317_v43 = vmul.f32 %v4661_v36, %v4661_v36 }
 0x109   :  { %v4288_v46 = vpack.i.bf16 %v316_v45, %v317_v43 }
 0x10e   :  { %v4666_v38 = vpop.f32.mrf.mxu0 }
 0x10f   :  { %v318_v40 = vmul.f32 %v4666_v38, %v4666_v38 }
 0x111   :  { %298 = vmatmul.bf16.gmra.mxu0 %v4166_v37 }
 0x116   :  { %v4668_v39 = vpop.f32.mrf.mxu0 }
 0x117   :  { %v319_v41 = vmul.f32 %v4668_v39, %v4668_v39 }
 0x119   :  { %v4283_v42 = vpack.i.bf16 %v318_v40, %v319_v41 }
 0x11b   :  { %4284 = vrot.lane.b32.xlu0 %v4283_v42, %s4531_s15 }
 0x11e   :  { %v4677_v44 = vpop.f32.mrf.mxu0 }
 0x11f   :  { %v320_v19 = vmul.f32 %v4677_v44, %v4677_v44 }
 0x123   :  { %4289 = vrot.lane.b32.xlu0 %v4288_v46, %s4531_s15 }
 0x126   :  { %v4682_v47 = vpop.f32.mrf.mxu0 }
 0x127   :  { %v321_v11 = vmul.f32 %v4682_v47, %v4682_v47 }
 0x129   :  { %v4358_v34 = vpack.i.bf16 %v320_v19, %v321_v11  ;;  %v307_v11 = vmul.f32 %v4626_v21, %v4626_v21 }
 0x12e   :  { %v4684_v48 = vpop.f32.mrf.mxu0 }
 0x136   :  { %v4686_v49 = vpop.f32.mrf.mxu0 }
 0x13e   :  { %v4688_v50 = vpop.f32.mrf.mxu0 }
 0x146   :  { %v4690_v51 = vpop.f32.mrf.mxu0 }
 0x147   :  { %v325_v4 = vmul.f32 %v4690_v51, %v4690_v51 }
 0x149   :  { %v4343_v9 = vpack.i.bf16 %v325_v4, %v305_v6  ;;  %v310_v6 = vmul.f32 %v4638_v26, %v4638_v26 }
 0x14e   :  { %v4692_v52 = vpop.f32.mrf.mxu0 }
 0x14f   :  { %v326_v43 = vmul.f32 %v4692_v52, %v4692_v52 }
 0x156   :  { %v4694_v53 = vpop.f32.mrf.mxu0 }
 0x15e   :  { %v4696_v54 = vpop.f32.mrf.mxu0 }
 0x15f   :  { %v328_v61 = vmul.f32 %v4696_v54, %v4696_v54 }
 0x161   :  { %v4328_v2 = vpack.i.bf16 %v328_v61, %v308_v63  ;;  %v306_v61 = vmul.f32 %v4624_v20, %v4624_v20 }
 0x166   :  { %v4698_v55 = vpop.f32.mrf.mxu0 }
 0x167   :  { %v329_v13 = vmul.f32 %v4698_v55, %v4698_v55 }
 0x169   :  { %v4323_v41 = vpack.i.bf16 %v329_v13, %v309_v28  ;;  %v324_v13 = vmul.f32 %v4688_v50, %v4688_v50 }
 0x16e   :  { %v4700_v56 = vpop.f32.mrf.mxu0 }
 0x16f   :  { %v330_v4 = vmul.f32 %v4700_v56, %v4700_v56 }
 0x176   :  { %v4702_v57 = vpop.f32.mrf.mxu0 }
 0x177   :  { %v331_v59 = vmul.f32 %v4702_v57, %v4702_v57 }
 0x179   :  { %v4293_v60 = vpack.i.bf16 %v331_v59, %v311_v58  ;;  %v315_v59 = vmul.f32 %v4654_v33, %v4654_v33 }
 0x17b   :  { %4294 = vrot.lane.b32.xlu0 %v4293_v60, %s4531_s15 }
 0x17e   :  { %v4711_v62 = vpop.f32.mrf.mxu0 }
 0x17f   :  { %v332_v1 = vmul.f32 %v4711_v62, %v4711_v62 }
 0x181   :  { %v4298_v3 = vpack.i.bf16 %v332_v1, %v312_v0 }
 0x183   :  { %4329 = vrot.lane.b32.xlu0 %v4328_v2, %s4531_s15  ;;  %4299 = vrot.lane.b32.xlu2 %v4298_v3, %s4531_s15  ;;  %v4338_v2 = vpack.i.bf16 %v326_v43, %v306_v61  ;;  %v323_v3 = vmul.f32 %v4686_v49, %v4686_v49 }
 0x186   :  { %v4723_v5 = vpop.f32.mrf.mxu0 }
 0x187   :  { %v333_v8 = vmul.f32 %v4723_v5, %v4723_v5 }
 0x189   :  { %v4303_v10 = vpack.i.bf16 %v333_v8, %v313_v7  ;;  %v322_v7 = vmul.f32 %v4684_v48, %v4684_v48 }
 0x18b   :  { %4344 = vrot.lane.b32.xlu0 %v4343_v9, %s4531_s15  ;;  %4304 = vrot.lane.b32.xlu2 %v4303_v10, %s4531_s15  ;;  %v4353_v8 = vpack.i.bf16 %v322_v7, %v323_v3  ;;  %v4318_v9 = vpack.i.bf16 %v330_v4, %v310_v6  ;;  %v327_v10 = vmul.f32 %v4694_v53, %v4694_v53 }
 0x18d   :  { %v4285_v12 = vpop.permute.xlu0 %4284 }
 0x18e   :  { %v4287_v14 = vunpack.i.h.bf16 %v4285_v12  ;;  %v4286_v15 = vunpack.i.l.bf16 %v4285_v12  ;;  %v4737_v16 = vpop.f32.mrf.mxu0  ;;  %v4333_v12 = vpack.i.bf16 %v327_v10, %v307_v11 }
 0x18f   :  { %v334_v25 = vmul.f32 %v4737_v16, %v4737_v16 }
 0x190   :  { %v480_v31 = vsel %vm464_vm0, %v4668_v39, %v4286_v15  ;;  %v479_v40 = vsel %vm464_vm0, %v4666_v38, %v4287_v14  ;;  %v304_v14 = vmul.f32 %v4617_v17, %v4617_v17 }
 0x191   :  { %497 = vmatpush.msra.mxu2 %v480_v31  ;;  %v4308_v37 = vpack.i.bf16 %v334_v25, %v314_v22 }
 0x192   :  { %v4348_v15 = vpack.i.bf16 %v324_v13, %v304_v14 }
 0x193   :  { %498 = vmatpush.msra.mxu2 %v479_v40  ;;  %4359 = vrot.lane.b32.xlu0 %v4358_v34, %s4531_s15 }
 0x194   :  { %4324 = vrot.lane.b32.xlu2 %v4323_v41, %s4531_s15  ;;  %4309 = vrot.lane.b32.xlu1 %v4308_v37, %s4531_s15 }
 0x195   :  { %v4290_v42 = vpop.permute.xlu0 %4289 }
 0x196   :  { %v4292_v45 = vunpack.i.h.bf16 %v4290_v42  ;;  %v4291_v46 = vunpack.i.l.bf16 %v4290_v42  ;;  %v4756_v58 = vpop.f32.mrf.mxu0 }
 0x197   :  { %v335_v60 = vmul.f32 %v4756_v58, %v4756_v58 }
 0x198   :  { %v478_v63 = vsel %vm464_vm0, %v4661_v36, %v4291_v46  ;;  %v477_v1 = vsel %vm464_vm0, %v4659_v35, %v4292_v45 }
 0x199   :  { %499 = vmatpush.msra.mxu2 %v478_v63  ;;  %v4313_v0 = vpack.i.bf16 %v335_v60, %v315_v59 }
 0x19b   :  { %500 = vmatpush.msra.mxu2 %v477_v1 }
 0x19c   :  { %4339 = vrot.lane.b32.xlu2 %v4338_v2, %s4531_s15  ;;  %4314 = vrot.lane.b32.xlu1 %v4313_v0, %s4531_s15 }
 0x1a4   :  { %4354 = vrot.lane.b32.xlu2 %v4353_v8, %s4531_s15  ;;  %4319 = vrot.lane.b32.xlu1 %v4318_v9, %s4531_s15 }
 0x1ac   :  { %4334 = vrot.lane.b32.xlu1 %v4333_v12, %s4531_s15 }
 0x1b4   :  { %4349 = vrot.lane.b32.xlu1 %v4348_v15, %s4531_s15 }
 0x1dd   :  { %v4790_v19 = vpop.permute.xlu2 %4299 }
 0x1de   :  { %v4301_v43 = vunpack.i.l.bf16 %v4790_v19 }
 0x1e0   :  { %v473_v0 = vsel %vm464_vm0, %v4645_v29, %v4301_v43 }
 0x1e5   :  { %v4305_v25 = vpop.permute.xlu2 %4304 }
 0x1e6   :  { %v4306_v40 = vunpack.i.l.bf16 %v4305_v25 }
 0x1e8   :  { %v474_v60 = vsel %vm464_vm0, %v4647_v30, %v4306_v40 }
 0x1ed   :  { %v4792_v28 = vpop.permute.xlu0 %4294 }
 0x1ee   :  { %v4796_v42 = vpop.permute.xlu2 %4324  ;;  %v4296_v59 = vunpack.i.l.bf16 %v4792_v28 }
 0x1ef   :  { %v4326_v1 = vunpack.i.l.bf16 %v4796_v42 }
 0x1f0   :  { %v472_v2 = vsel %vm464_vm0, %v4640_v27, %v4296_v59  ;;  %v4307_v59 = vunpack.i.h.bf16 %v4305_v25 }
 0x1f1   :  { %v470_v7 = vsel %vm464_vm0, %v4633_v24, %v4326_v1  ;;  %v6492_v1 = vmov 1.0  }
 0x1f5   :  { %v4801_v46 = vpop.permute.xlu0 %4329 }
 0x1f6   :  { %v4331_v3 = vunpack.i.l.bf16 %v4801_v46  ;;  %v4340_v6 = vpop.permute.xlu2 %4339 }
 0x1f7   :  { %v4341_v10 = vunpack.i.l.bf16 %v4340_v6 }
 0x1f8   :  { %v469_v12 = vsel %vm464_vm0, %v4631_v23, %v4331_v3 }
 0x1f9   :  { %v467_v15 = vsel %vm464_vm0, %v4624_v20, %v4341_v10  ;;  %v4342_v10 = vunpack.i.h.bf16 %v4340_v6 }
 0x1fd   :  { %v4345_v8 = vpop.permute.xlu0 %4344 }
 0x1fe   :  { %v4346_v13 = vunpack.i.l.bf16 %v4345_v8 }
 0x205   :  { %v4360_v6 = vpop.permute.xlu0 %4359 }
 0x206   :  { %v4310_v22 = vpop.permute.xlu1 %4309 }
 0x207   :  { %v4311_v34 = vunpack.i.l.bf16 %v4310_v22  ;;  %v4312_v43 = vunpack.i.h.bf16 %v4310_v22  ;;  %v4297_v22 = vunpack.i.h.bf16 %v4792_v28 }
 0x209   :  { %v475_v45 = vsel %vm464_vm0, %v4652_v32, %v4311_v34  ;;  %v466_v34 = vsel %vm464_vm0, %v4619_v18, %v4346_v13  ;;  %v492_v3 = vsel %vm464_vm0, %v4702_v57, %v4297_v22  ;;  %v4355_v13 = vpop.permute.xlu2 %4354 }
 0x20e   :  { %v4315_v31 = vpop.permute.xlu1 %4314 }
 0x20f   :  { %v4316_v37 = vunpack.i.l.bf16 %v4315_v31 }
 0x211   :  { %v476_v41 = vsel %vm464_vm0, %v4654_v33, %v4316_v37  ;;  %v4317_v37 = vunpack.i.h.bf16 %v4315_v31  ;;  %v494_v31 = vsel %vm464_vm0, %v4723_v5, %v4307_v59 }
 0x212   :  { %501 = vmatpush.msra.mxu2 %v476_v41 }
 0x214   :  { %502 = vmatpush.msra.mxu2 %v475_v45 }
 0x216   :  { %v4320_v61 = vpop.permute.xlu1 %4319  ;;  %503 = vmatpush.msra.mxu2 %v474_v60  ;;  %v496_v60 = vsel %vm464_vm0, %v4756_v58, %v4317_v37  ;;  %v4361_v37 = vunpack.i.l.bf16 %v4360_v6 }
 0x217   :  { %v4321_v63 = vunpack.i.l.bf16 %v4320_v61  ;;  %v4322_v25 = vunpack.i.h.bf16 %v4320_v61 }
 0x218   :  { %504 = vmatpush.msra.mxu2 %v473_v0  ;;  %v495_v0 = vsel %vm464_vm0, %v4737_v16, %v4312_v43 }
 0x219   :  { %v471_v4 = vsel %vm464_vm0, %v4638_v26, %v4321_v63  ;;  %v4302_v63 = vunpack.i.h.bf16 %v4790_v19  ;;  %v4327_v19 = vunpack.i.h.bf16 %v4796_v42  ;;  %v491_v28 = vsel %vm464_vm0, %v4700_v56, %v4322_v25 }
 0x21a   :  { %505 = vmatpush.msra.mxu2 %v472_v2  ;;  %v4347_v42 = vunpack.i.h.bf16 %v4345_v8 }
 0x21b   :  { %v493_v2 = vsel %vm464_vm0, %v4711_v62, %v4302_v63  ;;  %v490_v61 = vsel %vm464_vm0, %v4698_v55, %v4327_v19 }
 0x21c   :  { %506 = vmatpush.msra.mxu2 %v471_v4  ;;  %v4332_v4 = vunpack.i.h.bf16 %v4801_v46 }
 0x21e   :  { %v4335_v9 = vpop.permute.xlu1 %4334  ;;  %507 = vmatpush.msra.mxu2 %v470_v7 }
 0x21f   :  { %v4336_v11 = vunpack.i.l.bf16 %v4335_v9  ;;  %v4337_v7 = vunpack.i.h.bf16 %v4335_v9  ;;  %v4356_v9 = vunpack.i.l.bf16 %v4355_v13 }
 0x220   :  { %508 = vmatpush.msra.mxu2 %v469_v12 }
 0x221   :  { %v468_v14 = vsel %vm464_vm0, %v4626_v21, %v4336_v11  ;;  %v489_v11 = vsel %vm464_vm0, %v4696_v54, %v4332_v4  ;;  %v488_v12 = vsel %vm464_vm0, %v4694_v53, %v4337_v7 }
 0x222   :  { %509 = vmatpush.msra.mxu2 %v468_v14  ;;  %v487_v14 = vsel %vm464_vm0, %v4692_v52, %v4342_v10 }
 0x224   :  { %510 = vmatpush.msra.mxu2 %v467_v15  ;;  %v486_v15 = vsel %vm464_vm0, %v4690_v51, %v4347_v42 }
 0x226   :  { %v4350_v40 = vpop.permute.xlu1 %4349  ;;  %511 = vmatpush.msra.mxu2 %v466_v34  ;;  %v4357_v34 = vunpack.i.h.bf16 %v4355_v13 }
 0x227   :  { %v4351_v41 = vunpack.i.l.bf16 %v4350_v40  ;;  %v4352_v46 = vunpack.i.h.bf16 %v4350_v40  ;;  %v4362_v40 = vunpack.i.h.bf16 %v4360_v6 }
 0x228   :  { %v483_v43 = vsel %vm464_vm0, %v4684_v48, %v4357_v34 }
 0x229   :  { %v465_v45 = vsel %vm464_vm0, %v4617_v17, %v4351_v41  ;;  %v485_v8 = vsel %vm464_vm0, %v4688_v50, %v4352_v46  ;;  %v484_v41 = vsel %vm464_vm0, %v4686_v49, %v4356_v9  ;;  %v481_v59 = vsel %vm464_vm0, %v4677_v44, %v4362_v40 }
 0x22a   :  { %512 = vmatpush.msra.mxu2 %v465_v45  ;;  %v482_v45 = vsel %vm464_vm0, %v4682_v47, %v4361_v37 }
 0x22b   :  { %513 = vmatmul.f32.vlgmr.msra.gmra.mxu2 %v6492_v1 }
 0x22c   :  { %517 = vmatpush.msrb.mxu2 %v496_v60 }
 0x22e   :  { %518 = vmatpush.msrb.mxu2 %v495_v0 }
 0x230   :  { %519 = vmatpush.msrb.mxu2 %v494_v31 }
 0x232   :  { %520 = vmatpush.msrb.mxu2 %v493_v2 }
 0x234   :  { %521 = vmatpush.msrb.mxu2 %v492_v3 }
 0x236   :  { %522 = vmatpush.msrb.mxu2 %v491_v28 }
 0x238   :  { %523 = vmatpush.msrb.mxu2 %v490_v61 }
 0x23a   :  { %524 = vmatpush.msrb.mxu2 %v489_v11 }
 0x23c   :  { %525 = vmatpush.msrb.mxu2 %v488_v12  ;;  %v21_v12 = vld [vmem:[%s6488_s4] sm:$0xff] }
 0x23e   :  { %526 = vmatpush.msrb.mxu2 %v487_v14 }
 0x240   :  { %527 = vmatpush.msrb.mxu2 %v486_v15 }
 0x242   :  { %528 = vmatpush.msrb.mxu2 %v485_v8 }
 0x244   :  { %529 = vmatpush.msrb.mxu2 %v484_v41 }
 0x246   :  { %530 = vmatpush.msrb.mxu2 %v483_v43 }
 0x248   :  { %531 = vmatpush.msrb.mxu2 %v482_v45 }
 0x24a   :  { %532 = vmatpush.msrb.mxu2 %v481_v59 }
 0x24b   :  { %533 = vmatmul.f32.vlgmr.msrb.gmra.mxu2 %v6492_v1 }
 0x2ae   :  { %v514_v60 = vpop.f32.mrf.mxu2 }
 0x2ce   :  { %v534_v63 = vpop.f32.mrf.mxu2 }
 0x2cf   :  { %v535_v0 = vadd.f32 %v534_v63, %v514_v60 }
 0x2d1   :  { %v537_v22 = vmul.f32 0.00390625, %v535_v0 }
 0x2d3   :  { %v538_v31 = vmul.f32 %v537_v22, %v537_v22 }
 0x2d5   :  { %540 = vrot.lane.b32.xlu1 %v538_v31, %s4531_s15 }
 0x347   :  { %v541_v25 = vpop.permute.xlu1 %540 }
 0x348   :  { %v543_v2 = vsub.f32 %v537_v22, %v541_v25 }
 0x34a   :  { %v544_v19 = vmax.f32 %v543_v2, 0.0 }
 0x34c   :  { %v545_v3 = vadd.f32 1e-05, %v544_v19 }
 0x34e   :  { %4526 = vrsqrt.f32 %v545_v3  ;;  %vm552_vm2 = vweird.f32 %v545_v3 }
 0x354   :  { %v4527_v4 = vpop.eup %4526 }
 0x355   :  { %v547_v28 = vmul.f32 %v4527_v4, %v545_v3  ;;  %vm553_vm1 = vweird.f32 %v4527_v4 }
 0x356   :  { %vm554_vm3 = vmor %vm552_vm2, %vm553_vm1 }
 0x357   :  { %v548_v7 = vmul.f32 %v4527_v4, %v547_v28 }
 0x359   :  { %v549_v61 = vmul.f32 0.5, %v548_v7 }
 0x35b   :  { %v550_v10 = vsub.f32 1.5, %v549_v61 }
 0x35d   :  { %v551_v11 = vmul.f32 %v4527_v4, %v550_v10 }
 0x35f   :  { %v555_v42 = vsel %vm554_vm3, %v4527_v4, %v551_v11  ;;  %vm1723_vm3 = vcmask 1043456  }
 0x360   :  { %557 = vrot.lane.b32.xlu2 %v555_v42, %s4531_s15 }
 0x3ba   :  { %v558_v13 = vpop.permute.xlu2 %557 }
 0x3bb   :  { %v560_v46 = vmul.f32 %v558_v13, %v21_v12 }
 0x3bd   :  { %v594_v14 = vmul.f32 %v560_v46, %v537_v22  ;;  %v4869_v15 = vperm.slane %v560_v46, 0 }
 0x3bf   :  { %v596_v9 = vrot.slane %v594_v14, 7  ;;  %v566_v8 = vmul.f32 %v4869_v15, %v4631_v23  ;;  %v567_v37 = vmul.f32 %v4869_v15, %v4633_v24  ;;  %v564_v59 = vmul.f32 %v4869_v15, %v4624_v20 }
 0x3c0   :  { %v565_v60 = vmul.f32 %v4869_v15, %v4626_v21  ;;  %v562_v0 = vmul.f32 %v4869_v15, %v4617_v17  ;;  %v563_v22 = vmul.f32 %v4869_v15, %v4619_v18  ;;  %v568_v17 = vmul.f32 %v4869_v15, %v4638_v26 }
 0x3c1   :  { %v598_v6 = vsub.f32 %v21_v12, %v596_v9  ;;  %v569_v18 = vmul.f32 %v4869_v15, %v4640_v27  ;;  %v570_v4 = vmul.f32 %v4869_v15, %v4645_v29  ;;  %v571_v28 = vmul.f32 %v4869_v15, %v4647_v30 }
 0x3c2   :  { %v572_v7 = vmul.f32 %v4869_v15, %v4652_v32  ;;  %v573_v61 = vmul.f32 %v4869_v15, %v4654_v33  ;;  %v574_v10 = vmul.f32 %v4869_v15, %v4659_v35  ;;  %v575_v27 = vmul.f32 %v4869_v15, %v4661_v36 }
 0x3c3   :  { %v4871_v34 = vperm.slane %v598_v6, 1  ;;  %v576_v29 = vmul.f32 %v4869_v15, %v4666_v38  ;;  %v577_v30 = vmul.f32 %v4869_v15, %v4668_v39  ;;  %v578_v32 = vmul.f32 %v4869_v15, %v4677_v44 }
 0x3c4   :  { %v579_v33 = vmul.f32 %v4869_v15, %v4682_v47  ;;  %v580_v35 = vmul.f32 %v4869_v15, %v4684_v48  ;;  %v581_v11 = vmul.f32 %v4869_v15, %v4686_v49  ;;  %v582_v36 = vmul.f32 %v4869_v15, %v4688_v50 }
 0x3c5   :  { %v604_v41 = vadd.f32 %v4871_v34, %v566_v8  ;;  %v605_v40 = vadd.f32 %v4871_v34, %v567_v37  ;;  %v602_v63 = vadd.f32 %v4871_v34, %v564_v59  ;;  %v603_v24 = vadd.f32 %v4871_v34, %v565_v60 }
 0x3c6   :  { %v600_v20 = vadd.f32 %v4871_v34, %v562_v0  ;;  %v601_v31 = vadd.f32 %v4871_v34, %v563_v22  ;;  %v608_v38 = vadd.f32 %v4871_v34, %v570_v4  ;;  %v609_v39 = vadd.f32 %v4871_v34, %v571_v28 }
 0x3c7   :  { %v4879_v43 = vmax.f32 %v604_v41, 0.0  ;;  %v4881_v45 = vmax.f32 %v605_v40, 0.0  ;;  %v4898_v21 = vmax.f32 %v602_v63, 0.0  ;;  %v4900_v25 = vmax.f32 %v603_v24, 0.0 }
 0x3c8   :  { %v4905_v19 = vmax.f32 %v600_v20, 0.0  ;;  %v4907_v3 = vmax.f32 %v601_v31, 0.0  ;;  %v610_v44 = vadd.f32 %v4871_v34, %v572_v7  ;;  %v611_v42 = vadd.f32 %v4871_v34, %v573_v61 }
 0x3c9   :  { %v4373_v23 = vpack.i.bf16 %v4881_v45, %v4879_v43  ;;  %v4368_v2 = vpack.i.bf16 %v4900_v25, %v4898_v21  ;;  %v583_v47 = vmul.f32 %v4869_v15, %v4690_v51  ;;  %v584_v48 = vmul.f32 %v4869_v15, %v4692_v52 }
 0x3ca   :  { %v4363_v26 = vpack.i.bf16 %v4907_v3, %v4905_v19  ;;  %v606_v49 = vadd.f32 %v4871_v34, %v568_v17  ;;  %v607_v50 = vadd.f32 %v4871_v34, %v569_v18  ;;  %v585_v12 = vmul.f32 %v4869_v15, %v4694_v53 }
 0x3cb   :  { %4374 = vrot.lane.b32.xlu2 %v4373_v23, %s4531_s15  ;;  %4369 = vrot.lane.b32.xlu1 %v4368_v2, %s4531_s15  ;;  %v586_v13 = vmul.f32 %v4869_v15, %v4696_v54  ;;  %v4958_v46 = vmul.f32 %v4869_v15, %v4698_v55  ;;  %v4962_v51 = vmul.f32 %v4869_v15, %v4700_v56  ;;  %v4980_v55 = vmax.f32 %v608_v38, 0.0 }
 0x3cc   :  { %4364 = vrot.lane.b32.xlu0 %v4363_v26, %s4531_s15  ;;  %v4966_v52 = vmul.f32 %v4869_v15, %v4702_v57  ;;  %v4970_v14 = vmul.f32 %v4869_v15, %v4711_v62  ;;  %v4974_v53 = vmul.f32 %v4869_v15, %v4723_v5  ;;  %v4978_v54 = vmul.f32 %v4869_v15, %v4737_v16 }
 0x3cd   :  { %v4982_v56 = vmax.f32 %v609_v39, 0.0  ;;  %v4984_v9 = vmax.f32 %v610_v44, 0.0  ;;  %v4986_v57 = vmax.f32 %v611_v42, 0.0  ;;  %v612_v6 = vadd.f32 %v4871_v34, %v574_v10 }
 0x3ce   :  { %v613_v62 = vadd.f32 %v4871_v34, %v575_v27  ;;  %v4990_v8 = vmax.f32 %v606_v49, 0.0  ;;  %v4992_v5 = vmax.f32 %v607_v50, 0.0  ;;  %v614_v37 = vadd.f32 %v4871_v34, %v576_v29 }
 0x3cf   :  { %v615_v16 = vadd.f32 %v4871_v34, %v577_v30  ;;  %v616_v41 = vadd.f32 %v4871_v34, %v578_v32  ;;  %v617_v40 = vadd.f32 %v4871_v34, %v579_v33  ;;  %v618_v59 = vadd.f32 %v4871_v34, %v580_v35  ;;  %v4214_v30 = vld [vmem:[%s6489_s2 + $0x38] sm:$0xff] }
 0x3d0   :  { %v5000_v60 = vadd.f32 %v4871_v34, %v581_v11  ;;  %v620_v23 = vadd.f32 %v4871_v34, %v582_v36  ;;  %v621_v63 = vadd.f32 %v4871_v34, %v583_v47  ;;  %v622_v24 = vadd.f32 %v4871_v34, %v584_v48  ;;  %2370 = vmatpush.bf16.msra.mxu2 %v4214_v30  ;;  %v4213_v36 = vld [vmem:[%s6489_s2 + $0x30] sm:$0xff] }
 0x3d1   :  { %v623_v0 = vadd.f32 %v4871_v34, %v585_v12  ;;  %v4388_v22 = vpack.i.bf16 %v4986_v57, %v4984_v9  ;;  %v4383_v20 = vpack.i.bf16 %v4982_v56, %v4980_v55  ;;  %v624_v31 = vadd.f32 %v4871_v34, %v586_v13 }
 0x3d2   :  { %v1313_v2 = vrot.slane %v4879_v43, 7  ;;  %v6503_v17 = vrot.slane %v4900_v25, 7  ;;  %v4378_v18 = vpack.i.bf16 %v4992_v5, %v4990_v8  ;;  %v6500_v4 = vrot.slane %v4881_v45, 7 }
 0x3d3   :  { %v1442_v28 = vrot.slane %v4879_v43, 1  ;;  %v5017_v7 = vmax.f32 %v615_v16, 0.0  ;;  %v5019_v61 = vmax.f32 %v616_v41, 0.0  ;;  %4389 = vrot.lane.b32.xlu2 %v4388_v22, %s4531_s15  ;;  %4384 = vrot.lane.b32.xlu1 %v4383_v20, %s4531_s15  ;;  %v5023_v10 = vmax.f32 %v614_v37, 0.0 }
 0x3d4   :  { %v6502_v26 = vrot.slane %v4982_v56, 7  ;;  %v1325_v27 = vrot.slane %v4984_v9, 7  ;;  %v6498_v29 = vrot.slane %v4990_v8, 1  ;;  %4379 = vrot.lane.b32.xlu0 %v4378_v18, %s4531_s15  ;;  %v5032_v32 = vmax.f32 %v617_v40, 0.0  ;;  %2371 = vmatpush.bf16.msra.mxu2 %v4213_v36 }
 0x3d5   :  { %v6494_v33 = vrot.slane %v4986_v57, 7  ;;  %v5035_v35 = vmax.f32 %v612_v6, 0.0  ;;  %v5037_v11 = vmax.f32 %v613_v62, 0.0  ;;  %v1444_v38 = vrot.slane %v4881_v45, 1 }
 0x3d6   :  { %v5046_v39 = vsel %vm1305_vm4, %v6503_v17, %v1313_v2  ;;  %v5048_v44 = vmax.f32 %v621_v63, 0.0  ;;  %v6495_v42 = vrot.slane %v5017_v7, 7  ;;  %v1337_v47 = vrot.slane %v5019_v61, 7 }
 0x3d7   :  { %v5055_v48 = vsel %vm1305_vm4, %v1313_v2, %v6500_v4  ;;  %v5057_v49 = vmax.f32 %v622_v24, 0.0  ;;  %v5062_v50 = vsel %vm1434_vm5, %v1444_v38, %v6498_v29  ;;  %v5067_v12 = vsel %vm1434_vm5, %v1442_v28, %v1444_v38 }
 0x3d8   :  { %v5072_v13 = vsel %vm1305_vm4, %v6502_v26, %v1325_v27  ;;  %v5074_v6 = vmax.f32 %v618_v59, 0.0  ;;  %v4403_v62 = vpack.i.bf16 %v5032_v32, %v5019_v61  ;;  %v4398_v37 = vpack.i.bf16 %v5017_v7, %v5023_v10 }
 0x3d9   :  { %v5083_v16 = vsel %vm1305_vm4, %v1325_v27, %v6494_v33  ;;  %v6501_v41 = vrot.slane %v4984_v9, 1  ;;  %v6496_v40 = vrot.slane %v5035_v35, 1  ;;  %v4393_v63 = vpack.i.bf16 %v5037_v11, %v5035_v35 }
 0x3da   :  { %v1456_v59 = vrot.slane %v4986_v57, 1  ;;  %v626_v24 = vadd.f32 %v4871_v34, %v4962_v51  ;;  %v5092_v22 = vmax.f32 %v623_v0, 0.0  ;;  %v6497_v20 = vrot.slane %v5032_v32, 7 }
 0x3db   :  { %4404 = vrot.lane.b32.xlu2 %v4403_v62, %s4531_s15  ;;  %4399 = vrot.lane.b32.xlu1 %v4398_v37, %s4531_s15  ;;  %v5100_v2 = vsel %vm1305_vm4, %v6495_v42, %v1337_v47  ;;  %v627_v18 = vadd.f32 %v4871_v34, %v4966_v52  ;;  %v5104_v27 = vmax.f32 %v624_v31, 0.0  ;;  %v6499_v51 = vrot.slane %v5048_v44, 7 }
 0x3dc   :  { %v1349_v0 = vrot.slane %v5057_v49, 7  ;;  %4394 = vrot.lane.b32.xlu0 %v4393_v63, %s4531_s15  ;;  %v628_v30 = vadd.f32 %v4871_v34, %v4970_v14  ;;  %v5111_v36 = vmax.f32 %v620_v23, 0.0  ;;  %v6506_v38 = vrot.slane %v5019_v61, 1 }
 0x3dd   :  { %v6504_v62 = vrot.slane %v5074_v6, 1  ;;  %v629_v52 = vadd.f32 %v4871_v34, %v4974_v53  ;;  %v5118_v31 = vmax.f32 %v5000_v60, 0.0  ;;  %v5123_v37 = vsel %vm1434_vm5, %v6501_v41, %v1456_v59 }
 0x3de   :  { %v5128_v14 = vsel %vm1434_vm5, %v1456_v59, %v6496_v40  ;;  %v1309_v23 = vrot.slane %v4898_v21, 7  ;;  %v6505_v63 = vrot.slane %v5092_v22, 7  ;;  %v5135_v53 = vsel %vm1305_vm4, %v1337_v47, %v6497_v20 }
 0x3df   :  { %v1468_v60 = vrot.slane %v5032_v32, 1  ;;  %v1307_v1 = vrot.slane %v4907_v3, 7  ;;  %v6507_v33 = vrot.slane %v5057_v49, 1  ;;  %v6508_v42 = vrot.slane %v5104_v27, 1 }
 0x3e0   :  { %v5144_v59 = vsel %vm1305_vm4, %v6499_v51, %v1349_v0  ;;  %v4418_v40 = vpack.i.bf16 %v5092_v22, %v5057_v49  ;;  %v4413_v47 = vpack.i.bf16 %v5048_v44, %v5111_v36  ;;  %v625_v51 = vadd.f32 %v4871_v34, %v4958_v46 }
 0x3e1   :  { %v5153_v20 = vsel %vm1434_vm5, %v6506_v38, %v1468_v60  ;;  %v5158_v29 = vsel %vm1434_vm5, %v1468_v60, %v6504_v62  ;;  %v630_v4 = vadd.f32 %v4871_v34, %v4978_v54  ;;  %v4408_v41 = vpack.i.bf16 %v5118_v31, %v5074_v6 }
 0x3e2   :  { %v5166_v26 = vmax.f32 %v626_v24, 0.0  ;;  %v1438_v17 = vrot.slane %v4898_v21, 1  ;;  %v5174_v60 = vsel %vm1305_vm4, %v1349_v0, %v6505_v63  ;;  %v1480_v46 = vrot.slane %v5092_v22, 1 }
 0x3e3   :  { %4419 = vrot.lane.b32.xlu2 %v4418_v40, %s4531_s15  ;;  %4414 = vrot.lane.b32.xlu1 %v4413_v47, %s4531_s15  ;;  %v5177_v62 = vmax.f32 %v627_v18, 0.0  ;;  %v5179_v54 = vmax.f32 %v628_v30, 0.0  ;;  %v1440_v24 = vrot.slane %v4900_v25, 1  ;;  %v5184_v21 = vsel %vm1305_vm4, %v1307_v1, %v1309_v23 }
 0x3e4   :  { %4409 = vrot.lane.b32.xlu0 %v4408_v41, %s4531_s15  ;;  %v5186_v40 = vmax.f32 %v629_v52, 0.0  ;;  %v5192_v0 = vsel %vm1434_vm5, %v6507_v33, %v1480_v46  ;;  %v5197_v18 = vsel %vm1434_vm5, %v1480_v46, %v6508_v42  ;;  %v5199_v41 = vmax.f32 %v625_v51, 0.0 }
 0x3e5   :  { %6512 = vst [vmem:[#allocation3_spill] sm:$0xff] %v5192_v0  ;;  %v5201_v30 = vmax.f32 %v630_v4, 0.0  ;;  %v1435_v63 = vrot.slane %v4905_v19, 1  ;;  %v5207_v52 = vsel %vm1434_vm5, %v1440_v24, %v1442_v28  ;;  %v6513_v38 = vrot.slane %v4900_v25, 7 }
 0x3e6   :  { %v5215_v47 = vsel %vm1434_vm5, %v1438_v17, %v1440_v24  ;;  %v593_v51 = vmul.f32 %v4869_v15, %v4756_v58  ;;  %v1361_v46 = vrot.slane %v5179_v54, 7  ;;  %v1436_v43 = vrot.slane %v4907_v3, 1 }
 0x3e7   :  { %v5212_v33 = vsel %vm1305_vm4, %v1309_v23, %v6513_v38  ;;  %v4433_v25 = vpack.i.bf16 %v5186_v40, %v5179_v54  ;;  %v4428_v38 = vpack.i.bf16 %v5177_v62, %v5166_v26  ;;  %v6514_v23 = vrot.slane %v4905_v19, 7 }
 0x3e8   :  { %v631_v58 = vadd.f32 %v4871_v34, %v593_v51  ;;  %v1319_v15 = vrot.slane %v4992_v5, 7  ;;  %v4423_v3 = vpack.i.bf16 %v5199_v41, %v5104_v27  ;;  %v5237_v42 = vsel %vm1434_vm5, %v1436_v43, %v1438_v17 }
 0x3e9   :  { %v5230_v24 = vsel %vm1305_vm4, %v6514_v23, %v1307_v1  ;;  %v1321_v28 = vrot.slane %v4980_v55, 7  ;;  %v6509_v4 = vrot.slane %v5179_v54, 1  ;;  %v5245_v1 = vsel %vm1434_vm5, %v1435_v63, %v1436_v43 }
 0x3ea   :  { %v6515_v34 = vrot.slane %v5177_v62, 7  ;;  %v6516_v51 = vrot.slane %v5186_v40, 7  ;;  %v1492_v0 = vrot.slane %v5186_v40, 1  ;;  %v6519_v43 = vrot.slane %v5201_v30, 1 }
 0x3eb   :  { %4434 = vrot.lane.b32.xlu2 %v4433_v25, %s4531_s15  ;;  %4429 = vrot.lane.b32.xlu1 %v4428_v38, %s4531_s15  ;;  %v5259_v25 = vmax.f32 %v631_v58, 0.0  ;;  %v1450_v38 = vrot.slane %v4980_v55, 1  ;;  %v1317_v55 = vrot.slane %v4990_v8, 7 }
 0x3ec   :  { %4424 = vrot.lane.b32.xlu0 %v4423_v3, %s4531_s15  ;;  %v5251_v17 = vsel %vm1305_vm4, %v6515_v34, %v1361_v46  ;;  %v5256_v23 = vsel %vm1305_vm4, %v1361_v46, %v6516_v51  ;;  %v5265_v63 = vsel %vm1434_vm5, %v6509_v4, %v1492_v0  ;;  %v5270_v3 = vsel %vm1434_vm5, %v1492_v0, %v6519_v43 }
 0x3ed   :  { %6517 = vst [vmem:[#allocation4_spill] sm:$0xff] %v5256_v23  ;;  %v5273_v34 = vsel %vm1305_vm4, %v1319_v15, %v1321_v28  ;;  %v6522_v46 = vrot.slane %v4982_v56, 7  ;;  %v1452_v51 = vrot.slane %v4982_v56, 1  ;;  %v1331_v4 = vrot.slane %v5037_v11, 7 }
 0x3ee   :  { %6518 = vst [vmem:[#allocation5_spill] sm:$0xff] %v5265_v63  ;;  %v1333_v63 = vrot.slane %v5023_v10, 7  ;;  %v4438_v0 = vpack.i.bf16 %v5259_v25, %v5201_v30  ;;  %v6525_v23 = vrot.slane %v4984_v9, 1  ;;  %v6527_v56 = vrot.slane %v4881_v45, 7 }
 0x3ef   :  { %6520 = vst [vmem:[#allocation6_spill] sm:$0xff] %v5270_v3  ;;  %v5278_v58 = vsel %vm1305_vm4, %v1321_v28, %v6522_v46  ;;  %v5287_v43 = vsel %vm1434_vm5, %v1450_v38, %v1452_v51  ;;  %v664_v28 = vlaneseq  ;;  %v1448_v3 = vrot.slane %v4992_v5, 1 }
 0x3f0   :  { %6521 = vst [vmem:[#allocation7_spill] sm:$0xff] %v5273_v34  ;;  %v5292_v34 = vsel %vm1434_vm5, %v1452_v51, %v6525_v23  ;;  %v5298_v46 = vsel %vm1305_vm4, %v6527_v56, %v1317_v55  ;;  %v1462_v9 = vrot.slane %v5023_v10, 1  ;;  %v6531_v23 = vrot.slane %v4990_v8, 1 }
 0x3f1   :  { %6523 = vst [vmem:[#allocation8_spill] sm:$0xff] %v5278_v58  ;;  %v5301_v58 = vsel %vm1305_vm4, %v1317_v55, %v1319_v15  ;;  %v5314_v45 = vsel %vm1434_vm5, %v1448_v3, %v1450_v38  ;;  %v5317_v56 = vshrl.u32 %v664_v28, 7  ;;  %v6534_v15 = vrot.slane %v5017_v7, 7  ;;  %v4212_v38 = vld [vmem:[%s6489_s2 + $0x28] sm:$0xff] }
 0x3f2   :  { %6524 = vst [vmem:[#allocation9_spill] sm:$0xff] %v5287_v43  ;;  %v5305_v43 = vsel %vm1305_vm4, %v1331_v4, %v1333_v63  ;;  %v5311_v51 = vsel %vm1434_vm5, %v6531_v23, %v1448_v3  ;;  %v1464_v55 = vrot.slane %v5017_v7, 1  ;;  %v1341_v10 = vrot.slane %v5074_v6, 7  ;;  %2372 = vmatpush.bf16.msra.mxu2 %v4212_v38 }
 0x3f3   :  { %6526 = vst [vmem:[#allocation10_spill] sm:$0xff] %v5292_v34  ;;  %v5322_v5 = vsel %vm1305_vm4, %v1333_v63, %v6534_v15  ;;  %v1343_v8 = vrot.slane %v5118_v31, 7  ;;  %v1345_v23 = vrot.slane %v5111_v36, 7  ;;  %v1357_v28 = vrot.slane %v5166_v26, 7 }
 0x3f4   :  { %4439 = vrot.lane.b32.xlu0 %v4438_v0, %s4531_s15  ;;  %6528 = vst [vmem:[#allocation11_spill] sm:$0xff] %v5298_v46  ;;  %v1329_v0 = vrot.slane %v5035_v35, 7  ;;  %v6537_v63 = vrot.slane %v5019_v61, 1  ;;  %v6539_v3 = vrot.slane %v4986_v57, 7  ;;  %v686_v7 = vadd.s32 168, %v5317_v56  ;;  %v4211_v57 = vld [vmem:[%s6489_s2 + $0x20] sm:$0xff] }
 0x3f5   :  { %6529 = vst [vmem:[#allocation12_spill] sm:$0xff] %v5301_v58  ;;  %v1474_v58 = vrot.slane %v5111_v36, 1  ;;  %v1476_v34 = vrot.slane %v5048_v44, 1 }
 0x3f6   :  { %6530 = vst [vmem:[#allocation13_spill] sm:$0xff] %v5305_v43  ;;  %v5332_v43 = vsel %vm1434_vm5, %v1462_v9, %v1464_v55  ;;  %v5337_v15 = vsel %vm1434_vm5, %v1464_v55, %v6537_v63  ;;  %v5355_v61 = vsel %vm1305_vm4, %v1329_v0, %v1331_v4  ;;  %v1460_v55 = vrot.slane %v5037_v11, 1  ;;  %2373 = vmatpush.bf16.msra.mxu2 %v4211_v57 }
 0x3f7   :  { %6532 = vst [vmem:[#allocation14_spill] sm:$0xff] %v5311_v51  ;;  %v5344_v51 = vadd.s32 40, %v5317_v56  ;;  %v685_v63 = vadd.s32 160, %v5317_v56  ;;  %v6542_v4 = vrot.slane %v5048_v44, 7  ;;  %v848_v46 = vand.u32 15, %v686_v7 }
 0x3f8   :  { %6533 = vst [vmem:[#allocation15_spill] sm:$0xff] %v5314_v45  ;;  %v5378_v36 = vsel %vm1434_vm5, %v1460_v55, %v1462_v9  ;;  %v5389_v9 = vsel %vm1305_vm4, %v1341_v10, %v1343_v8  ;;  %v691_v11 = vadd.s32 208, %v5317_v56 }
 0x3f9   :  { %6535 = vst [vmem:[#allocation16_spill] sm:$0xff] %v5322_v5  ;;  %v5341_v5 = vadd.s32 32, %v5317_v56  ;;  %v841_v45 = vand.u32 15, %v685_v63  ;;  %vm1198_vm7 = vcmp.le.s32.totalorder %v848_v46, 14  ;;  %v6510_v63 = vmov 0.0  }
 0x3fa   :  { %6536 = vst [vmem:[#allocation17_spill] sm:$0xff] %v5332_v43  ;;  %v5352_v43 = vsel %vm1305_vm4, %v6539_v3, %v1329_v0  ;;  %v1346_v3 = vsel %vm1305_vm4, %v1343_v8, %v1345_v23  ;;  %v5369_v0 = vsel %vm1305_vm4, %v1345_v23, %v6542_v4  ;;  %v683_v23 = vadd.s32 144, %v5317_v56 }
 0x3fb   :  { %6538 = vst [vmem:[#allocation18_spill] sm:$0xff] %v5337_v15  ;;  %v684_v4 = vadd.s32 152, %v5317_v56  ;;  %vm1101_vm6 = vcmp.ge.s32.totalorder %v841_v45, 1  ;;  %v3683_v44 = vsel %vm1198_vm7, 1.0, %v6510_v63 }
 0x3fc   :  { %6540 = vst [vmem:[#allocation19_spill] sm:$0xff] %v5352_v43  ;;  %v3667_v7 = vsel %vm1101_vm6, 1.0, %v6510_v63  ;;  %v5395_v43 = vsel %vm1434_vm5, %v1474_v58, %v1476_v34  ;;  %v827_v45 = vand.u32 15, %v683_v23  ;;  %v692_v63 = vadd.s32 216, %v5317_v56 }
 0x3fd   :  { %6541 = vst [vmem:[#allocation20_spill] sm:$0xff] %v5355_v61  ;;  %v6543_v61 = vrot.slane %v5035_v35, 1  ;;  %v6544_v35 = vrot.slane %v5032_v32, 7  ;;  %v6545_v32 = vrot.slane %v5057_v49, 1  ;;  %v5400_v57 = vmul.f32 %v3667_v7, %v1346_v3 }
 0x3fe   :  { %vm1099_vm8 = vcmp.ge.s32.totalorder %v827_v45, 1  ;;  %v6547_v49 = vrot.slane %v5199_v41, 7  ;;  %v6548_v3 = vrot.slane %v5177_v62, 7  ;;  %v689_v45 = vadd.s32 192, %v5317_v56 }
 0x3ff   :  { %v5375_v15 = vsel %vm1434_vm5, %v6543_v61, %v1460_v55  ;;  %v1342_v61 = vsel %vm1305_vm4, %v6544_v35, %v1341_v10  ;;  %v1472_v55 = vrot.slane %v5118_v31, 1  ;;  %v1479_v35 = vsel %vm1434_vm5, %v1476_v34, %v6545_v32 }
 0x400   :  { %v5402_v46 = vmul.f32 %v3683_v44, %v1479_v35  ;;  %v834_v10 = vand.u32 15, %v684_v4  ;;  %v6546_v31 = vrot.slane %v5074_v6, 1  ;;  %v1358_v34 = vsel %vm1305_vm4, %v6547_v49, %v1357_v28 }
 0x401   :  { %v1475_v38 = vsel %vm1434_vm5, %v1472_v55, %v1474_v58  ;;  %v5418_v23 = vsel %vm1305_vm4, %v1357_v28, %v6548_v3  ;;  %v6549_v6 = vmov 0.0   ;;  %v883_v58 = vand.u32 15, %v691_v11 }
 0x402   :  { %v5407_v8 = vsel %vm1434_vm5, %v6546_v31, %v1472_v55  ;;  %vm1196_vm9 = vcmp.le.s32.totalorder %v834_v10, 14  ;;  %v3666_v4 = vsel %vm1099_vm8, 1.0, %v6549_v6  ;;  %v890_v55 = vand.u32 15, %v692_v63 }
 0x403   :  { %v3682_v7 = vsel %vm1196_vm9, 1.0, %v6549_v6  ;;  %v5422_v44 = vmul.f32 %v3666_v4, %v1342_v61  ;;  %v1488_v35 = vrot.slane %v5177_v62, 1  ;;  %vm1107_vm10 = vcmp.ge.s32.totalorder %v883_v58, 1 }
 0x404   :  { %v5424_v32 = vmul.f32 %v3682_v7, %v1475_v38  ;;  %vm1204_vm11 = vcmp.le.s32.totalorder %v890_v55, 14  ;;  %v690_v10 = vadd.s32 200, %v5317_v56  ;;  %v6550_v28 = vrot.slane %v5104_v27, 7 }
 0x405   :  { %v6551_v31 = vrot.slane %v5092_v22, 7  ;;  %v3670_v11 = vsel %vm1107_vm10, 1.0, %v6549_v6  ;;  %v3686_v61 = vsel %vm1204_vm11, 1.0, %v6549_v6  ;;  %v6552_v38 = vrot.slane %v5166_v26, 1 }
 0x406   :  { %v6554_v63 = vrot.slane %v5179_v54, 1  ;;  %v5444_v4 = vmul.f32 %v3670_v11, %v1358_v34  ;;  %v869_v22 = vand.u32 15, %v689_v45  ;;  %v876_v58 = vand.u32 15, %v690_v10 }
 0x407   :  { %v1354_v49 = vsel %vm1305_vm4, %v6551_v31, %v6550_v28  ;;  %v5439_v62 = vsel %vm1434_vm5, %v6552_v38, %v1488_v35  ;;  %v6555_v55 = vrot.slane %v5199_v41, 7  ;;  %v1484_v38 = vrot.slane %v5199_v41, 1 }
 0x408   :  { %6553 = vst [vmem:[#allocation21_spill] sm:$0xff] %v5439_v62  ;;  %v1491_v3 = vsel %vm1434_vm5, %v1488_v35, %v6554_v63  ;;  %v695_v62 = vadd.s32 240, %v5317_v56  ;;  %v696_v54 = vadd.s32 248, %v5317_v56  ;;  %vm1105_vm12 = vcmp.ge.s32.totalorder %v869_v22, 1 }
 0x409   :  { %v5446_v7 = vmul.f32 %v3686_v61, %v1491_v3  ;;  %v5453_v31 = vsel %vm1305_vm4, %v6550_v28, %v6555_v55  ;;  %vm1202_vm13 = vcmp.le.s32.totalorder %v876_v58, 14  ;;  %v6556_v34 = vrot.slane %v5201_v30, 7 }
 0x40a   :  { %v6557_v35 = vrot.slane %v5186_v40, 7  ;;  %v6558_v10 = vrot.slane %v5259_v25, 7  ;;  %v3669_v41 = vsel %vm1105_vm12, 1.0, %v6549_v6  ;;  %v3685_v63 = vsel %vm1202_vm13, 1.0, %v6549_v6 }
 0x40b   :  { %v6559_v11 = vmov %v6556_v34  ;;  %v6560_v3 = vrot.slane %v5104_v27, 1  ;;  %v6561_v40 = vrot.slane %v5166_v26, 1  ;;  %v5480_v55 = vmul.f32 %v3669_v41, %v1354_v49 }
 0x40c   :  { %v1366_v45 = vsel %vm1305_vm4, %v6557_v35, %v6556_v34  ;;  %v5468_v61 = vsel %vm1305_vm4, %v6559_v11, %v6558_v10  ;;  %v911_v34 = vand.u32 15, %v695_v62  ;;  %v918_v35 = vand.u32 15, %v696_v54 }
 0x40d   :  { %v5475_v22 = vsel %vm1434_vm5, %v6560_v3, %v1484_v38  ;;  %v1487_v58 = vsel %vm1434_vm5, %v1484_v38, %v6561_v40  ;;  %v6562_v10 = vand.u32 15, %v5341_v5  ;;  %v1496_v11 = vrot.slane %v5259_v25, 1  ;;  %v4218_v3 = vld [vmem:[%s6489_s2 + $0x58] sm:$0xff] }
 0x40e   :  { %v5482_v28 = vmul.f32 %v3685_v63, %v1487_v58  ;;  %v6563_v27 = vand.u32 15, %v5344_v51  ;;  %vm1111_vm1 = vcmp.ge.s32.totalorder %v911_v34, 1  ;;  %vm1208_vm2 = vcmp.le.s32.totalorder %v918_v35, 14  ;;  %v4228_v63 = vld [vmem:[%s6489_s2 + $0x98] sm:$0xff]  ;;  %v4227_v35 = vld [vmem:[%s6489_s2 + $0x90] sm:$0xff]  ;;  %2463 = vmatpush.bf16.msrb.mxu0 %v4218_v3  ;;  %v4207_v3 = vld [vmem:[%s6489_s2] sm:$0xff] }
 0x40f   :  { %vm1085_vm14 = vcmp.ge.s32.totalorder %v6562_v10, 1  ;;  %v3672_v26 = vsel %vm1111_vm1, 1.0, %v6549_v6  ;;  %v3688_v38 = vsel %vm1208_vm2, 1.0, %v6549_v6  ;;  %v6564_v49 = vrot.slane %v5201_v30, 1  ;;  %v4210_v30 = vld [vmem:[%s6489_s2 + $0x18] sm:$0xff]  ;;  %2108 = vmatpush.bf16.msra.mxu3 %v4228_v63  ;;  %v4209_v10 = vld [vmem:[%s6489_s2 + $0x10] sm:$0xff] }
 0x410   :  { %vm1182_vm15 = vcmp.le.s32.totalorder %v6563_v27, 14  ;;  %v1530_v62 = vsel %vm1434_vm5, %v1496_v11, 0.0  ;;  %v3659_v5 = vsel %vm1085_vm14, 1.0, %v6549_v6  ;;  %v5498_v54 = vmul.f32 %v3672_v26, %v1366_v45  ;;  %2374 = vmatpush.bf16.msra.mxu2 %v4210_v30  ;;  %v4217_v27 = vld [vmem:[%s6489_s2 + $0x50] sm:$0xff]  ;;  %v4225_v30 = vld [vmem:[%s6489_s2 + $0x80] sm:$0xff] }
 0x411   :  { %v5494_v41 = vsel %vm1434_vm5, %v6564_v49, %v1496_v11  ;;  %v5500_v25 = vmul.f32 %v3688_v38, %v1530_v62  ;;  %v3675_v51 = vsel %vm1182_vm15, 1.0, %v6549_v6  ;;  %vm1724_vm5 = vcmask 523268  }
 0x412   :  { %6565 = vst [vmem:[#allocation22_spill] sm:$0xff] %v5494_v41  ;;  %v1406_v34 = vmul.f32 %v3659_v5, %v5046_v39  ;;  %v1536_v11 = vmul.f32 %v3675_v51, %v5062_v50  ;;  %vm5523_vm6 = vmor %vm1724_vm5, %vm1723_vm3  ;;  %2464 = vmatpush.bf16.msrb.mxu0 %v4217_v27  ;;  %v4226_v50 = vld [vmem:[%s6489_s2 + $0x88] sm:$0xff]  ;;  %v4534_v5 = vmov 0   ;;  %v675_v51 = vadd.s32 80, %v5317_v56 }
 0x413   :  { %2109 = vmatpush.bf16.msra.mxu3 %v4227_v35  ;;  %1726 = vst.msk [vmem:[#allocation2] sm:$0xff] %vm5523_vm6, %v4534_v5  ;;  %v676_v63 = vadd.s32 88, %v5317_v56  ;;  %v682_v35 = vadd.s32 136, %v5317_v56 }
 0x414   :  { %2375 = vmatpush.bf16.msra.mxu2 %v4209_v10  ;;  %1727 = vst.msk [vmem:[#allocation2 + $0x8] sm:$0xff] %vm5523_vm6, %v4534_v5  ;;  %v667_v10 = vadd.s32 16, %v5317_v56 }
 0x415   :  { %1728 = vst.msk [vmem:[#allocation2 + $0x110] sm:$0xff] %vm5523_vm6, %v4534_v5 }
 0x416   :  { %1729 = vst.msk [vmem:[#allocation2 + $0x118] sm:$0xff] %vm5523_vm6, %v4534_v5 }
 0x417   :  { %2110 = vmatpush.bf16.msra.mxu3 %v4226_v50  ;;  %v4232_v50 = vld [vmem:[%s6489_s2 + $0xb8] sm:$0xff] }
 0x418   :  { %2201 = vmatpush.bf16.msra.mxu1 %v4232_v50 }
 0x41a   :  { %v4175_v27 = vld [vmem:[#allocation2 + $0x4] sm:$0xf] }
 0x41b   :  { %2111 = vmatpush.bf16.msra.mxu3 %v4225_v30 }
 0x425   :  { %v4375_v45 = vpop.permute.xlu2 %4374 }
 0x426   :  { %v4377_v40 = vunpack.i.h.bf16 %v4375_v45  ;;  %v4376_v58 = vunpack.i.l.bf16 %v4375_v45  ;;  %v4215_v45 = vld [vmem:[%s6489_s2 + $0x40] sm:$0xff] }
 0x428   :  { %v1663_v39 = vsel %vm464_vm0, %v1406_v34, %v4376_v58  ;;  %v1664_v38 = vsel %vm464_vm0, %v5055_v48, %v4377_v40  ;;  %v4208_v48 = vld [vmem:[%s6489_s2 + $0x8] sm:$0xff]  ;;  %v771_v40 = vand.u32 15, %v675_v51  ;;  %v778_v58 = vand.u32 15, %v676_v63  ;;  %v4223_v63 = vld [vmem:[%s6489_s2 + $0x70] sm:$0xff] }
 0x429   :  { %v1695_v49 = vpack.c.bf16 %v5067_v12, %v1663_v39  ;;  %v1696_v62 = vpack.c.bf16 %v1536_v11, %v1664_v38  ;;  %v4216_v12 = vld [vmem:[%s6489_s2 + $0x48] sm:$0xff]  ;;  %2376 = vmatpush.bf16.msra.mxu2 %v4208_v48  ;;  %v681_v34 = vadd.s32 128, %v5317_v56  ;;  %v3883_v11 = vld [vmem:[#allocation2] sm:$0xf]  ;;  %v668_v39 = vadd.s32 24, %v5317_v56  ;;  %v4224_v38 = vld [vmem:[%s6489_s2 + $0x78] sm:$0xff] }
 0x42a   :  { %2465 = vmatpush.bf16.msrb.mxu0 %v4216_v12  ;;  %vm5573_vm7 = vcmp.ge.s32.totalorder %v771_v40, 1  ;;  %vm5577_vm8 = vcmp.le.s32.totalorder %v778_v58, 14  ;;  %2112 = vmatpush.bf16.msra.mxu3 %v4224_v38  ;;  %v688_v40 = vadd.s32 184, %v5317_v56  ;;  %v4231_v58 = vld [vmem:[%s6489_s2 + $0xb0] sm:$0xff]  ;;  %v666_v38 = vadd.s32 8, %v5317_v56 }
 0x42b   :  { %1734 = vst.msk [vmem:[#allocation2 + $0x30] sm:$0xff] %vm5523_vm6, %v1695_v49  ;;  %v4176_v49 = vld [vmem:[#allocation2 + $0x4] sm:$0xf0]  ;;  %v813_v30 = vand.u32 15, %v681_v34  ;;  %v3662_v34 = vsel %vm5573_vm7, 1.0, %v6549_v6  ;;  %2202 = vmatpush.bf16.msra.mxu1 %v4231_v58 }
 0x42c   :  { %1735 = vst.msk [vmem:[#allocation2 + $0x38] sm:$0xff] %vm5523_vm6, %v1696_v62  ;;  %v3885_v62 = vld [vmem:[#allocation2 + $0x8] sm:$0xf0]  ;;  %v3884_v5 = vor.u32 %v4176_v49, %v3883_v11  ;;  %v715_v11 = vand.u32 15, %v667_v10  ;;  %v701_v10 = vand.u32 15, %v5317_v56  ;;  %v1412_v50 = vmul.f32 %v3662_v34, %v5072_v13 }
 0x42d   :  { %2377 = vmatpush.bf16.msra.mxu2 %v4207_v3  ;;  %v3888_v51 = vor.u32 %v4175_v27, %v3885_v62  ;;  %v820_v3 = vand.u32 15, %v682_v35  ;;  %v722_v27 = vand.u32 15, %v668_v39  ;;  %v3678_v35 = vsel %vm5577_vm8, 1.0, %v6549_v6 }
 0x42e   :  { %2466 = vmatpush.bf16.msrb.mxu0 %v4215_v45  ;;  %v687_v45 = vadd.s32 176, %v5317_v56  ;;  %2113 = vmatpush.bf16.msra.mxu3 %v4223_v63  ;;  %vm1097_vm9 = vcmp.ge.s32.totalorder %v813_v30, 1  ;;  %v862_v62 = vand.u32 15, %v688_v40  ;;  %vm1083_vm11 = vcmp.ge.s32.totalorder %v715_v11, 1 }
 0x42f   :  { %vm1194_vm10 = vcmp.le.s32.totalorder %v820_v3, 14  ;;  %vm1180_vm12 = vcmp.le.s32.totalorder %v722_v27, 14  ;;  %v708_v39 = vand.u32 15, %v666_v38  ;;  %v1542_v48 = vmul.f32 %v3678_v35, %v5128_v14  ;;  %v4222_v27 = vld [vmem:[%s6489_s2 + $0x68] sm:$0xff] }
 0x430   :  { %2378 = vmatmul.bf16.vlgmr.msra.gmra.mxu2 %v3884_v5  ;;  %v855_v49 = vand.u32 15, %v687_v45  ;;  %v4390_v5 = vpop.permute.xlu2 %4389  ;;  %v3665_v12 = vsel %vm1097_vm9, 1.0, %v6549_v6  ;;  %v3681_v63 = vsel %vm1194_vm10, 1.0, %v6549_v6  ;;  %vm5606_vm14 = vcmp.le.s32.totalorder %v862_v62, 14  ;;  %v4230_v38 = vld [vmem:[%s6489_s2 + $0xa8] sm:$0xff] }
 0x431   :  { %3937 = vmatmul.msk.bf16.vlgmr.msrb.gmra.mxu0 %vm464_vm0, %v3888_v51  ;;  %v4392_v51 = vunpack.i.h.bf16 %v4390_v5  ;;  %v4391_v41 = vunpack.i.l.bf16 %v4390_v5  ;;  %v3658_v45 = vsel %vm1083_vm11, 1.0, %v6549_v6  ;;  %v3674_v13 = vsel %vm1180_vm12, 1.0, %v6549_v6  ;;  %2203 = vmatpush.bf16.msra.mxu1 %v4230_v38 }
 0x432   :  { %vm5602_vm13 = vcmp.ge.s32.totalorder %v855_v49, 1  ;;  %vm5615_vm15 = vcmp.ge.s32.totalorder %v701_v10, 1  ;;  %vm5619_vm1 = vcmp.le.s32.totalorder %v708_v39, 14  ;;  %v694_v35 = vadd.s32 232, %v5317_v56  ;;  %2114 = vmatpush.bf16.msra.mxu3 %v4222_v27  ;;  %v4221_v39 = vld [vmem:[%s6489_s2 + $0x60] sm:$0xff] }
 0x433   :  { %v1670_v14 = vsel %vm464_vm0, %v5083_v16, %v4392_v51  ;;  %v1669_v40 = vsel %vm464_vm0, %v1412_v50, %v4391_v41  ;;  %v693_v41 = vadd.s32 224, %v5317_v56  ;;  %v1418_v49 = vmul.f32 %v3665_v12, %v5100_v2 }
 0x434   :  { %v1702_v34 = vpack.c.bf16 %v1542_v48, %v1670_v14  ;;  %v1701_v16 = vpack.c.bf16 %v5123_v37, %v1669_v40  ;;  %v673_v62 = vadd.s32 64, %v5317_v56  ;;  %v674_v10 = vadd.s32 72, %v5317_v56  ;;  %v4229_v37 = vld [vmem:[%s6489_s2 + $0xa0] sm:$0xff] }
 0x435   :  { %v1548_v50 = vmul.f32 %v3681_v63, %v5158_v29  ;;  %v3668_v2 = vsel %vm5602_vm13, 1.0, %v6549_v6  ;;  %v3684_v48 = vsel %vm5606_vm14, 1.0, %v6549_v6  ;;  %v1534_v5 = vmul.f32 %v3674_v13, %v5207_v52  ;;  %2204 = vmatpush.bf16.msra.mxu1 %v4229_v37 }
 0x436   :  { %1741 = vst.msk [vmem:[#allocation2 + $0x68] sm:$0xff] %vm5523_vm6, %v1702_v34  ;;  %v1404_v12 = vmul.f32 %v3658_v45, %v5184_v21  ;;  %v3657_v29 = vsel %vm5615_vm15, 1.0, %v6549_v6  ;;  %v3673_v63 = vsel %vm5619_vm1, 1.0, %v6549_v6  ;;  %v6580_v30 = vrot.slane %v4905_v19, 7  ;;  %2115 = vmatpush.bf16.msra.mxu3 %v4221_v39 }
 0x437   :  { %1740 = vst.msk [vmem:[#allocation2 + $0x60] sm:$0xff] %vm5523_vm6, %v1701_v16  ;;  %v897_v40 = vand.u32 15, %v693_v41  ;;  %v904_v27 = vand.u32 15, %v694_v35  ;;  %v757_v21 = vand.u32 15, %v673_v62  ;;  %v764_v45 = vand.u32 15, %v674_v10 }
 0x438   :  { %v1401_v3 = vsel %vm1305_vm4, 0.0, %v6580_v30  ;;  %v4405_v14 = vpop.permute.xlu2 %4404  ;;  %v671_v19 = vadd.s32 48, %v5317_v56  ;;  %v672_v16 = vadd.s32 56, %v5317_v56  ;;  %v1424_v37 = vmul.f32 %v3668_v2, %v5144_v59 }
 0x439   :  { %v4407_v38 = vunpack.i.h.bf16 %v4405_v14  ;;  %v4406_v34 = vunpack.i.l.bf16 %v4405_v14  ;;  %vm1109_vm4 = vcmp.ge.s32.totalorder %v897_v40, 1  ;;  %vm1206_vm2 = vcmp.le.s32.totalorder %v904_v27, 14 }
 0x43a   :  { %v1402_v30 = vmul.f32 %v3657_v29, %v1401_v3  ;;  %v3671_v59 = vsel %vm1109_vm4, 1.0, %v6549_v6  ;;  %vm5684_vm3 = vcmp.ge.s32.totalorder %v757_v21, 1  ;;  %vm5688_vm5 = vcmp.le.s32.totalorder %v764_v45, 14 }
 0x43b   :  { %v1675_v41 = vsel %vm464_vm0, %v1418_v49, %v4406_v34  ;;  %v680_v3 = vadd.s32 120, %v5317_v56  ;;  %v677_v27 = vadd.s32 96, %v5317_v56  ;;  %v3661_v21 = vsel %vm5684_vm3, 1.0, %v6549_v6 }
 0x43c   :  { %v1707_v39 = vpack.c.bf16 %v5153_v20, %v1675_v41  ;;  %v750_v20 = vand.u32 15, %v672_v16 }
 0x43d   :  { %v4370_v51 = vpop.permute.xlu1 %4369 }
 0x43e   :  { %v4372_v52 = vunpack.i.h.bf16 %v4370_v51  ;;  %v4371_v13 = vunpack.i.l.bf16 %v4370_v51  ;;  %v1676_v51 = vsel %vm464_vm0, %v5135_v53, %v4407_v38  ;;  %v4365_v53 = vpop.permute.xlu0 %4364  ;;  %1746 = vst.msk [vmem:[#allocation2 + $0x90] sm:$0xff] %vm5523_vm6, %v1707_v39  ;;  %vm1184_vm8 = vcmp.le.s32.totalorder %v750_v20, 14  ;;  %v6587_v39 = vld [vmem:[#allocation7_spill] sm:$0xff] }
 0x43f   :  { %v1708_v10 = vpack.c.bf16 %v1548_v50, %v1676_v51  ;;  %v4366_v49 = vunpack.i.l.bf16 %v4365_v53  ;;  %v743_v50 = vand.u32 15, %v671_v19  ;;  %v678_v38 = vadd.s32 104, %v5317_v56 }
 0x440   :  { %v1661_v58 = vsel %vm464_vm0, %v1404_v12, %v4371_v13  ;;  %v1662_v11 = vsel %vm464_vm0, %v5212_v33, %v4372_v52  ;;  %v1554_v33 = vmul.f32 %v3684_v48, %v5197_v18  ;;  %v1532_v12 = vmul.f32 %v3673_v63, %v5237_v42  ;;  %v4420_v48 = vpop.permute.xlu2 %4419 }
 0x441   :  { %v1693_v35 = vpack.c.bf16 %v5215_v47, %v1661_v58  ;;  %v1694_v62 = vpack.c.bf16 %v1534_v5, %v1662_v11  ;;  %1747 = vst.msk [vmem:[#allocation2 + $0x98] sm:$0xff] %vm5523_vm6, %v1708_v10  ;;  %v4367_v47 = vunpack.i.h.bf16 %v4365_v53  ;;  %v3687_v18 = vsel %vm1206_vm2, 1.0, %v6549_v6  ;;  %v6585_v58 = vld [vmem:[#allocation3_spill] sm:$0xff] }
 0x442   :  { %v1659_v5 = vsel %vm464_vm0, %v1402_v30, %v4366_v49  ;;  %v679_v63 = vadd.s32 112, %v5317_v56  ;;  %v4422_v14 = vunpack.i.h.bf16 %v4420_v48  ;;  %v4421_v52 = vunpack.i.l.bf16 %v4420_v48 }
 0x443   :  { %1732 = vst.msk [vmem:[#allocation2 + $0x20] sm:$0xff] %vm5523_vm6, %v1693_v35  ;;  %v1660_v29 = vsel %vm464_vm0, %v5230_v24, %v4367_v47  ;;  %v1691_v13 = vpack.c.bf16 %v5245_v1, %v1659_v5  ;;  %vm1087_vm7 = vcmp.ge.s32.totalorder %v743_v50, 1  ;;  %v3677_v1 = vsel %vm5688_vm5, 1.0, %v6549_v6  ;;  %v6589_v47 = vld [vmem:[#allocation11_spill] sm:$0xff] }
 0x444   :  { %1733 = vst.msk [vmem:[#allocation2 + $0x28] sm:$0xff] %vm5523_vm6, %v1694_v62  ;;  %v1692_v40 = vpack.c.bf16 %v1532_v12, %v1660_v29  ;;  %v1682_v34 = vsel %vm464_vm0, %v5174_v60, %v4422_v14  ;;  %v1681_v24 = vsel %vm464_vm0, %v1424_v37, %v4421_v52  ;;  %v799_v60 = vand.u32 15, %v679_v63  ;;  %v6586_v62 = vld [vmem:[#allocation6_spill] sm:$0xff]  ;;  %v6590_v50 = vld [vmem:[#allocation15_spill] sm:$0xff] }
 0x445   :  { %1730 = vst.msk [vmem:[#allocation2 + $0x10] sm:$0xff] %vm5523_vm6, %v1691_v13  ;;  %v1714_v45 = vpack.c.bf16 %v1554_v33, %v1682_v34  ;;  %v1713_v11 = vpack.c.bf16 %v6585_v58, %v1681_v24  ;;  %v806_v56 = vand.u32 15, %v680_v3  ;;  %v3660_v19 = vsel %vm1087_vm7, 1.0, %v6549_v6  ;;  %v6588_v33 = vld [vmem:[#allocation10_spill] sm:$0xff]  ;;  %v4385_v30 = vpop.permute.xlu1 %4384  ;;  %v6600_v34 = vld [vmem:[#allocation8_spill] sm:$0xff] }
 0x446   :  { %1731 = vst.msk [vmem:[#allocation2 + $0x18] sm:$0xff] %vm5523_vm6, %v1692_v40  ;;  %v3676_v16 = vsel %vm1184_vm8, 1.0, %v6549_v6  ;;  %v785_v51 = vand.u32 15, %v677_v27  ;;  %v792_v41 = vand.u32 15, %v678_v38  ;;  %v1430_v35 = vmul.f32 %v3671_v59, %v5251_v17  ;;  %v4380_v5 = vpop.permute.xlu0 %4379  ;;  %v6599_v40 = vld [vmem:[#allocation4_spill] sm:$0xff] }
 0x447   :  { %1753 = vst.msk [vmem:[#allocation2 + $0xc8] sm:$0xff] %vm5523_vm6, %v1714_v45  ;;  %v1560_v10 = vmul.f32 %v3687_v18, %v6586_v62  ;;  %v1410_v37 = vmul.f32 %v3661_v21, %v6587_v39  ;;  %v1540_v12 = vmul.f32 %v3677_v1, %v6588_v33  ;;  %v1408_v49 = vmul.f32 %v3660_v19, %v6589_v47  ;;  %v6602_v19 = vld [vmem:[#allocation9_spill] sm:$0xff] }
 0x448   :  { %1752 = vst.msk [vmem:[#allocation2 + $0xc0] sm:$0xff] %vm5523_vm6, %v1713_v11  ;;  %v4435_v53 = vpop.permute.xlu2 %4434  ;;  %v1538_v20 = vmul.f32 %v3676_v16, %v6590_v50  ;;  %vm5728_vm9 = vcmp.ge.s32.totalorder %v799_v60, 1  ;;  %vm5732_vm10 = vcmp.le.s32.totalorder %v806_v56, 14  ;;  %v4387_v18 = vunpack.i.h.bf16 %v4385_v30  ;;  %v6601_v11 = vld [vmem:[#allocation5_spill] sm:$0xff] }
 0x449   :  { %v4437_v17 = vunpack.i.h.bf16 %v4435_v53  ;;  %v4436_v59 = vunpack.i.l.bf16 %v4435_v53  ;;  %v4386_v48 = vunpack.i.l.bf16 %v4385_v30  ;;  %v4382_v29 = vunpack.i.h.bf16 %v4380_v5  ;;  %v6605_v50 = vld [vmem:[#allocation13_spill] sm:$0xff] }
 0x44a   :  { %v4381_v63 = vunpack.i.l.bf16 %v4380_v5  ;;  %vm5736_vm11 = vcmp.ge.s32.totalorder %v785_v51, 1  ;;  %vm5740_vm12 = vcmp.le.s32.totalorder %v792_v41, 14  ;;  %v1668_v24 = vsel %vm464_vm0, %v6600_v34, %v4387_v18  ;;  %v6603_v51 = vld [vmem:[#allocation12_spill] sm:$0xff] }
 0x44b   :  { %v1688_v27 = vsel %vm464_vm0, %v6599_v40, %v4437_v17  ;;  %v1687_v38 = vsel %vm464_vm0, %v1430_v35, %v4436_v59  ;;  %v1667_v21 = vsel %vm464_vm0, %v1410_v37, %v4386_v48  ;;  %v1700_v56 = vpack.c.bf16 %v1540_v12, %v1668_v24  ;;  %v6604_v37 = vld [vmem:[#allocation14_spill] sm:$0xff]  ;;  %v6607_v48 = vld [vmem:[#allocation19_spill] sm:$0xff]  ;;  %v6609_v40 = vld [vmem:[#allocation17_spill] sm:$0xff] }
 0x44c   :  { %v3691_v52 = vld [vmem:[#allocation2 + $0x10] sm:$0xf]  ;;  %v4177_v13 = vld [vmem:[#allocation2 + $0x14] sm:$0xf]  ;;  %v1720_v58 = vpack.c.bf16 %v1560_v10, %v1688_v27  ;;  %v1719_v60 = vpack.c.bf16 %v6601_v11, %v1687_v38  ;;  %v1699_v16 = vpack.c.bf16 %v6602_v19, %v1667_v21  ;;  %v1666_v41 = vsel %vm464_vm0, %v6603_v51, %v4382_v29  ;;  %v6606_v59 = vld [vmem:[#allocation18_spill] sm:$0xff] }
 0x44d   :  { %v4178_v1 = vld [vmem:[#allocation2 + $0x14] sm:$0xf0]  ;;  %v3693_v45 = vld [vmem:[#allocation2 + $0x18] sm:$0xf0]  ;;  %v1665_v62 = vsel %vm464_vm0, %v1408_v49, %v4381_v63  ;;  %v1698_v33 = vpack.c.bf16 %v1538_v20, %v1666_v41  ;;  %v3664_v10 = vsel %vm5728_vm9, 1.0, %v6549_v6  ;;  %v3680_v12 = vsel %vm5732_vm10, 1.0, %v6549_v6  ;;  %v4400_v47 = vpop.permute.xlu1 %4399 }
 0x44e   :  { %v3692_v39 = vor.u32 %v4178_v1, %v3691_v52  ;;  %v3696_v35 = vor.u32 %v4177_v13, %v3693_v45  ;;  %1759 = vst.msk [vmem:[#allocation2 + $0xf8] sm:$0xff] %vm5523_vm6, %v1720_v58  ;;  %v1697_v53 = vpack.c.bf16 %v6604_v37, %v1665_v62  ;;  %v3663_v30 = vsel %vm5736_vm11, 1.0, %v6549_v6  ;;  %v4395_v17 = vpop.permute.xlu0 %4394  ;;  %v6608_v63 = vld [vmem:[#allocation16_spill] sm:$0xff] }
 0x44f   :  { %1758 = vst.msk [vmem:[#allocation2 + $0xf0] sm:$0xff] %vm5523_vm6, %v1719_v60  ;;  %v3679_v49 = vsel %vm5740_vm12, 1.0, %v6549_v6  ;;  %v1416_v20 = vmul.f32 %v3664_v10, %v6605_v50  ;;  %v4402_v2 = vunpack.i.h.bf16 %v4400_v47  ;;  %v4401_v42 = vunpack.i.l.bf16 %v4400_v47  ;;  %v6610_v38 = vld [vmem:[#allocation20_spill] sm:$0xff]  ;;  %v3699_v60 = vld [vmem:[#allocation2 + $0x20] sm:$0xf] }
 0x450   :  { %2116 = vmatmul.bf16.vlgmr.msra.gmra.mxu3 %v3692_v39  ;;  %3865 = vmatmul.msk.bf16.vlgmr.msra.gmra.mxu1 %vm464_vm0, %v3696_v35  ;;  %1739 = vst.msk [vmem:[#allocation2 + $0x58] sm:$0xff] %vm5523_vm6, %v1700_v56  ;;  %v1546_v18 = vmul.f32 %v3680_v12, %v6606_v59  ;;  %v1414_v5 = vmul.f32 %v3663_v30, %v6607_v48  ;;  %v4397_v29 = vunpack.i.h.bf16 %v4395_v17  ;;  %v4396_v6 = vunpack.i.l.bf16 %v4395_v17  ;;  %v3701_v51 = vld [vmem:[#allocation2 + $0x28] sm:$0xf0]  ;;  %v3709_v59 = vld [vmem:[#allocation2 + $0x38] sm:$0xf0] }
 0x451   :  { %2383 = vmatmul.bf16.gmra.mxu2 %v3692_v39  ;;  %3938 = vmatmul.msk.bf16.gmra.mxu0 %vm464_vm0, %v3696_v35  ;;  %1738 = vst.msk [vmem:[#allocation2 + $0x50] sm:$0xff] %vm5523_vm6, %v1699_v16  ;;  %v1674_v3 = vsel %vm464_vm0, %v6608_v63, %v4402_v2  ;;  %v1673_v14 = vsel %vm464_vm0, %v1416_v20, %v4401_v42  ;;  %v4179_v16 = vld [vmem:[#allocation2 + $0x24] sm:$0xf] }
 0x452   :  { %1737 = vst.msk [vmem:[#allocation2 + $0x48] sm:$0xff] %vm5523_vm6, %v1698_v33  ;;  %v1544_v52 = vmul.f32 %v3679_v49, %v5378_v36  ;;  %v1706_v13 = vpack.c.bf16 %v1546_v18, %v1674_v3  ;;  %v1705_v27 = vpack.c.bf16 %v6609_v40, %v1673_v14  ;;  %v1672_v34 = vsel %vm464_vm0, %v6610_v38, %v4397_v29  ;;  %v6611_v49 = vld [vmem:[#allocation21_spill] sm:$0xff] }
 0x453   :  { %1736 = vst.msk [vmem:[#allocation2 + $0x40] sm:$0xff] %vm5523_vm6, %v1697_v53  ;;  %v1671_v24 = vsel %vm464_vm0, %v1414_v5, %v4396_v6  ;;  %v3704_v30 = vor.u32 %v4179_v16, %v3701_v51  ;;  %v6612_v5 = vld [vmem:[#allocation22_spill] sm:$0xff] }
 0x454   :  { %v1704_v21 = vpack.c.bf16 %v1544_v52, %v1672_v34  ;;  %v1703_v1 = vpack.c.bf16 %v5375_v15, %v1671_v24  ;;  %1745 = vst.msk [vmem:[#allocation2 + $0x88] sm:$0xff] %vm5523_vm6, %v1706_v13  ;;  %v4180_v15 = vld [vmem:[#allocation2 + $0x24] sm:$0xf0]  ;;  %v3731_v24 = vld [vmem:[#allocation2 + $0x60] sm:$0xf] }
 0x455   :  { %1744 = vst.msk [vmem:[#allocation2 + $0x80] sm:$0xff] %vm5523_vm6, %v1705_v27  ;;  %v4415_v36 = vpop.permute.xlu1 %4414  ;;  %v3700_v12 = vor.u32 %v4180_v15, %v3699_v60 }
 0x456   :  { %1743 = vst.msk [vmem:[#allocation2 + $0x78] sm:$0xff] %vm5523_vm6, %v1704_v21  ;;  %v4417_v45 = vunpack.i.h.bf16 %v4415_v36  ;;  %v4416_v58 = vunpack.i.l.bf16 %v4415_v36  ;;  %v4410_v11 = vpop.permute.xlu0 %4409  ;;  %v4188_v21 = vld [vmem:[#allocation2 + $0x64] sm:$0xf0]  ;;  %v3733_v36 = vld [vmem:[#allocation2 + $0x68] sm:$0xf0] }
 0x457   :  { %1742 = vst.msk [vmem:[#allocation2 + $0x70] sm:$0xff] %vm5523_vm6, %v1703_v1  ;;  %v4412_v56 = vunpack.i.h.bf16 %v4410_v11  ;;  %v4411_v19 = vunpack.i.l.bf16 %v4410_v11  ;;  %v4186_v40 = vld [vmem:[#allocation2 + $0x54] sm:$0xf0]  ;;  %v3725_v26 = vld [vmem:[#allocation2 + $0x58] sm:$0xf0] }
 0x458   :  { %v1680_v41 = vsel %vm464_vm0, %v5369_v0, %v4417_v45  ;;  %v1679_v62 = vsel %vm464_vm0, %v5400_v57, %v4416_v58  ;;  %v3723_v13 = vld [vmem:[#allocation2 + $0x50] sm:$0xf]  ;;  %v4185_v27 = vld [vmem:[#allocation2 + $0x54] sm:$0xf]  ;;  %v4187_v1 = vld [vmem:[#allocation2 + $0x64] sm:$0xf]  ;;  %v3732_v45 = vor.u32 %v4188_v21, %v3731_v24 }
 0x459   :  { %v1712_v39 = vpack.c.bf16 %v5402_v46, %v1680_v41  ;;  %v1711_v35 = vpack.c.bf16 %v5395_v43, %v1679_v62  ;;  %v1678_v33 = vsel %vm464_vm0, %v5389_v9, %v4412_v56  ;;  %v1677_v37 = vsel %vm464_vm0, %v5422_v44, %v4411_v19 }
 0x45a   :  { %v1710_v53 = vpack.c.bf16 %v5424_v32, %v1678_v33  ;;  %v1709_v10 = vpack.c.bf16 %v5407_v8, %v1677_v37  ;;  %v4183_v3 = vld [vmem:[#allocation2 + $0x44] sm:$0xf]  ;;  %v3724_v38 = vor.u32 %v4186_v40, %v3723_v13  ;;  %v3728_v34 = vor.u32 %v4185_v27, %v3725_v26 }
 0x45b   :  { %1751 = vst.msk [vmem:[#allocation2 + $0xb8] sm:$0xff] %vm5523_vm6, %v1712_v39  ;;  %v3736_v58 = vor.u32 %v4187_v1, %v3733_v36  ;;  %v4192_v41 = vld [vmem:[#allocation2 + $0x84] sm:$0xf0]  ;;  %v3749_v39 = vld [vmem:[#allocation2 + $0x88] sm:$0xf0] }
 0x45c   :  { %1750 = vst.msk [vmem:[#allocation2 + $0xb0] sm:$0xff] %vm5523_vm6, %v1711_v35  ;;  %v3747_v51 = vld [vmem:[#allocation2 + $0x80] sm:$0xf]  ;;  %v4191_v62 = vld [vmem:[#allocation2 + $0x84] sm:$0xf] }
 0x45d   :  { %1749 = vst.msk [vmem:[#allocation2 + $0xa8] sm:$0xff] %vm5523_vm6, %v1710_v53  ;;  %v4430_v43 = vpop.permute.xlu1 %4429  ;;  %v4190_v60 = vld [vmem:[#allocation2 + $0x74] sm:$0xf0]  ;;  %v3741_v19 = vld [vmem:[#allocation2 + $0x78] sm:$0xf0]  ;;  %v3748_v35 = vor.u32 %v4192_v41, %v3747_v51  ;;  %v3752_v33 = vor.u32 %v4191_v62, %v3749_v39 }
 0x45e   :  { %1748 = vst.msk [vmem:[#allocation2 + $0xa0] sm:$0xff] %vm5523_vm6, %v1709_v10  ;;  %v4432_v0 = vunpack.i.h.bf16 %v4430_v43  ;;  %v4431_v9 = vunpack.i.l.bf16 %v4430_v43  ;;  %v4425_v57 = vpop.permute.xlu0 %4424  ;;  %v3739_v11 = vld [vmem:[#allocation2 + $0x70] sm:$0xf]  ;;  %v4189_v56 = vld [vmem:[#allocation2 + $0x74] sm:$0xf] }
 0x45f   :  { %v4427_v46 = vunpack.i.h.bf16 %v4425_v57  ;;  %v4426_v8 = vunpack.i.l.bf16 %v4425_v57  ;;  %v3740_v15 = vor.u32 %v4190_v60, %v3739_v11  ;;  %v3744_v16 = vor.u32 %v4189_v56, %v3741_v19  ;;  %v3755_v10 = vld [vmem:[#allocation2 + $0x90] sm:$0xf]  ;;  %v3757_v43 = vld [vmem:[#allocation2 + $0x98] sm:$0xf0]  ;;  %v3779_v56 = vld [vmem:[#allocation2 + $0xc0] sm:$0xf] }
 0x460   :  { %2121 = vmatmul.bf16.gmra.mxu3 %v3700_v12  ;;  %3866 = vmatmul.msk.bf16.gmra.mxu1 %vm464_vm0, %v3704_v30  ;;  %v1686_v44 = vsel %vm464_vm0, %v5418_v23, %v4432_v0  ;;  %v1685_v32 = vsel %vm464_vm0, %v5444_v4, %v4431_v9  ;;  %v3707_v4 = vld [vmem:[#allocation2 + $0x30] sm:$0xf]  ;;  %v3781_v51 = vld [vmem:[#allocation2 + $0xc8] sm:$0xf0] }
 0x461   :  { %2388 = vmatmul.bf16.gmra.mxu2 %v3700_v12  ;;  %3939 = vmatmul.msk.bf16.gmra.mxu0 %vm464_vm0, %v3704_v30  ;;  %v1718_v47 = vpack.c.bf16 %v5446_v7, %v1686_v44  ;;  %v1717_v50 = vpack.c.bf16 %v6611_v49, %v1685_v32  ;;  %v1684_v20 = vsel %vm464_vm0, %v5453_v31, %v4427_v46  ;;  %v4194_v12 = vld [vmem:[#allocation2 + $0x94] sm:$0xf0]  ;;  %v4193_v30 = vld [vmem:[#allocation2 + $0x94] sm:$0xf] }
 0x462   :  { %v1683_v2 = vsel %vm464_vm0, %v5480_v55, %v4426_v8  ;;  %v1716_v42 = vpack.c.bf16 %v5482_v28, %v1684_v20  ;;  %v4182_v55 = vld [vmem:[#allocation2 + $0x34] sm:$0xf0]  ;;  %v4181_v28 = vld [vmem:[#allocation2 + $0x34] sm:$0xf]  ;;  %v3756_v9 = vor.u32 %v4194_v12, %v3755_v10  ;;  %v3760_v57 = vor.u32 %v4193_v30, %v3757_v43 }
 0x463   :  { %v1715_v17 = vpack.c.bf16 %v5475_v22, %v1683_v2  ;;  %1757 = vst.msk [vmem:[#allocation2 + $0xe8] sm:$0xff] %vm5523_vm6, %v1718_v47  ;;  %v3708_v6 = vor.u32 %v4182_v55, %v3707_v4  ;;  %v3712_v63 = vor.u32 %v4181_v28, %v3709_v59  ;;  %v4271_v11 = vld [vmem:[%s6489_s2 + $0xf0] sm:$0xff] }
 0x464   :  { %1756 = vst.msk [vmem:[#allocation2 + $0xe0] sm:$0xff] %vm5523_vm6, %v1717_v50  ;;  %v4272_v50 = vld [vmem:[%s6489_s2 + $0xf8] sm:$0xff]  ;;  %v3765_v4 = vld [vmem:[#allocation2 + $0xa8] sm:$0xf0] }
 0x465   :  { %1755 = vst.msk [vmem:[#allocation2 + $0xd8] sm:$0xff] %vm5523_vm6, %v1716_v42  ;;  %2868 = vmatpush.bf16.msrb.mxu3 %v4272_v50  ;;  %v3763_v2 = vld [vmem:[#allocation2 + $0xa0] sm:$0xf] }
 0x466   :  { %1754 = vst.msk [vmem:[#allocation2 + $0xd0] sm:$0xff] %vm5523_vm6, %v1715_v17  ;;  %v4440_v23 = vpop.permute.xlu0 %4439  ;;  %v4196_v17 = vld [vmem:[#allocation2 + $0xa4] sm:$0xf0] }
 0x467   :  { %v4442_v7 = vunpack.i.h.bf16 %v4440_v23  ;;  %v4441_v31 = vunpack.i.l.bf16 %v4440_v23  ;;  %v4195_v23 = vld [vmem:[#allocation2 + $0xa4] sm:$0xf]  ;;  %v3764_v59 = vor.u32 %v4196_v17, %v3763_v2 }
 0x469   :  { %v1690_v22 = vsel %vm464_vm0, %v5468_v61, %v4442_v7  ;;  %v1689_v18 = vsel %vm464_vm0, %v5498_v54, %v4441_v31  ;;  %v4184_v61 = vld [vmem:[#allocation2 + $0x44] sm:$0xf0]  ;;  %v3715_v54 = vld [vmem:[#allocation2 + $0x40] sm:$0xf]  ;;  %2869 = vmatpush.bf16.msrb.mxu3 %v4271_v11 }
 0x46a   :  { %v1722_v48 = vpack.c.bf16 %v5500_v25, %v1690_v22  ;;  %v1721_v29 = vpack.c.bf16 %v6612_v5, %v1689_v18  ;;  %v3717_v25 = vld [vmem:[#allocation2 + $0x48] sm:$0xf0]  ;;  %v3716_v14 = vor.u32 %v4184_v61, %v3715_v54  ;;  %v3768_v22 = vor.u32 %v4195_v23, %v3765_v4  ;;  %v4276_v18 = vld [vmem:[%s6489_s2 + $0x118] sm:$0xff]  ;;  %v3771_v54 = vld [vmem:[#allocation2 + $0xb0] sm:$0xf] }
 0x46b   :  { %v3720_v52 = vor.u32 %v4183_v3, %v3717_v25  ;;  %2961 = vmatpush.bf16.msrb.mxu1 %v4276_v18  ;;  %v4198_v25 = vld [vmem:[#allocation2 + $0xb4] sm:$0xf0]  ;;  %v4270_v18 = vld [vmem:[%s6489_s2 + $0xe8] sm:$0xff] }
 0x46c   :  { %1761 = vst.msk [vmem:[#allocation2 + $0x108] sm:$0xff] %vm5523_vm6, %v1722_v48  ;;  %v3789_v50 = vld [vmem:[#allocation2 + $0xd8] sm:$0xf0] }
 0x46d   :  { %1760 = vst.msk [vmem:[#allocation2 + $0x100] sm:$0xff] %vm5523_vm6, %v1721_v29  ;;  %2870 = vmatpush.bf16.msrb.mxu3 %v4270_v18 }
 0x470   :  { %2126 = vmatmul.bf16.gmra.mxu3 %v3708_v6  ;;  %3867 = vmatmul.msk.bf16.gmra.mxu1 %vm464_vm0, %v3712_v63 }
 0x471   :  { %2393 = vmatmul.bf16.gmra.mxu2 %v3708_v6  ;;  %3940 = vmatmul.msk.bf16.gmra.mxu0 %vm464_vm0, %v3712_v63 }
 0x480   :  { %2131 = vmatmul.bf16.gmra.mxu3 %v3716_v14  ;;  %3868 = vmatmul.msk.bf16.gmra.mxu1 %vm464_vm0, %v3720_v52 }
 0x481   :  { %2398 = vmatmul.bf16.gmra.mxu2 %v3716_v14  ;;  %3941 = vmatmul.msk.bf16.gmra.mxu0 %vm464_vm0, %v3720_v52  ;;  %v4197_v14 = vld [vmem:[#allocation2 + $0xb4] sm:$0xf]  ;;  %v3773_v52 = vld [vmem:[#allocation2 + $0xb8] sm:$0xf0] }
 0x482   :  { %v3776_v24 = vor.u32 %v4197_v14, %v3773_v52 }
 0x490   :  { %2136 = vmatmul.bf16.gmra.mxu3 %v3724_v38  ;;  %3869 = vmatmul.msk.bf16.gmra.mxu1 %vm464_vm0, %v3728_v34 }
 0x491   :  { %2403 = vmatmul.bf16.gmra.mxu2 %v3724_v38  ;;  %3942 = vmatmul.msk.bf16.gmra.mxu0 %vm464_vm0, %v3728_v34  ;;  %v3772_v34 = vor.u32 %v4198_v25, %v3771_v54 }
 0x4a0   :  { %2141 = vmatmul.bf16.gmra.mxu3 %v3732_v45  ;;  %3870 = vmatmul.msk.bf16.gmra.mxu1 %vm464_vm0, %v3736_v58 }
 0x4a1   :  { %2408 = vmatmul.bf16.gmra.mxu2 %v3732_v45  ;;  %3943 = vmatmul.msk.bf16.gmra.mxu0 %vm464_vm0, %v3736_v58 }
 0x4ae   :  { %v5866_v46 = vpop.f32.mrf.mxu0 }
 0x4b0   :  { %2146 = vmatmul.bf16.gmra.mxu3 %v3740_v15  ;;  %3871 = vmatmul.msk.bf16.gmra.mxu1 %vm464_vm0, %v3744_v16 }
 0x4b1   :  { %2413 = vmatmul.bf16.gmra.mxu2 %v3740_v15  ;;  %3944 = vmatmul.msk.bf16.gmra.mxu0 %vm464_vm0, %v3744_v16  ;;  %v4200_v15 = vld [vmem:[#allocation2 + $0xc4] sm:$0xf0]  ;;  %v4199_v16 = vld [vmem:[#allocation2 + $0xc4] sm:$0xf] }
 0x4b3   :  { %v2379_v37 = vpop.f32.mrf.mxu2 }
 0x4b6   :  { %v5875_v20 = vpop.f32.mrf.mxu0 }
 0x4bb   :  { %v2381_v53 = vpop.f32.mrf.mxu2 }
 0x4c0   :  { %2151 = vmatmul.bf16.gmra.mxu3 %v3748_v35  ;;  %3872 = vmatmul.msk.bf16.gmra.mxu1 %vm464_vm0, %v3752_v33 }
 0x4c1   :  { %2418 = vmatmul.bf16.gmra.mxu2 %v3748_v35  ;;  %3945 = vmatmul.msk.bf16.gmra.mxu0 %vm464_vm0, %v3752_v33  ;;  %v3780_v33 = vor.u32 %v4200_v15, %v3779_v56  ;;  %v3803_v56 = vld [vmem:[#allocation2 + $0xf0] sm:$0xf] }
 0x4cd   :  { %v2206_v0 = vpop.f32.mrf.mxu1 }
 0x4ce   :  { %v5882_v48 = vpop.f32.mrf.mxu0 }
 0x4d0   :  { %2156 = vmatmul.bf16.gmra.mxu3 %v3756_v9  ;;  %3873 = vmatmul.msk.bf16.gmra.mxu1 %vm464_vm0, %v3760_v57 }
 0x4d1   :  { %2423 = vmatmul.bf16.gmra.mxu2 %v3756_v9  ;;  %3946 = vmatmul.msk.bf16.gmra.mxu0 %vm464_vm0, %v3760_v57  ;;  %v3787_v57 = vld [vmem:[#allocation2 + $0xd0] sm:$0xf] }
 0x4d3   :  { %v2117_v8 = vpop.f32.mrf.mxu3 }
 0x4d4   :  { %v2207_v44 = vadd.f32 %v2206_v0, %v2117_v8  ;;  %v2384_v32 = vpop.f32.mrf.mxu2 }
 0x4d5   :  { %v2208_v47 = vpop.f32.mrf.mxu1 }
 0x4d6   :  { %v5870_v49 = vadd.f32 %v2379_v37, %v2207_v44  ;;  %v5884_v27 = vpop.f32.mrf.mxu0  ;;  %v3784_v37 = vor.u32 %v4199_v16, %v3781_v51  ;;  %v4206_v16 = vld [vmem:[#allocation2 + $0xf4] sm:$0xf0]  ;;  %v4205_v51 = vld [vmem:[#allocation2 + $0xf4] sm:$0xf] }
 0x4db   :  { %v2119_v42 = vpop.f32.mrf.mxu3 }
 0x4dc   :  { %v2209_v7 = vadd.f32 %v2208_v47, %v2119_v42  ;;  %v2386_v31 = vpop.f32.mrf.mxu2  ;;  %v4201_v47 = vld [vmem:[#allocation2 + $0xd4] sm:$0xf] }
 0x4dd   :  { %v2211_v55 = vpop.f32.mrf.mxu1 }
 0x4de   :  { %v2382_v28 = vadd.f32 %v2381_v53, %v2209_v7  ;;  %v5893_v60 = vpop.f32.mrf.mxu0  ;;  %v3792_v7 = vor.u32 %v4201_v47, %v3789_v50 }
 0x4e0   :  { %2161 = vmatmul.bf16.gmra.mxu3 %v3764_v59  ;;  %3874 = vmatmul.msk.bf16.gmra.mxu1 %vm464_vm0, %v3768_v22  ;;  %v5906_v9 = vadd.f32 %v5875_v20, %v2382_v28 }
 0x4e1   :  { %2428 = vmatmul.bf16.gmra.mxu2 %v3764_v59  ;;  %3947 = vmatmul.msk.bf16.gmra.mxu0 %vm464_vm0, %v3768_v22 }
 0x4e3   :  { %v2122_v5 = vpop.f32.mrf.mxu3 }
 0x4e4   :  { %v2212_v29 = vadd.f32 %v2211_v55, %v2122_v5  ;;  %v2389_v6 = vpop.f32.mrf.mxu2 }
 0x4e5   :  { %v2213_v63 = vpop.f32.mrf.mxu1 }
 0x4e6   :  { %v2385_v61 = vadd.f32 %v2384_v32, %v2212_v29  ;;  %v5898_v53 = vpop.f32.mrf.mxu0  ;;  %v4202_v32 = vld [vmem:[#allocation2 + $0xd4] sm:$0xf0] }
 0x4e7   :  { %v3788_v4 = vor.u32 %v4202_v32, %v3787_v57 }
 0x4e8   :  { %v5916_v20 = vadd.f32 %v5882_v48, %v2385_v61  ;;  %v3795_v48 = vld [vmem:[#allocation2 + $0xe0] sm:$0xf]  ;;  %v3797_v61 = vld [vmem:[#allocation2 + $0xe8] sm:$0xf0] }
 0x4eb   :  { %v2124_v3 = vpop.f32.mrf.mxu3 }
 0x4ec   :  { %v2214_v13 = vadd.f32 %v2213_v63, %v2124_v3  ;;  %v2391_v40 = vpop.f32.mrf.mxu2  ;;  %v4203_v63 = vld [vmem:[#allocation2 + $0xe4] sm:$0xf] }
 0x4ed   :  { %v2216_v26 = vpop.f32.mrf.mxu1  ;;  %v3800_v52 = vor.u32 %v4203_v63, %v3797_v61 }
 0x4ee   :  { %v2387_v38 = vadd.f32 %v2386_v31, %v2214_v13  ;;  %v5908_v8 = vpop.f32.mrf.mxu0  ;;  %v4269_v13 = vld [vmem:[%s6489_s2 + $0xe0] sm:$0xff] }
 0x4ef   :  { %2871 = vmatpush.bf16.msrb.mxu3 %v4269_v13  ;;  %v4234_v13 = vld [vmem:[#allocation2 + $0x24] sm:$0xf0] }
 0x4f0   :  { %2166 = vmatmul.bf16.gmra.mxu3 %v3772_v34  ;;  %3875 = vmatmul.msk.bf16.gmra.mxu1 %vm464_vm0, %v3776_v24  ;;  %v5927_v5 = vadd.f32 %v5884_v27, %v2387_v38  ;;  %v4268_v38 = vld [vmem:[%s6489_s2 + $0xd8] sm:$0xff] }
 0x4f1   :  { %2433 = vmatmul.bf16.gmra.mxu2 %v3772_v34  ;;  %3948 = vmatmul.msk.bf16.gmra.mxu0 %vm464_vm0, %v3776_v24 }
 0x4f3   :  { %v2127_v21 = vpop.f32.mrf.mxu3  ;;  %2872 = vmatpush.bf16.msrb.mxu3 %v4268_v38  ;;  %v3957_v38 = vld [vmem:[#allocation2 + $0x28] sm:$0xf0] }
 0x4f4   :  { %v2217_v1 = vadd.f32 %v2216_v26, %v2127_v21  ;;  %v2394_v36 = vpop.f32.mrf.mxu2 }
 0x4f5   :  { %v2218_v45 = vpop.f32.mrf.mxu1 }
 0x4f6   :  { %v5888_v58 = vadd.f32 %v2389_v6, %v2217_v1  ;;  %v5921_v59 = vpop.f32.mrf.mxu0  ;;  %v4204_v6 = vld [vmem:[#allocation2 + $0xe4] sm:$0xf0] }
 0x4f7   :  { %v3796_v14 = vor.u32 %v4204_v6, %v3795_v48 }
 0x4f8   :  { %v5942_v26 = vadd.f32 %v5893_v60, %v5888_v58  ;;  %v4274_v58 = vld [vmem:[%s6489_s2 + $0x108] sm:$0xff] }
 0x4fb   :  { %v2129_v19 = vpop.f32.mrf.mxu3 }
 0x4fc   :  { %v2219_v41 = vadd.f32 %v2218_v45, %v2129_v19  ;;  %v2396_v62 = vpop.f32.mrf.mxu2  ;;  %v4267_v45 = vld [vmem:[%s6489_s2 + $0xd0] sm:$0xff]  ;;  %v4266_v19 = vld [vmem:[%s6489_s2 + $0xc8] sm:$0xff] }
 0x4fd   :  { %v2221_v39 = vpop.f32.mrf.mxu1  ;;  %2873 = vmatpush.bf16.msrb.mxu3 %v4267_v45 }
 0x4fe   :  { %v5895_v35 = vadd.f32 %v2391_v40, %v2219_v41  ;;  %v4275_v40 = vld [vmem:[%s6489_s2 + $0x110] sm:$0xff]  ;;  %v2488_v27 = vpop.f32.mrf.mxu0  ;;  %v3805_v41 = vld [vmem:[#allocation2 + $0xf8] sm:$0xf0] }
 0x4ff   :  { %2962 = vmatpush.bf16.msrb.mxu1 %v4275_v40  ;;  %v4233_v40 = vld [vmem:[#allocation2 + $0x24] sm:$0xf] }
 0x500   :  { %2171 = vmatmul.bf16.gmra.mxu3 %v3780_v33  ;;  %3876 = vmatmul.msk.bf16.gmra.mxu1 %vm464_vm0, %v3784_v37  ;;  %v5960_v11 = vadd.f32 %v5898_v53, %v5895_v35  ;;  %v4265_v35 = vld [vmem:[%s6489_s2 + $0xc0] sm:$0xff] }
 0x501   :  { %2438 = vmatmul.bf16.gmra.mxu2 %v3780_v33  ;;  %3949 = vmatmul.msk.bf16.gmra.mxu0 %vm464_vm0, %v3784_v37  ;;  %v3804_v37 = vor.u32 %v4206_v16, %v3803_v56  ;;  %v4273_v53 = vld [vmem:[%s6489_s2 + $0x100] sm:$0xff] }
 0x502   :  { %2874 = vmatpush.bf16.msrb.mxu3 %v4266_v19 }
 0x503   :  { %v2132_v10 = vpop.f32.mrf.mxu3  ;;  %2963 = vmatpush.bf16.msrb.mxu1 %v4274_v58 }
 0x504   :  { %v2222_v12 = vadd.f32 %v2221_v39, %v2132_v10  ;;  %v5901_v30 = vpop.f32.mrf.mxu2  ;;  %v3808_v10 = vor.u32 %v4205_v51, %v3805_v41  ;;  %v3963_v41 = vld [vmem:[#allocation2 + $0x30] sm:$0xf] }
 0x505   :  { %v2223_v43 = vpop.f32.mrf.mxu1 }
 0x506   :  { %v5903_v0 = vadd.f32 %v2394_v36, %v2222_v12  ;;  %v2490_v60 = vpop.f32.mrf.mxu0  ;;  %2875 = vmatpush.bf16.msrb.mxu3 %v4265_v35  ;;  %v4235_v35 = vld [vmem:[#allocation2 + $0x34] sm:$0xf] }
 0x507   :  { %2964 = vmatpush.bf16.msrb.mxu1 %v4273_v53  ;;  %v3965_v53 = vld [vmem:[#allocation2 + $0x38] sm:$0xf0] }
 0x508   :  { %v5976_v12 = vadd.f32 %v5908_v8, %v5903_v0  ;;  %v4220_v0 = vld [vmem:[#allocation2 + $0x104] sm:$0xf0]  ;;  %v4219_v8 = vld [vmem:[#allocation2 + $0x104] sm:$0xf] }
 0x50b   :  { %v2134_v44 = vpop.f32.mrf.mxu3 }
 0x50c   :  { %v2224_v2 = vadd.f32 %v2223_v43, %v2134_v44  ;;  %v5910_v42 = vpop.f32.mrf.mxu2 }
 0x50d   :  { %v2226_v17 = vpop.f32.mrf.mxu1 }
 0x50e   :  { %v5912_v23 = vadd.f32 %v2396_v62, %v2224_v2  ;;  %v2493_v43 = vpop.f32.mrf.mxu0  ;;  %v3811_v2 = vld [vmem:[#allocation2 + $0x100] sm:$0xf] }
 0x50f   :  { %v3812_v48 = vor.u32 %v4220_v0, %v3811_v2  ;;  %v3968_v2 = vor.u32 %v4235_v35, %v3965_v53 }
 0x510   :  { %2176 = vmatmul.bf16.gmra.mxu3 %v3788_v4  ;;  %3877 = vmatmul.msk.bf16.gmra.mxu1 %vm464_vm0, %v3792_v7  ;;  %v5985_v50 = vadd.f32 %v5921_v59, %v5912_v23 }
 0x511   :  { %2443 = vmatmul.bf16.gmra.mxu2 %v3788_v4  ;;  %3950 = vmatmul.msk.bf16.gmra.mxu0 %vm464_vm0, %v3792_v7  ;;  %v3813_v4 = vld [vmem:[#allocation2 + $0x108] sm:$0xf0] }
 0x513   :  { %v2137_v31 = vpop.f32.mrf.mxu3 }
 0x514   :  { %v5919_v55 = vadd.f32 %v2226_v17, %v2137_v31  ;;  %v2404_v28 = vpop.f32.mrf.mxu2 }
 0x515   :  { %v2228_v22 = vpop.f32.mrf.mxu1 }
 0x516   :  { %v2400_v7 = vadd.f32 %v5901_v30, %v5919_v55 }
 0x518   :  { %v5994_v23 = vadd.f32 %v2488_v27, %v2400_v7  ;;  %v3971_v7 = vld [vmem:[#allocation2 + $0x40] sm:$0xf] }
 0x51b   :  { %v2139_v29 = vpop.f32.mrf.mxu3 }
 0x51c   :  { %v5929_v54 = vadd.f32 %v2228_v22, %v2139_v29  ;;  %v5931_v3 = vpop.f32.mrf.mxu2  ;;  %v2495_v22 = vpop.f32.mrf.mxu0  ;;  %v3816_v29 = vor.u32 %v4219_v8, %v3813_v4 }
 0x51d   :  { %v2231_v25 = vpop.f32.mrf.mxu1 }
 0x51e   :  { %v2402_v6 = vadd.f32 %v5910_v42, %v5929_v54 }
 0x520   :  { %2181 = vmatmul.bf16.gmra.mxu3 %v3796_v14  ;;  %3878 = vmatmul.msk.bf16.gmra.mxu1 %vm464_vm0, %v3800_v52 }
 0x521   :  { %2448 = vmatmul.bf16.gmra.mxu2 %v3796_v14  ;;  %3951 = vmatmul.msk.bf16.gmra.mxu0 %vm464_vm0, %v3800_v52  ;;  %v3955_v14 = vld [vmem:[#allocation2 + $0x20] sm:$0xf] }
 0x523   :  { %v2142_v34 = vpop.f32.mrf.mxu3 }
 0x524   :  { %v2232_v24 = vadd.f32 %v2231_v25, %v2142_v34  ;;  %v5948_v21 = vpop.f32.mrf.mxu2  ;;  %v6000_v61 = vpop.f32.mrf.mxu0  ;;  %v6002_v25 = vadd.f32 %v2490_v60, %v2402_v6 }
 0x525   :  { %v2233_v1 = vpop.f32.mrf.mxu1 }
 0x526   :  { %v5950_v36 = vadd.f32 %v2404_v28, %v2232_v24  ;;  %v3956_v24 = vor.u32 %v4234_v13, %v3955_v14 }
 0x528   :  { %v6008_v42 = vadd.f32 %v2493_v43, %v5950_v36 }
 0x52b   :  { %v2144_v15 = vpop.f32.mrf.mxu3 }
 0x52c   :  { %v2234_v62 = vadd.f32 %v2233_v1, %v2144_v15  ;;  %v5965_v39 = vpop.f32.mrf.mxu2  ;;  %v3960_v1 = vor.u32 %v4233_v40, %v3957_v38  ;;  %v6010_v54 = vpop.f32.mrf.mxu0 }
 0x52d   :  { %v2236_v33 = vpop.f32.mrf.mxu1 }
 0x52e   :  { %v2407_v60 = vadd.f32 %v5931_v3, %v2234_v62 }
 0x530   :  { %2186 = vmatmul.bf16.gmra.mxu3 %v3804_v37  ;;  %3879 = vmatmul.msk.bf16.gmra.mxu1 %vm464_vm0, %v3808_v10  ;;  %v6013_v16 = vadd.f32 %v2495_v22, %v2407_v60 }
 0x531   :  { %2453 = vmatmul.bf16.gmra.mxu2 %v3804_v37  ;;  %3952 = vmatmul.msk.bf16.gmra.mxu0 %vm464_vm0, %v3808_v10  ;;  %v4236_v10 = vld [vmem:[#allocation2 + $0x34] sm:$0xf0] }
 0x533   :  { %v2147_v57 = vpop.f32.mrf.mxu3 }
 0x534   :  { %v5979_v44 = vadd.f32 %v2236_v33, %v2147_v57  ;;  %v5981_v32 = vpop.f32.mrf.mxu2  ;;  %v6015_v33 = vpop.f32.mrf.mxu0 }
 0x535   :  { %v2238_v47 = vpop.f32.mrf.mxu1 }
 0x53b   :  { %v2149_v17 = vpop.f32.mrf.mxu3 }
 0x53c   :  { %v5989_v31 = vadd.f32 %v2238_v47, %v2149_v17  ;;  %v5991_v28 = vpop.f32.mrf.mxu2  ;;  %v3964_v47 = vor.u32 %v4236_v10, %v3963_v41  ;;  %v6018_v0 = vpop.f32.mrf.mxu0 }
 0x53d   :  { %v2241_v18 = vpop.f32.mrf.mxu1 }
 0x540   :  { %2191 = vmatmul.bf16.gmra.mxu3 %v3812_v48  ;;  %3880 = vmatmul.msk.bf16.gmra.mxu1 %vm464_vm0, %v3816_v29  ;;  %v4237_v48 = vld [vmem:[#allocation2 + $0x44] sm:$0xf]  ;;  %v3973_v29 = vld [vmem:[#allocation2 + $0x48] sm:$0xf0] }
 0x543   :  { %v2152_v59 = vpop.f32.mrf.mxu3 }
 0x544   :  { %v5998_v63 = vadd.f32 %v2241_v18, %v2152_v59  ;;  %v2419_v30 = vpop.f32.mrf.mxu2  ;;  %v4238_v18 = vld [vmem:[#allocation2 + $0x44] sm:$0xf0]  ;;  %v2508_v13 = vpop.f32.mrf.mxu0 }
 0x545   :  { %v2243_v55 = vpop.f32.mrf.mxu1  ;;  %v3972_v14 = vor.u32 %v4238_v18, %v3971_v7  ;;  %v3987_v7 = vld [vmem:[#allocation2 + $0x60] sm:$0xf] }
 0x54b   :  { %v2154_v52 = vpop.f32.mrf.mxu3 }
 0x54c   :  { %v6004_v34 = vadd.f32 %v2243_v55, %v2154_v52  ;;  %v2421_v45 = vpop.f32.mrf.mxu2  ;;  %v3976_v52 = vor.u32 %v4237_v48, %v3973_v29  ;;  %v4242_v48 = vld [vmem:[#allocation2 + $0x64] sm:$0xf0]  ;;  %v4241_v29 = vld [vmem:[#allocation2 + $0x64] sm:$0xf] }
 0x54d   :  { %v2246_v27 = vpop.f32.mrf.mxu1 }
 0x550   :  { %2876 = vmatmul.bf16.vlgmr.msrb.gmra.mxu3 %v3956_v24  ;;  %4129 = vmatmul.msk.bf16.vlgmr.msrb.gmra.mxu1 %vm464_vm0, %v3960_v1 }
 0x553   :  { %v2157_v58 = vpop.f32.mrf.mxu3 }
 0x554   :  { %v2247_v56 = vadd.f32 %v2246_v27, %v2157_v58  ;;  %v2424_v51 = vpop.f32.mrf.mxu2  ;;  %v3979_v58 = vld [vmem:[#allocation2 + $0x50] sm:$0xf] }
 0x555   :  { %v2248_v19 = vpop.f32.mrf.mxu1 }
 0x556   :  { %v2420_v15 = vadd.f32 %v2419_v30, %v2247_v56  ;;  %v4240_v56 = vld [vmem:[#allocation2 + $0x54] sm:$0xf0] }
 0x557   :  { %v3980_v35 = vor.u32 %v4240_v56, %v3979_v58  ;;  %v3995_v56 = vld [vmem:[#allocation2 + $0x70] sm:$0xf] }
 0x55b   :  { %v2159_v37 = vpop.f32.mrf.mxu3 }
 0x55c   :  { %v2249_v36 = vadd.f32 %v2248_v19, %v2159_v37  ;;  %v2426_v3 = vpop.f32.mrf.mxu2  ;;  %v4239_v19 = vld [vmem:[#allocation2 + $0x54] sm:$0xf] }
 0x55d   :  { %v2251_v43 = vpop.f32.mrf.mxu1 }
 0x55e   :  { %v2422_v57 = vadd.f32 %v2421_v45, %v2249_v36  ;;  %v2510_v45 = vpop.f32.mrf.mxu0  ;;  %v6022_v36 = vadd.f32 %v2508_v13, %v2420_v15  ;;  %v3988_v15 = vor.u32 %v4242_v48, %v3987_v7 }
 0x560   :  { %2881 = vmatmul.bf16.gmra.mxu3 %v3964_v47  ;;  %4130 = vmatmul.msk.bf16.gmra.mxu1 %vm464_vm0, %v3968_v2 }
 0x563   :  { %v2162_v62 = vpop.f32.mrf.mxu3 }
 0x564   :  { %v2252_v17 = vadd.f32 %v2251_v43, %v2162_v62  ;;  %v2429_v6 = vpop.f32.mrf.mxu2 }
 0x565   :  { %v2253_v8 = vpop.f32.mrf.mxu1 }
 0x566   :  { %v2425_v4 = vadd.f32 %v2424_v51, %v2252_v17  ;;  %v3981_v51 = vld [vmem:[#allocation2 + $0x58] sm:$0xf0]  ;;  %v2513_v47 = vpop.f32.mrf.mxu0 }
 0x567   :  { %v3984_v53 = vor.u32 %v4239_v19, %v3981_v51  ;;  %v4244_v51 = vld [vmem:[#allocation2 + $0x74] sm:$0xf0] }
 0x56b   :  { %v2164_v22 = vpop.f32.mrf.mxu3 }
 0x56c   :  { %v2254_v59 = vadd.f32 %v2253_v8, %v2164_v22  ;;  %v2431_v1 = vpop.f32.mrf.mxu2  ;;  %v6024_v8 = vadd.f32 %v2510_v45, %v2422_v57 }
 0x56d   :  { %v2256_v30 = vpop.f32.mrf.mxu1 }
 0x56e   :  { %v2427_v55 = vadd.f32 %v2426_v3, %v2254_v59  ;;  %v3989_v59 = vld [vmem:[#allocation2 + $0x68] sm:$0xf0] }
 0x56f   :  { %v3992_v13 = vor.u32 %v4241_v29, %v3989_v59  ;;  %v4246_v29 = vld [vmem:[#allocation2 + $0x84] sm:$0xf0]  ;;  %v4245_v59 = vld [vmem:[#allocation2 + $0x84] sm:$0xf] }
 0x570   :  { %2886 = vmatmul.bf16.gmra.mxu3 %v3972_v14  ;;  %4131 = vmatmul.msk.bf16.gmra.mxu1 %vm464_vm0, %v3976_v52 }
 0x573   :  { %v2167_v40 = vpop.f32.mrf.mxu3 }
 0x574   :  { %v2257_v38 = vadd.f32 %v2256_v30, %v2167_v40  ;;  %v2434_v43 = vpop.f32.mrf.mxu2  ;;  %v2515_v30 = vpop.f32.mrf.mxu0  ;;  %v6027_v40 = vadd.f32 %v2513_v47, %v2425_v4 }
 0x575   :  { %v2258_v27 = vpop.f32.mrf.mxu1 }
 0x576   :  { %v2430_v24 = vadd.f32 %v2429_v6, %v2257_v38 }
 0x57b   :  { %v2169_v60 = vpop.f32.mrf.mxu3 }
 0x57c   :  { %v2259_v41 = vadd.f32 %v2258_v27, %v2169_v60  ;;  %v2436_v22 = vpop.f32.mrf.mxu2  ;;  %v2518_v58 = vpop.f32.mrf.mxu0  ;;  %v6029_v60 = vadd.f32 %v2515_v30, %v2427_v55 }
 0x57d   :  { %v2261_v37 = vpop.f32.mrf.mxu1  ;;  %v6034_v4 = vadd.f32 %v2518_v58, %v2430_v24  ;;  %v4011_v58 = vld [vmem:[#allocation2 + $0x90] sm:$0xf] }
 0x57e   :  { %v2432_v10 = vadd.f32 %v2431_v1, %v2259_v41  ;;  %v4243_v41 = vld [vmem:[#allocation2 + $0x74] sm:$0xf] }
 0x580   :  { %2891 = vmatmul.bf16.gmra.mxu3 %v3980_v35  ;;  %4132 = vmatmul.msk.bf16.gmra.mxu1 %vm464_vm0, %v3984_v53 }
 0x583   :  { %v2172_v2 = vpop.f32.mrf.mxu3 }
 0x584   :  { %v2262_v3 = vadd.f32 %v2261_v37, %v2172_v2  ;;  %v2439_v27 = vpop.f32.mrf.mxu2  ;;  %v3997_v37 = vld [vmem:[#allocation2 + $0x78] sm:$0xf0]  ;;  %v2520_v47 = vpop.f32.mrf.mxu0 }
 0x585   :  { %v2263_v62 = vpop.f32.mrf.mxu1  ;;  %v4000_v2 = vor.u32 %v4243_v41, %v3997_v37  ;;  %v6038_v7 = vadd.f32 %v2520_v47, %v2432_v10  ;;  %v4013_v41 = vld [vmem:[#allocation2 + $0x98] sm:$0xf0] }
 0x586   :  { %v2435_v17 = vadd.f32 %v2434_v43, %v2262_v3  ;;  %v3996_v43 = vor.u32 %v4244_v51, %v3995_v56  ;;  %v4247_v51 = vld [vmem:[#allocation2 + $0x94] sm:$0xf] }
 0x58b   :  { %v2174_v18 = vpop.f32.mrf.mxu3 }
 0x58c   :  { %v2264_v6 = vadd.f32 %v2263_v62, %v2174_v18  ;;  %v2523_v18 = vpop.f32.mrf.mxu0 }
 0x58d   :  { %v2266_v14 = vpop.f32.mrf.mxu1  ;;  %v6043_v24 = vadd.f32 %v2523_v18, %v2435_v17 }
 0x58e   :  { %v2437_v52 = vadd.f32 %v2436_v22, %v2264_v6  ;;  %v4003_v22 = vld [vmem:[#allocation2 + $0x80] sm:$0xf]  ;;  %v4005_v6 = vld [vmem:[#allocation2 + $0x88] sm:$0xf0] }
 0x590   :  { %2896 = vmatmul.bf16.gmra.mxu3 %v3988_v15  ;;  %4133 = vmatmul.msk.bf16.gmra.mxu1 %vm464_vm0, %v3992_v13  ;;  %v4004_v15 = vor.u32 %v4246_v29, %v4003_v22  ;;  %v4008_v13 = vor.u32 %v4245_v59, %v4005_v6  ;;  %v4019_v22 = vld [vmem:[#allocation2 + $0xa0] sm:$0xf]  ;;  %v4249_v29 = vld [vmem:[#allocation2 + $0xa4] sm:$0xf]  ;;  %v4021_v59 = vld [vmem:[#allocation2 + $0xa8] sm:$0xf0] }
 0x593   :  { %v2177_v38 = vpop.f32.mrf.mxu3 }
 0x594   :  { %v2267_v57 = vadd.f32 %v2266_v14, %v2177_v38  ;;  %v2525_v10 = vpop.f32.mrf.mxu0 }
 0x595   :  { %v2268_v1 = vpop.f32.mrf.mxu1 }
 0x596   :  { %v2440_v45 = vadd.f32 %v2439_v27, %v2267_v57 }
 0x59b   :  { %v2179_v19 = vpop.f32.mrf.mxu3 }
 0x59c   :  { %v6031_v35 = vadd.f32 %v2268_v1, %v2179_v19  ;;  %v6047_v1 = vadd.f32 %v2525_v10, %v2437_v52  ;;  %v4248_v19 = vld [vmem:[#allocation2 + $0x94] sm:$0xf0]  ;;  %v2528_v47 = vpop.f32.mrf.mxu0 }
 0x59d   :  { %v2271_v53 = vpop.f32.mrf.mxu1  ;;  %v6052_v17 = vadd.f32 %v2528_v47, %v2440_v45  ;;  %v2469_v45 = vadd.f32 %v5866_v46, %v5870_v49 }
 0x5a0   :  { %2901 = vmatmul.bf16.gmra.mxu3 %v3996_v43  ;;  %4134 = vmatmul.msk.bf16.gmra.mxu1 %vm464_vm0, %v4000_v2  ;;  %v4012_v43 = vor.u32 %v4248_v19, %v4011_v58  ;;  %v4016_v2 = vor.u32 %v4247_v51, %v4013_v41  ;;  %v4252_v51 = vld [vmem:[#allocation2 + $0xb4] sm:$0xf0]  ;;  %v4251_v41 = vld [vmem:[#allocation2 + $0xb4] sm:$0xf] }
 0x5a3   :  { %v2182_v3 = vpop.f32.mrf.mxu3 }
 0x5a4   :  { %v6036_v62 = vadd.f32 %v2271_v53, %v2182_v3 }
 0x5a5   :  { %v2273_v55 = vpop.f32.mrf.mxu1 }
 0x5ab   :  { %v2184_v48 = vpop.f32.mrf.mxu3 }
 0x5ac   :  { %v6040_v30 = vadd.f32 %v2273_v55, %v2184_v48  ;;  %v4250_v48 = vld [vmem:[#allocation2 + $0xa4] sm:$0xf0] }
 0x5ad   :  { %v2276_v14 = vpop.f32.mrf.mxu1 }
 0x5b0   :  { %2906 = vmatmul.bf16.gmra.mxu3 %v4004_v15  ;;  %4135 = vmatmul.msk.bf16.gmra.mxu1 %vm464_vm0, %v4008_v13  ;;  %v4020_v15 = vor.u32 %v4250_v48, %v4019_v22  ;;  %v4024_v13 = vor.u32 %v4249_v29, %v4021_v59  ;;  %v4035_v48 = vld [vmem:[#allocation2 + $0xc0] sm:$0xf]  ;;  %v4254_v59 = vld [vmem:[#allocation2 + $0xc4] sm:$0xf0] }
 0x5b3   :  { %v2187_v38 = vpop.f32.mrf.mxu3 }
 0x5b4   :  { %v6045_v57 = vadd.f32 %v2276_v14, %v2187_v38 }
 0x5b5   :  { %v2278_v27 = vpop.f32.mrf.mxu1 }
 0x5bb   :  { %v2189_v56 = vpop.f32.mrf.mxu3 }
 0x5bc   :  { %v6049_v37 = vadd.f32 %v2278_v27, %v2189_v56  ;;  %v4027_v56 = vld [vmem:[#allocation2 + $0xb0] sm:$0xf] }
 0x5bd   :  { %v2281_v53 = vpop.f32.mrf.mxu1 }
 0x5c0   :  { %2911 = vmatmul.bf16.gmra.mxu3 %v4012_v43  ;;  %4136 = vmatmul.msk.bf16.gmra.mxu1 %vm464_vm0, %v4016_v2 }
 0x5c3   :  { %v2192_v3 = vpop.f32.mrf.mxu3 }
 0x5c4   :  { %v6054_v55 = vadd.f32 %v2281_v53, %v2192_v3  ;;  %v4029_v53 = vld [vmem:[#allocation2 + $0xb8] sm:$0xf0]  ;;  %v4028_v3 = vor.u32 %v4252_v51, %v4027_v56  ;;  %v4043_v51 = vld [vmem:[#allocation2 + $0xd0] sm:$0xf] }
 0x5c5   :  { %v2283_v52 = vpop.f32.mrf.mxu1 }
 0x5cb   :  { %v2194_v18 = vpop.f32.mrf.mxu3 }
 0x5cc   :  { %v6056_v6 = vadd.f32 %v2283_v52, %v2194_v18  ;;  %v4032_v52 = vor.u32 %v4251_v41, %v4029_v53  ;;  %v4256_v53 = vld [vmem:[#allocation2 + $0xd4] sm:$0xf0] }
 0x5cd   :  { %v2966_v14 = vpop.f32.mrf.mxu1 }
 0x5d0   :  { %2916 = vmatmul.bf16.gmra.mxu3 %v4020_v15  ;;  %4137 = vmatmul.msk.bf16.gmra.mxu1 %vm464_vm0, %v4024_v13  ;;  %v4037_v15 = vld [vmem:[#allocation2 + $0xc8] sm:$0xf0] }
 0x5d3   :  { %v2877_v38 = vpop.f32.mrf.mxu3 }
 0x5d4   :  { %v2967_v10 = vadd.f32 %v2966_v14, %v2877_v38  ;;  %v4253_v14 = vld [vmem:[#allocation2 + $0xc4] sm:$0xf] }
 0x5d5   :  { %v2968_v27 = vpop.f32.mrf.mxu1 }
 0x5d6   :  { %v6061_v58 = vadd.f32 %v2967_v10, %v2469_v45  ;;  %v4036_v45 = vor.u32 %v4254_v59, %v4035_v48  ;;  %v4040_v10 = vor.u32 %v4253_v14, %v4037_v15  ;;  %v4051_v59 = vld [vmem:[#allocation2 + $0xe0] sm:$0xf]  ;;  %v4258_v15 = vld [vmem:[#allocation2 + $0xe4] sm:$0xf0] }
 0x5db   :  { %v2879_v19 = vpop.f32.mrf.mxu3 }
 0x5dc   :  { %v2969_v43 = vadd.f32 %v2968_v27, %v2879_v19 }
 0x5dd   :  { %v2971_v2 = vpop.f32.mrf.mxu1 }
 0x5de   :  { %v6064_v47 = vadd.f32 %v2969_v43, %v5906_v9  ;;  %v4255_v43 = vld [vmem:[#allocation2 + $0xd4] sm:$0xf] }
 0x5e0   :  { %2921 = vmatmul.bf16.gmra.mxu3 %v4028_v3  ;;  %4138 = vmatmul.msk.bf16.gmra.mxu1 %vm464_vm0, %v4032_v52 }
 0x5e3   :  { %v2882_v46 = vpop.f32.mrf.mxu3 }
 0x5e4   :  { %v2972_v49 = vadd.f32 %v2971_v2, %v2882_v46  ;;  %v4045_v2 = vld [vmem:[#allocation2 + $0xd8] sm:$0xf0]  ;;  %v4044_v46 = vor.u32 %v4256_v53, %v4043_v51  ;;  %v4059_v53 = vld [vmem:[#allocation2 + $0xf0] sm:$0xf] }
 0x5e5   :  { %v2973_v22 = vpop.f32.mrf.mxu1 }
 0x5e6   :  { %v6068_v18 = vadd.f32 %v2972_v49, %v5916_v20  ;;  %v4048_v49 = vor.u32 %v4255_v43, %v4045_v2  ;;  %v4260_v2 = vld [vmem:[#allocation2 + $0xf4] sm:$0xf0] }
 0x5eb   :  { %v2884_v29 = vpop.f32.mrf.mxu3 }
 0x5ec   :  { %v2974_v13 = vadd.f32 %v2973_v22, %v2884_v29 }
 0x5ed   :  { %v2976_v38 = vpop.f32.mrf.mxu1 }
 0x5ee   :  { %v6071_v9 = vadd.f32 %v2974_v13, %v5927_v5  ;;  %v4257_v13 = vld [vmem:[#allocation2 + $0xe4] sm:$0xf] }
 0x5f0   :  { %2926 = vmatmul.bf16.gmra.mxu3 %v4036_v45  ;;  %4139 = vmatmul.msk.bf16.gmra.mxu1 %vm464_vm0, %v4040_v10 }
 0x5f3   :  { %v2887_v27 = vpop.f32.mrf.mxu3 }
 0x5f4   :  { %v2977_v56 = vadd.f32 %v2976_v38, %v2887_v27  ;;  %v4053_v38 = vld [vmem:[#allocation2 + $0xe8] sm:$0xf0]  ;;  %v4052_v27 = vor.u32 %v4258_v15, %v4051_v59  ;;  %v4067_v15 = vld [vmem:[#allocation2 + $0x100] sm:$0xf] }
 0x5f5   :  { %v2978_v19 = vpop.f32.mrf.mxu1 }
 0x5f6   :  { %v6075_v20 = vadd.f32 %v2977_v56, %v5942_v26  ;;  %v4056_v56 = vor.u32 %v4257_v13, %v4053_v38  ;;  %v4262_v38 = vld [vmem:[#allocation2 + $0x104] sm:$0xf0] }
 0x5fb   :  { %v2889_v41 = vpop.f32.mrf.mxu3 }
 0x5fc   :  { %v2979_v3 = vadd.f32 %v2978_v19, %v2889_v41 }
 0x5fd   :  { %v2981_v52 = vpop.f32.mrf.mxu1 }
 0x5fe   :  { %v6078_v5 = vadd.f32 %v2979_v3, %v5960_v11  ;;  %v4259_v3 = vld [vmem:[#allocation2 + $0xf4] sm:$0xf] }
 0x600   :  { %2931 = vmatmul.bf16.gmra.mxu3 %v4044_v46  ;;  %4140 = vmatmul.msk.bf16.gmra.mxu1 %vm464_vm0, %v4048_v49 }
 0x603   :  { %v2892_v22 = vpop.f32.mrf.mxu3 }
 0x604   :  { %v2982_v48 = vadd.f32 %v2981_v52, %v2892_v22  ;;  %v4061_v52 = vld [vmem:[#allocation2 + $0xf8] sm:$0xf0]  ;;  %v4060_v22 = vor.u32 %v4260_v2, %v4059_v53 }
 0x605   :  { %v2983_v29 = vpop.f32.mrf.mxu1 }
 0x606   :  { %v6082_v26 = vadd.f32 %v2982_v48, %v5976_v12  ;;  %v4064_v48 = vor.u32 %v4259_v3, %v4061_v52  ;;  %v4075_v3 = vld [vmem:[#allocation2 + $0x110] sm:$0xf]  ;;  %v4264_v52 = vld [vmem:[#allocation2 + $0x114] sm:$0xf0] }
 0x60b   :  { %v2894_v14 = vpop.f32.mrf.mxu3 }
 0x60c   :  { %v2984_v45 = vadd.f32 %v2983_v29, %v2894_v14 }
 0x60d   :  { %v2986_v10 = vpop.f32.mrf.mxu1 }
 0x60e   :  { %v6085_v11 = vadd.f32 %v2984_v45, %v5985_v50  ;;  %v4261_v45 = vld [vmem:[#allocation2 + $0x104] sm:$0xf] }
 0x610   :  { %2936 = vmatmul.bf16.gmra.mxu3 %v4052_v27  ;;  %4141 = vmatmul.msk.bf16.gmra.mxu1 %vm464_vm0, %v4056_v56 }
 0x613   :  { %v2897_v19 = vpop.f32.mrf.mxu3 }
 0x614   :  { %v2987_v51 = vadd.f32 %v2986_v10, %v2897_v19  ;;  %v4069_v10 = vld [vmem:[#allocation2 + $0x108] sm:$0xf0]  ;;  %v4068_v19 = vor.u32 %v4262_v38, %v4067_v15  ;;  %v2415_v38 = vadd.f32 %v5981_v32, %v5998_v63 }
 0x615   :  { %v2988_v41 = vpop.f32.mrf.mxu1 }
 0x616   :  { %v6089_v12 = vadd.f32 %v2987_v51, %v5994_v23  ;;  %v4072_v51 = vor.u32 %v4261_v45, %v4069_v10  ;;  %v2417_v45 = vadd.f32 %v5991_v28, %v6004_v34 }
 0x61b   :  { %v2899_v43 = vpop.f32.mrf.mxu3 }
 0x61c   :  { %v2989_v46 = vadd.f32 %v2988_v41, %v2899_v43  ;;  %v2412_v43 = vadd.f32 %v5965_v39, %v5989_v31 }
 0x61d   :  { %v2991_v49 = vpop.f32.mrf.mxu1 }
 0x61e   :  { %v6092_v50 = vadd.f32 %v2989_v46, %v6002_v25  ;;  %v4263_v46 = vld [vmem:[#allocation2 + $0x114] sm:$0xf] }
 0x620   :  { %2941 = vmatmul.bf16.gmra.mxu3 %v4060_v22  ;;  %4142 = vmatmul.msk.bf16.gmra.mxu1 %vm464_vm0, %v4064_v48  ;;  %v2501_v22 = vadd.f32 %v6010_v54, %v2412_v43 }
 0x623   :  { %v2902_v29 = vpop.f32.mrf.mxu3 }
 0x624   :  { %v2992_v59 = vadd.f32 %v2991_v49, %v2902_v29  ;;  %v4077_v49 = vld [vmem:[#allocation2 + $0x118] sm:$0xf0] }
 0x625   :  { %v2993_v14 = vpop.f32.mrf.mxu1  ;;  %v4080_v15 = vor.u32 %v4263_v46, %v4077_v49 }
 0x626   :  { %v6096_v23 = vadd.f32 %v2992_v59, %v6008_v42  ;;  %v2410_v42 = vadd.f32 %v5948_v21, %v5979_v44 }
 0x62b   :  { %v2904_v13 = vpop.f32.mrf.mxu3 }
 0x62c   :  { %v2994_v27 = vadd.f32 %v2993_v14, %v2904_v13  ;;  %v4076_v14 = vor.u32 %v4264_v52, %v4075_v3 }
 0x62d   :  { %v2996_v56 = vpop.f32.mrf.mxu1 }
 0x62e   :  { %v6099_v25 = vadd.f32 %v2994_v27, %v6013_v16  ;;  %v2499_v16 = vadd.f32 %v6000_v61, %v2410_v42  ;;  %v2504_v27 = vadd.f32 %v6015_v33, %v2415_v38 }
 0x630   :  { %2946 = vmatmul.bf16.gmra.mxu3 %v4068_v19  ;;  %4143 = vmatmul.msk.bf16.gmra.mxu1 %vm464_vm0, %v4072_v51  ;;  %v2506_v51 = vadd.f32 %v6018_v0, %v2417_v45 }
 0x633   :  { %v2907_v41 = vpop.f32.mrf.mxu3 }
 0x634   :  { %v2997_v2 = vadd.f32 %v2996_v56, %v2907_v41 }
 0x635   :  { %v2998_v53 = vpop.f32.mrf.mxu1 }
 0x636   :  { %v6108_v29 = vadd.f32 %v2997_v2, %v2499_v16 }
 0x638   :  { %v3090_v39 = vmul.f32 %v6108_v29, %v6108_v29 }
 0x63b   :  { %v2909_v48 = vpop.f32.mrf.mxu3 }
 0x63c   :  { %v2999_v59 = vadd.f32 %v2998_v53, %v2909_v48 }
 0x63d   :  { %v3001_v13 = vpop.f32.mrf.mxu1 }
 0x63e   :  { %v6110_v21 = vadd.f32 %v2999_v59, %v2501_v22 }
 0x640   :  { %2951 = vmatmul.bf16.gmra.mxu3 %v4076_v14  ;;  %4144 = vmatmul.msk.bf16.gmra.mxu1 %vm464_vm0, %v4080_v15  ;;  %v3091_v44 = vmul.f32 %v6110_v21, %v6110_v21 }
 0x642   :  { %v4443_v31 = vpack.i.bf16 %v3090_v39, %v3091_v44 }
 0x643   :  { %v2912_v61 = vpop.f32.mrf.mxu3 }
 0x644   :  { %4444 = vrot.lane.b32.xlu2 %v4443_v31, %s4531_s15  ;;  %v3002_v10 = vadd.f32 %v3001_v13, %v2912_v61 }
 0x645   :  { %v3003_v54 = vpop.f32.mrf.mxu1 }
 0x646   :  { %v6123_v19 = vadd.f32 %v3002_v10, %v2504_v27 }
 0x648   :  { %v3092_v43 = vmul.f32 %v6123_v19, %v6123_v19 }
 0x64b   :  { %v2914_v56 = vpop.f32.mrf.mxu3 }
 0x64c   :  { %v3004_v41 = vadd.f32 %v3003_v54, %v2914_v56 }
 0x64d   :  { %v3006_v53 = vpop.f32.mrf.mxu1 }
 0x64e   :  { %v6126_v42 = vadd.f32 %v3004_v41, %v2506_v51 }
 0x650   :  { %v3093_v32 = vmul.f32 %v6126_v42, %v6126_v42 }
 0x652   :  { %v4448_v63 = vpack.i.bf16 %v3092_v43, %v3093_v32 }
 0x653   :  { %v2917_v28 = vpop.f32.mrf.mxu3 }
 0x654   :  { %v3007_v34 = vadd.f32 %v3006_v53, %v2917_v28  ;;  %4449 = vrot.lane.b32.xlu1 %v4448_v63, %s4531_s15  ;;  %v6156_v53 = vpop.f32.mrf.mxu0 }
 0x655   :  { %v3008_v33 = vpop.f32.mrf.mxu1 }
 0x656   :  { %v6134_v2 = vadd.f32 %v3007_v34, %v6022_v36 }
 0x65b   :  { %v2919_v0 = vpop.f32.mrf.mxu3 }
 0x65c   :  { %v3009_v3 = vadd.f32 %v3008_v33, %v2919_v0 }
 0x65d   :  { %v3011_v52 = vpop.f32.mrf.mxu1 }
 0x65e   :  { %v6137_v46 = vadd.f32 %v3009_v3, %v6024_v8 }
 0x663   :  { %v2922_v49 = vpop.f32.mrf.mxu3 }
 0x664   :  { %v3012_v16 = vadd.f32 %v3011_v52, %v2922_v49 }
 0x665   :  { %v3013_v22 = vpop.f32.mrf.mxu1 }
 0x666   :  { %v6140_v48 = vadd.f32 %v3012_v16, %v6027_v40 }
 0x66b   :  { %v2924_v59 = vpop.f32.mrf.mxu3 }
 0x66c   :  { %v3014_v14 = vadd.f32 %v3013_v22, %v2924_v59 }
 0x66d   :  { %v3016_v15 = vpop.f32.mrf.mxu1 }
 0x66e   :  { %v6143_v13 = vadd.f32 %v3014_v14, %v6029_v60  ;;  %v6154_v60 = vpop.f32.mrf.mxu2 }
 0x673   :  { %v2927_v36 = vpop.f32.mrf.mxu3 }
 0x674   :  { %v3017_v39 = vadd.f32 %v3016_v15, %v2927_v36 }
 0x675   :  { %v3018_v44 = vpop.f32.mrf.mxu1 }
 0x676   :  { %v6146_v31 = vadd.f32 %v3017_v39, %v6034_v4 }
 0x67b   :  { %v2929_v8 = vpop.f32.mrf.mxu3 }
 0x67c   :  { %v3019_v61 = vadd.f32 %v3018_v44, %v2929_v8 }
 0x67d   :  { %v3021_v54 = vpop.f32.mrf.mxu1 }
 0x67e   :  { %v6149_v38 = vadd.f32 %v3019_v61, %v6038_v7  ;;  %v2444_v7 = vpop.f32.mrf.mxu2 }
 0x683   :  { %v2932_v40 = vpop.f32.mrf.mxu3 }
 0x684   :  { %v3022_v45 = vadd.f32 %v3021_v54, %v2932_v40  ;;  %v3086_v40 = vmul.f32 %v6089_v12, %v6089_v12 }
 0x685   :  { %v3023_v10 = vpop.f32.mrf.mxu1 }
 0x686   :  { %v6152_v27 = vadd.f32 %v3022_v45, %v6043_v24  ;;  %v2533_v24 = vpop.f32.mrf.mxu0  ;;  %v2446_v0 = vpop.f32.mrf.mxu2 }
 0x68b   :  { %v2934_v56 = vpop.f32.mrf.mxu3 }
 0x68c   :  { %v3024_v51 = vadd.f32 %v3023_v10, %v2934_v56 }
 0x68d   :  { %v3026_v41 = vpop.f32.mrf.mxu1 }
 0x68e   :  { %v6159_v4 = vadd.f32 %v3024_v51, %v6047_v1  ;;  %v2535_v3 = vpop.f32.mrf.mxu0  ;;  %v2449_v16 = vpop.f32.mrf.mxu2 }
 0x68f   :  { %v2450_v14 = vadd.f32 %v2449_v16, %v6045_v57 }
 0x693   :  { %v2937_v43 = vpop.f32.mrf.mxu3 }
 0x694   :  { %v3027_v32 = vadd.f32 %v3026_v41, %v2937_v43  ;;  %v2445_v41 = vadd.f32 %v2444_v7, %v6036_v62  ;;  %v2447_v62 = vadd.f32 %v2446_v0, %v6040_v30  ;;  %v3088_v30 = vmul.f32 %v6096_v23, %v6096_v23 }
 0x695   :  { %v6161_v63 = vpop.f32.mrf.mxu1 }
 0x696   :  { %v6164_v28 = vadd.f32 %v3027_v32, %v6052_v17  ;;  %v2538_v1 = vpop.f32.mrf.mxu0  ;;  %v2451_v15 = vpop.f32.mrf.mxu2 }
 0x697   :  { %v2539_v39 = vadd.f32 %v2538_v1, %v2450_v14  ;;  %v2452_v54 = vadd.f32 %v2451_v15, %v6049_v37  ;;  %v2534_v15 = vadd.f32 %v2533_v24, %v2445_v41 }
 0x69b   :  { %v6166_v34 = vpop.f32.mrf.mxu3 }
 0x69d   :  { %v3031_v33 = vpop.f32.mrf.mxu1 }
 0x69e   :  { %v2540_v17 = vpop.f32.mrf.mxu0  ;;  %v2454_v43 = vpop.f32.mrf.mxu2 }
 0x69f   :  { %v2541_v51 = vadd.f32 %v2540_v17, %v2452_v54  ;;  %v2455_v37 = vadd.f32 %v2454_v43, %v6054_v55 }
 0x6a3   :  { %v2942_v52 = vpop.f32.mrf.mxu3 }
 0x6a4   :  { %v3032_v16 = vadd.f32 %v3031_v33, %v2942_v52  ;;  %v4445_v33 = vpop.permute.xlu2 %4444 }
 0x6a5   :  { %v3033_v49 = vpop.f32.mrf.mxu1 }
 0x6a6   :  { %v2543_v1 = vpop.f32.mrf.mxu0 }
 0x6a7   :  { %v2544_v7 = vadd.f32 %v2543_v1, %v2455_v37 }
 0x6ab   :  { %v2944_v22 = vpop.f32.mrf.mxu3 }
 0x6ac   :  { %v3034_v55 = vadd.f32 %v3033_v49, %v2944_v22  ;;  %v3084_v22 = vmul.f32 %v6082_v26, %v6082_v26 }
 0x6ad   :  { %v3036_v59 = vpop.f32.mrf.mxu1 }
 0x6ae   :  { %v2545_v41 = vpop.f32.mrf.mxu0 }
 0x6b3   :  { %v2947_v36 = vpop.f32.mrf.mxu3 }
 0x6b4   :  { %v3037_v44 = vadd.f32 %v3036_v59, %v2947_v36  ;;  %v3087_v59 = vmul.f32 %v6092_v50, %v6092_v50 }
 0x6b5   :  { %v3038_v61 = vpop.f32.mrf.mxu1 }
 0x6b6   :  { %v6169_v8 = vadd.f32 %v3037_v44, %v2539_v39  ;;  %v6185_v44 = vadd.f32 %v3032_v16, %v2534_v15 }
 0x6b8   :  { %v3106_v45 = vmul.f32 %v6169_v8, %v6169_v8  ;;  %v3104_v24 = vmul.f32 %v6185_v44, %v6185_v44 }
 0x6ba   :  { %v4453_v10 = vpack.i.bf16 %v3106_v45, %v3086_v40  ;;  %v2456_v40 = vpop.f32.mrf.mxu2 }
 0x6bb   :  { %v2949_v56 = vpop.f32.mrf.mxu3 }
 0x6bc   :  { %v3039_v57 = vadd.f32 %v3038_v61, %v2949_v56  ;;  %4454 = vrot.lane.b32.xlu0 %v4453_v10, %s4531_s15  ;;  %v2457_v56 = vadd.f32 %v2456_v40, %v6056_v6  ;;  %v4447_v6 = vunpack.i.h.bf16 %v4445_v33 }
 0x6bd   :  { %v3041_v36 = vpop.f32.mrf.mxu1 }
 0x6be   :  { %v6178_v32 = vadd.f32 %v3039_v57, %v2541_v51  ;;  %v2536_v51 = vadd.f32 %v2535_v3, %v2447_v62  ;;  %v4446_v57 = vunpack.i.l.bf16 %v4445_v33  ;;  %v2546_v15 = vadd.f32 %v2545_v41, %v2457_v56 }
 0x6bf   :  { %v3089_v33 = vmul.f32 %v6099_v25, %v6099_v25  ;;  %v3098_v56 = vmul.f32 %v6146_v31, %v6146_v31  ;;  %v3100_v41 = vmul.f32 %v6152_v27, %v6152_v27 }
 0x6c0   :  { %v3107_v14 = vmul.f32 %v6178_v32, %v6178_v32  ;;  %v6202_v43 = vadd.f32 %v3034_v55, %v2536_v51  ;;  %v3081_v55 = vmul.f32 %v6071_v9, %v6071_v9  ;;  %v3083_v51 = vmul.f32 %v6078_v5, %v6078_v5 }
 0x6c2   :  { %v4458_v39 = vpack.i.bf16 %v3107_v14, %v3087_v59  ;;  %v4473_v59 = vpack.i.bf16 %v3104_v24, %v3084_v22  ;;  %v2442_v14 = vadd.f32 %v6154_v60, %v6031_v35  ;;  %v3250_v35 = vsel %vm464_vm0, %v6108_v29, %v4447_v6 }
 0x6c3   :  { %v2952_v17 = vpop.f32.mrf.mxu3  ;;  %v3101_v60 = vmul.f32 %v6159_v4, %v6159_v4  ;;  %v3102_v24 = vmul.f32 %v6164_v28, %v6164_v28  ;;  %v3080_v6 = vmul.f32 %v6068_v18, %v6068_v18 }
 0x6c4   :  { %v3042_v61 = vadd.f32 %v3041_v36, %v2952_v17  ;;  %4459 = vrot.lane.b32.xlu2 %v4458_v39, %s4531_s15  ;;  %v3251_v39 = vsel %vm464_vm0, %v6110_v21, %v4446_v57  ;;  %v3029_v17 = vadd.f32 %v6161_v63, %v6166_v34  ;;  %v3085_v34 = vmul.f32 %v6085_v11, %v6085_v11 }
 0x6c5   :  { %v3043_v3 = vpop.f32.mrf.mxu1 }
 0x6c6   :  { %v6189_v52 = vadd.f32 %v3042_v61, %v2544_v7  ;;  %v4450_v54 = vpop.permute.xlu1 %4449  ;;  %v3105_v7 = vmul.f32 %v6202_v43, %v6202_v43  ;;  %v2531_v61 = vadd.f32 %v6156_v53, %v2442_v14  ;;  %v3095_v14 = vmul.f32 %v6137_v46, %v6137_v46 }
 0x6c7   :  { %v4452_v45 = vunpack.i.h.bf16 %v4450_v54  ;;  %v4451_v10 = vunpack.i.l.bf16 %v4450_v54 }
 0x6c8   :  { %v3108_v0 = vmul.f32 %v6189_v52, %v6189_v52  ;;  %v6231_v54 = vadd.f32 %v3029_v17, %v2531_v61 }
 0x6c9   :  { %v3253_v49 = vsel %vm464_vm0, %v6126_v42, %v4451_v10  ;;  %v3252_v37 = vsel %vm464_vm0, %v6123_v19, %v4452_v45  ;;  %v4468_v45 = vpack.i.bf16 %v3105_v7, %v3085_v34  ;;  %v4493_v10 = vpack.i.bf16 %v3101_v60, %v3081_v55 }
 0x6ca   :  { %3270 = vmatpush.msrb.mxu2 %v3253_v49  ;;  %v4463_v16 = vpack.i.bf16 %v3108_v0, %v3088_v30  ;;  %v3103_v53 = vmul.f32 %v6231_v54, %v6231_v54  ;;  %v3082_v30 = vmul.f32 %v6075_v20, %v6075_v20  ;;  %v3078_v0 = vmul.f32 %v6061_v58, %v6061_v58 }
 0x6cb   :  { %v2954_v1 = vpop.f32.mrf.mxu3 }
 0x6cc   :  { %v3044_v36 = vadd.f32 %v3043_v3, %v2954_v1  ;;  %3271 = vmatpush.msrb.mxu2 %v3252_v37  ;;  %4464 = vrot.lane.b32.xlu1 %v4463_v16, %s4531_s15  ;;  %v4483_v57 = vpack.i.bf16 %v3103_v53, %v3083_v51  ;;  %v4488_v49 = vpack.i.bf16 %v3102_v24, %v3082_v30 }
 0x6cd   :  { %4474 = vrot.lane.b32.xlu2 %v4473_v59, %s4531_s15  ;;  %v4508_v22 = vpack.i.bf16 %v3098_v56, %v3078_v0  ;;  %v3099_v16 = vmul.f32 %v6149_v38, %v6149_v38  ;;  %v3079_v3 = vmul.f32 %v6064_v47, %v6064_v47  ;;  %v4498_v1 = vpack.i.bf16 %v3100_v41, %v3080_v6 }
 0x6ce   :  { %v6214_v62 = vadd.f32 %v3044_v36, %v2546_v15  ;;  %3272 = vmatpush.msrb.mxu2 %v3251_v39  ;;  %v3097_v59 = vmul.f32 %v6143_v13, %v6143_v13  ;;  %v3096_v15 = vmul.f32 %v6140_v48, %v6140_v48  ;;  %v3094_v36 = vmul.f32 %v6134_v2, %v6134_v2 }
 0x6cf   :  { %v4503_v37 = vpack.i.bf16 %v3099_v16, %v3079_v3 }
 0x6d0   :  { %3273 = vmatpush.msrb.mxu2 %v3250_v35  ;;  %v3109_v63 = vmul.f32 %v6214_v62, %v6214_v62  ;;  %v4513_v39 = vpack.i.bf16 %v3096_v15, %v3097_v59  ;;  %v4518_v17 = vpack.i.bf16 %v3094_v36, %v3095_v14 }
 0x6d2   :  { %v4478_v40 = vpack.i.bf16 %v3109_v63, %v3089_v33 }
 0x6d4   :  { %4479 = vrot.lane.b32.xlu0 %v4478_v40, %s4531_s15  ;;  %4469 = vrot.lane.b32.xlu1 %v4468_v45, %s4531_s15 }
 0x6d5   :  { %4494 = vrot.lane.b32.xlu2 %v4493_v10, %s4531_s15 }
 0x6dc   :  { %4484 = vrot.lane.b32.xlu0 %v4483_v57, %s4531_s15  ;;  %4489 = vrot.lane.b32.xlu1 %v4488_v49, %s4531_s15 }
 0x6dd   :  { %4509 = vrot.lane.b32.xlu2 %v4508_v22, %s4531_s15 }
 0x6e4   :  { %4499 = vrot.lane.b32.xlu0 %v4498_v1, %s4531_s15  ;;  %4504 = vrot.lane.b32.xlu1 %v4503_v37, %s4531_s15 }
 0x6ec   :  { %4514 = vrot.lane.b32.xlu0 %v4513_v39, %s4531_s15  ;;  %4519 = vrot.lane.b32.xlu1 %v4518_v17, %s4531_s15 }
 0x71e   :  { %v4460_v7 = vpop.permute.xlu2 %4459 }
 0x71f   :  { %v4461_v40 = vunpack.i.l.bf16 %v4460_v7 }
 0x721   :  { %v3247_v51 = vsel %vm464_vm0, %v6092_v50, %v4461_v40 }
 0x727   :  { %v6271_v61 = vpop.permute.xlu2 %4474 }
 0x728   :  { %v4476_v57 = vunpack.i.l.bf16 %v6271_v61 }
 0x72a   :  { %v3244_v6 = vsel %vm464_vm0, %v6082_v26, %v4476_v57 }
 0x72e   :  { %v4455_v35 = vpop.permute.xlu0 %4454 }
 0x72f   :  { %v4456_v10 = vunpack.i.l.bf16 %v4455_v35  ;;  %v6277_v24 = vpop.permute.xlu2 %4494  ;;  %v4457_v57 = vunpack.i.h.bf16 %v4455_v35 }
 0x730   :  { %v4496_v3 = vunpack.i.l.bf16 %v6277_v24 }
 0x731   :  { %v3246_v49 = vsel %vm464_vm0, %v6089_v12, %v4456_v10 }
 0x732   :  { %v3241_v17 = vsel %vm464_vm0, %v6071_v9, %v4496_v3 }
 0x737   :  { %v4510_v36 = vpop.permute.xlu2 %4509 }
 0x73e   :  { %v4465_v60 = vpop.permute.xlu1 %4464 }
 0x73f   :  { %v4466_v34 = vunpack.i.l.bf16 %v4465_v60  ;;  %v4467_v10 = vunpack.i.h.bf16 %v4465_v60 }
 0x741   :  { %v3248_v53 = vsel %vm464_vm0, %v6096_v23, %v4466_v34  ;;  %v4511_v34 = vunpack.i.l.bf16 %v4510_v36 }
 0x746   :  { %v4480_v33 = vpop.permute.xlu0 %4479  ;;  %v4470_v63 = vpop.permute.xlu1 %4469 }
 0x747   :  { %v4481_v55 = vunpack.i.l.bf16 %v4480_v33  ;;  %v4471_v56 = vunpack.i.l.bf16 %v4470_v63  ;;  %v4482_v40 = vunpack.i.h.bf16 %v4480_v33  ;;  %v6613_v33 = vmov 1.0  }
 0x749   :  { %v3249_v45 = vsel %vm464_vm0, %v6099_v25, %v4481_v55  ;;  %v3245_v41 = vsel %vm464_vm0, %v6085_v11, %v4471_v56  ;;  %v4462_v56 = vunpack.i.h.bf16 %v4460_v7  ;;  %v3266_v7 = vsel %vm464_vm0, %v6169_v8, %v4457_v57 }
 0x74a   :  { %3274 = vmatpush.msrb.mxu2 %v3249_v45 }
 0x74b   :  { %v3267_v60 = vsel %vm464_vm0, %v6178_v32, %v4462_v56 }
 0x74c   :  { %3275 = vmatpush.msrb.mxu2 %v3248_v53  ;;  %v3238_v53 = vsel %vm464_vm0, %v6061_v58, %v4511_v34 }
 0x74e   :  { %3276 = vmatpush.msrb.mxu2 %v3247_v51  ;;  %v4485_v30 = vpop.permute.xlu0 %4484  ;;  %v4490_v0 = vpop.permute.xlu1 %4489  ;;  %v3269_v51 = vsel %vm464_vm0, %v6214_v62, %v4482_v40 }
 0x74f   :  { %v4486_v22 = vunpack.i.l.bf16 %v4485_v30  ;;  %v4491_v16 = vunpack.i.l.bf16 %v4490_v0 }
 0x750   :  { %3277 = vmatpush.msrb.mxu2 %v3246_v49  ;;  %v3268_v49 = vsel %vm464_vm0, %v6189_v52, %v4467_v10 }
 0x751   :  { %v3243_v1 = vsel %vm464_vm0, %v6078_v5, %v4486_v22  ;;  %v3242_v15 = vsel %vm464_vm0, %v6075_v20, %v4491_v16  ;;  %v4472_v22 = vunpack.i.h.bf16 %v4470_v63  ;;  %v4487_v16 = vunpack.i.h.bf16 %v4485_v30 }
 0x752   :  { %3278 = vmatpush.msrb.mxu2 %v3245_v41  ;;  %v4477_v41 = vunpack.i.h.bf16 %v6271_v61  ;;  %v4497_v63 = vunpack.i.h.bf16 %v6277_v24 }
 0x753   :  { %v3265_v35 = vsel %vm464_vm0, %v6202_v43, %v4472_v22 }
 0x754   :  { %3279 = vmatpush.msrb.mxu2 %v3244_v6  ;;  %v4492_v6 = vunpack.i.h.bf16 %v4490_v0  ;;  %v3264_v3 = vsel %vm464_vm0, %v6185_v44, %v4477_v41 }
 0x756   :  { %3280 = vmatpush.msrb.mxu2 %v3243_v1  ;;  %v4500_v37 = vpop.permute.xlu0 %4499  ;;  %v4505_v59 = vpop.permute.xlu1 %4504  ;;  %v3263_v1 = vsel %vm464_vm0, %v6231_v54, %v4487_v16 }
 0x757   :  { %v4501_v14 = vunpack.i.l.bf16 %v4500_v37  ;;  %v4506_v39 = vunpack.i.l.bf16 %v4505_v59  ;;  %v4502_v61 = vunpack.i.h.bf16 %v4500_v37  ;;  %v4507_v30 = vunpack.i.h.bf16 %v4505_v59 }
 0x758   :  { %3281 = vmatpush.msrb.mxu2 %v3242_v15  ;;  %v3261_v15 = vsel %vm464_vm0, %v6159_v4, %v4497_v63 }
 0x759   :  { %v3240_v55 = vsel %vm464_vm0, %v6068_v18, %v4501_v14  ;;  %v3239_v45 = vsel %vm464_vm0, %v6064_v47, %v4506_v39  ;;  %v3262_v14 = vsel %vm464_vm0, %v6164_v28, %v4492_v6  ;;  %v4512_v39 = vunpack.i.h.bf16 %v4510_v36 }
 0x75a   :  { %3282 = vmatpush.msrb.mxu2 %v3241_v17  ;;  %v3260_v17 = vsel %vm464_vm0, %v6152_v27, %v4502_v61  ;;  %v3259_v34 = vsel %vm464_vm0, %v6149_v38, %v4507_v30 }
 0x75b   :  { %v3258_v59 = vsel %vm464_vm0, %v6146_v31, %v4512_v39 }
 0x75c   :  { %3283 = vmatpush.msrb.mxu2 %v3240_v55 }
 0x75e   :  { %3284 = vmatpush.msrb.mxu2 %v3239_v45  ;;  %v4515_v0 = vpop.permute.xlu0 %4514  ;;  %v4520_v37 = vpop.permute.xlu1 %4519 }
 0x75f   :  { %v4516_v24 = vunpack.i.l.bf16 %v4515_v0  ;;  %v4517_v55 = vunpack.i.h.bf16 %v4515_v0  ;;  %v4521_v40 = vunpack.i.l.bf16 %v4520_v37  ;;  %v4522_v36 = vunpack.i.h.bf16 %v4520_v37  ;;  %v6342_v0 = vld [vmem:[%s6488_s4] sm:$0xff] }
 0x760   :  { %3285 = vmatpush.msrb.mxu2 %v3238_v53 }
 0x761   :  { %3286 = vmatmul.f32.vlgmr.msrb.gmra.mxu2 %v6613_v33  ;;  %v3257_v45 = vsel %vm464_vm0, %v6143_v13, %v4516_v24  ;;  %v3256_v10 = vsel %vm464_vm0, %v6140_v48, %v4517_v55  ;;  %v3255_v53 = vsel %vm464_vm0, %v6137_v46, %v4521_v40  ;;  %v3254_v56 = vsel %vm464_vm0, %v6134_v2, %v4522_v36 }
 0x762   :  { %3290 = vmatpush.msra.mxu2 %v3269_v51 }
 0x764   :  { %3291 = vmatpush.msra.mxu2 %v3268_v49 }
 0x766   :  { %3292 = vmatpush.msra.mxu2 %v3267_v60 }
 0x768   :  { %3293 = vmatpush.msra.mxu2 %v3266_v7 }
 0x76a   :  { %3294 = vmatpush.msra.mxu2 %v3265_v35 }
 0x76c   :  { %3295 = vmatpush.msra.mxu2 %v3264_v3 }
 0x76e   :  { %3296 = vmatpush.msra.mxu2 %v3263_v1 }
 0x770   :  { %3297 = vmatpush.msra.mxu2 %v3262_v14 }
 0x772   :  { %3298 = vmatpush.msra.mxu2 %v3261_v15 }
 0x774   :  { %3299 = vmatpush.msra.mxu2 %v3260_v17 }
 0x776   :  { %3300 = vmatpush.msra.mxu2 %v3259_v34 }
 0x778   :  { %3301 = vmatpush.msra.mxu2 %v3258_v59 }
 0x77a   :  { %3302 = vmatpush.msra.mxu2 %v3257_v45 }
 0x77c   :  { %3303 = vmatpush.msra.mxu2 %v3256_v10 }
 0x77e   :  { %3304 = vmatpush.msra.mxu2 %v3255_v53 }
 0x780   :  { %3305 = vmatpush.msra.mxu2 %v3254_v56 }
 0x781   :  { %3306 = vmatmul.f32.vlgmr.msra.gmra.mxu2 %v6613_v33 }
 0x7e4   :  { %v3287_v51 = vpop.f32.mrf.mxu2 }
 0x804   :  { %v3307_v57 = vpop.f32.mrf.mxu2 }
 0x805   :  { %v3308_v49 = vadd.f32 %v3307_v57, %v3287_v51 }
 0x807   :  { %v3310_v22 = vmul.f32 0.00390625, %v3308_v49 }
 0x809   :  { %v3311_v60 = vmul.f32 %v3310_v22, %v3310_v22 }
 0x80b   :  { %3313 = vrot.lane.b32.xlu2 %v3311_v60, %s4531_s15 }
 0x865   :  { %v3314_v41 = vpop.permute.xlu2 %3313 }
 0x866   :  { %v3316_v7 = vsub.f32 %v3310_v22, %v3314_v41 }
 0x868   :  { %v3317_v16 = vmax.f32 %v3316_v7, 0.0 }
 0x86a   :  { %v3318_v35 = vadd.f32 1e-05, %v3317_v16 }
 0x86c   :  { %4528 = vrsqrt.f32 %v3318_v35  ;;  %vm3325_vm13 = vweird.f32 %v3318_v35 }
 0x872   :  { %v4529_v6 = vpop.eup %4528 }
 0x873   :  { %v3320_v3 = vmul.f32 %v4529_v6, %v3318_v35  ;;  %vm3326_vm6 = vweird.f32 %v4529_v6 }
 0x874   :  { %vm3327_vm14 = vmor %vm3325_vm13, %vm3326_vm6 }
 0x875   :  { %v3321_v63 = vmul.f32 %v4529_v6, %v3320_v3 }
 0x877   :  { %v3322_v1 = vmul.f32 0.5, %v3321_v63 }
 0x879   :  { %v3323_v61 = vsub.f32 1.5, %v3322_v1 }
 0x87b   :  { %v3324_v33 = vmul.f32 %v4529_v6, %v3323_v61 }
 0x87d   :  { %v3328_v14 = vsel %vm3327_vm14, %v4529_v6, %v3324_v33 }
 0x87e   :  { %v3330_v30 = vrot.slane %v3328_v14, 6 }
 0x880   :  { %3331 = vrot.lane.b32.xlu0 %v3330_v30, %s4531_s15 }
 0x8f2   :  { %v3332_v15 = vpop.permute.xlu0 %3331 }
 0x8f3   :  { %v3334_v39 = vmul.f32 %v6342_v0, %v3332_v15 }
 0x8f5   :  { %v3369_v17 = vrot.slane %v3334_v39, 2  ;;  %v6345_v34 = vperm.slane %v3334_v39, 2 }
 0x8f7   :  { %v3371_v24 = vmul.f32 %v3369_v17, %v3310_v22  ;;  %v3350_v40 = vmul.f32 %v6345_v34, %v6123_v19  ;;  %v3351_v45 = vmul.f32 %v6345_v34, %v6126_v42  ;;  %v3348_v36 = vmul.f32 %v6345_v34, %v6108_v29 }
 0x8f8   :  { %v3349_v10 = vmul.f32 %v6345_v34, %v6110_v21  ;;  %v3346_v29 = vmul.f32 %v6345_v34, %v6096_v23  ;;  %v3347_v21 = vmul.f32 %v6345_v34, %v6099_v25  ;;  %v3344_v1 = vmul.f32 %v6345_v34, %v6089_v12 }
 0x8f9   :  { %v3373_v37 = vrot.slane %v3371_v24, 5  ;;  %v3345_v61 = vmul.f32 %v6345_v34, %v6092_v50  ;;  %v3342_v39 = vmul.f32 %v6345_v34, %v6082_v26  ;;  %v3343_v17 = vmul.f32 %v6345_v34, %v6085_v11 }
 0x8fa   :  { %v3340_v12 = vmul.f32 %v6345_v34, %v6075_v20  ;;  %v3341_v50 = vmul.f32 %v6345_v34, %v6078_v5  ;;  %v3364_v26 = vmul.f32 %v6345_v34, %v6169_v8  ;;  %v3365_v11 = vmul.f32 %v6345_v34, %v6178_v32 }
 0x8fb   :  { %v3375_v55 = vsub.f32 %v6342_v0, %v3373_v37  ;;  %v3338_v8 = vmul.f32 %v6345_v34, %v6068_v18  ;;  %v3352_v32 = vmul.f32 %v6345_v34, %v6134_v2  ;;  %v3357_v18 = vmul.f32 %v6345_v34, %v6149_v38 }
 0x8fc   :  { %v3358_v2 = vmul.f32 %v6345_v34, %v6152_v27  ;;  %v3359_v27 = vmul.f32 %v6345_v34, %v6159_v4 }
 0x8fd   :  { %v6348_v59 = vperm.slane %v3375_v55, 3 }
 0x8ff   :  { %v3391_v53 = vadd.f32 %v6348_v59, %v3350_v40  ;;  %v3392_v56 = vadd.f32 %v6348_v59, %v3351_v45  ;;  %v3389_v49 = vadd.f32 %v6348_v59, %v3348_v36  ;;  %v3390_v22 = vadd.f32 %v6348_v59, %v3349_v10 }
 0x900   :  { %v3387_v16 = vadd.f32 %v6348_v59, %v3346_v29  ;;  %v3388_v35 = vadd.f32 %v6348_v59, %v3347_v21  ;;  %v3385_v33 = vadd.f32 %v6348_v59, %v3344_v1  ;;  %v3386_v25 = vadd.f32 %v6348_v59, %v3345_v61 }
 0x901   :  { %v3423_v51 = vmax.f32 %v3391_v53, 0.0  ;;  %v3424_v57 = vmax.f32 %v3392_v56, 0.0  ;;  %v3421_v42 = vmax.f32 %v3389_v49, 0.0  ;;  %v3422_v41 = vmax.f32 %v3390_v22, 0.0 }
 0x902   :  { %v3419_v3 = vmax.f32 %v3387_v16, 0.0  ;;  %v3420_v63 = vmax.f32 %v3388_v35, 0.0  ;;  %v3417_v30 = vmax.f32 %v3385_v33, 0.0  ;;  %v3418_v15 = vmax.f32 %v3386_v25, 0.0 }
 0x903   :  { %v3450_v19 = vpack.c.bf16 %v3424_v57, %v3423_v51  ;;  %v3449_v7 = vpack.c.bf16 %v3422_v41, %v3421_v42  ;;  %v3383_v37 = vadd.f32 %v6348_v59, %v3342_v39  ;;  %v3384_v55 = vadd.f32 %v6348_v59, %v3343_v17 }
 0x904   :  { %v3448_v23 = vpack.c.bf16 %v3420_v63, %v3419_v3  ;;  %v3447_v24 = vpack.c.bf16 %v3418_v15, %v3417_v30  ;;  %v3381_v40 = vadd.f32 %v6348_v59, %v3340_v12  ;;  %v3382_v45 = vadd.f32 %v6348_v59, %v3341_v50 }
 0x905   :  { %v3499_v60 = vsel %vm464_vm0, %v3450_v19, 0  ;;  %v3496_v6 = vsel %vm464_vm0, %v3449_v7, 0  ;;  %v3415_v36 = vmax.f32 %v3383_v37, 0.0  ;;  %v3416_v10 = vmax.f32 %v3384_v55, 0.0 }
 0x906   :  { %3525 = vmatpush.bf16.xpose.msrb.mxu2 %v3499_v60  ;;  %v3493_v14 = vsel %vm464_vm0, %v3448_v23, 0  ;;  %v3490_v20 = vsel %vm464_vm0, %v3447_v24, 0  ;;  %v3413_v5 = vmax.f32 %v3381_v40, 0.0  ;;  %v3414_v53 = vmax.f32 %v3382_v45, 0.0 }
 0x907   :  { %v3405_v56 = vadd.f32 %v6348_v59, %v3364_v26  ;;  %v3406_v51 = vadd.f32 %v6348_v59, %v3365_v11  ;;  %v3446_v57 = vpack.c.bf16 %v3416_v10, %v3415_v36  ;;  %v3353_v19 = vmul.f32 %v6345_v34, %v6137_v46 }
 0x908   :  { %v3445_v60 = vpack.c.bf16 %v3414_v53, %v3413_v5  ;;  %v3354_v42 = vmul.f32 %v6345_v34, %v6140_v48  ;;  %v3355_v41 = vmul.f32 %v6345_v34, %v6143_v13  ;;  %v3356_v29 = vmul.f32 %v6345_v34, %v6146_v31 }
 0x909   :  { %v3437_v49 = vmax.f32 %v3405_v56, 0.0  ;;  %v3438_v22 = vmax.f32 %v3406_v51, 0.0  ;;  %v3360_v46 = vmul.f32 %v6345_v34, %v6164_v28  ;;  %v3339_v48 = vmul.f32 %v6345_v34, %v6071_v9 }
 0x90a   :  { %v3361_v13 = vmul.f32 %v6345_v34, %v6231_v54  ;;  %v3362_v31 = vmul.f32 %v6345_v34, %v6185_v44  ;;  %v3363_v7 = vmul.f32 %v6345_v34, %v6202_v43  ;;  %v3487_v38 = vsel %vm464_vm0, %v3446_v57, 0 }
 0x90b   :  { %v6408_v21 = vpack.c.bf16 %v3438_v22, %v3437_v49  ;;  %v3484_v28 = vsel %vm464_vm0, %v3445_v60, 0  ;;  %v3379_v16 = vadd.f32 %v6348_v59, %v3338_v8  ;;  %v3380_v9 = vadd.f32 %v6348_v59, %v3339_v48  ;;  %v4277_v48 = vld [vmem:[%s6490_s3] sm:$0xff] }
 0x90c   :  { %v3403_v54 = vadd.f32 %v6348_v59, %v3362_v31  ;;  %v3404_v35 = vadd.f32 %v6348_v59, %v3363_v7  ;;  %v3401_v44 = vadd.f32 %v6348_v59, %v3360_v46  ;;  %v3402_v43 = vadd.f32 %v6348_v59, %v3361_v13  ;;  %v22_v31 = vld [vmem:[%s6488_s4 + $0x8] sm:$0xff] }
 0x90d   :  { %v3400_v3 = vadd.f32 %v6348_v59, %v3359_v27  ;;  %v3397_v4 = vadd.f32 %v6348_v59, %v3356_v29  ;;  %v3398_v63 = vadd.f32 %v6348_v59, %v3357_v18  ;;  %v3395_v12 = vadd.f32 %v6348_v59, %v3354_v42 }
 0x90e   :  { %3526 = vmatpush.bf16.xpose.msrb.mxu2 %v3496_v6  ;;  %v3399_v6 = vadd.f32 %v6348_v59, %v3358_v2  ;;  %v3435_v1 = vmax.f32 %v3403_v54, 0.0  ;;  %v3436_v61 = vmax.f32 %v3404_v35, 0.0  ;;  %v3433_v23 = vmax.f32 %v3401_v44, 0.0 }
 0x90f   :  { %v3434_v33 = vmax.f32 %v3402_v43, 0.0  ;;  %v3429_v30 = vmax.f32 %v3397_v4, 0.0  ;;  %v3430_v15 = vmax.f32 %v3398_v63, 0.0  ;;  %v3396_v50 = vadd.f32 %v6348_v59, %v3355_v41 }
 0x910   :  { %v3431_v25 = vmax.f32 %v3399_v6, 0.0  ;;  %v3456_v39 = vpack.c.bf16 %v3436_v61, %v3435_v1  ;;  %v3393_v55 = vadd.f32 %v6348_v59, %v3352_v32  ;;  %v3394_v40 = vadd.f32 %v6348_v59, %v3353_v19 }
 0x911   :  { %v3455_v17 = vpack.c.bf16 %v3434_v33, %v3433_v23  ;;  %v3453_v37 = vpack.c.bf16 %v3430_v15, %v3429_v30  ;;  %v3411_v45 = vmax.f32 %v3379_v16, 0.0  ;;  %v3412_v26 = vmax.f32 %v3380_v9, 0.0 }
 0x912   :  { %v3427_v11 = vmax.f32 %v3395_v12, 0.0  ;;  %v3425_v36 = vmax.f32 %v3393_v55, 0.0  ;;  %v3426_v10 = vmax.f32 %v3394_v40, 0.0  ;;  %v3336_v5 = vmul.f32 %v6345_v34, %v6061_v58 }
 0x913   :  { %v3337_v53 = vmul.f32 %v6345_v34, %v6064_v47  ;;  %v3366_v51 = vmul.f32 %v6345_v34, %v6189_v52  ;;  %v3367_v57 = vmul.f32 %v6345_v34, %v6214_v62  ;;  %v3444_v22 = vpack.c.bf16 %v3412_v26, %v3411_v45 }
 0x914   :  { %v3451_v49 = vpack.c.bf16 %v3426_v10, %v3425_v36  ;;  %v3377_v8 = vadd.f32 %v6348_v59, %v3336_v5  ;;  %v3520_v2 = vsel %vm464_vm0, %v6408_v21, 0  ;;  %v3514_v46 = vsel %vm464_vm0, %v3455_v17, 0 }
 0x915   :  { %v3378_v32 = vadd.f32 %v6348_v59, %v3337_v53  ;;  %v3407_v19 = vadd.f32 %v6348_v59, %v3366_v51  ;;  %v3408_v58 = vadd.f32 %v6348_v59, %v3367_v57  ;;  %v3481_v60 = vsel %vm464_vm0, %v3444_v22, 0 }
 0x916   :  { %3527 = vmatpush.bf16.xpose.msrb.mxu2 %v3493_v14  ;;  %v3432_v14 = vmax.f32 %v3400_v3, 0.0  ;;  %v3409_v47 = vmax.f32 %v3377_v8, 0.0  ;;  %v3517_v59 = vsel %vm464_vm0, %v3456_v39, 0  ;;  %v4535_v21 = vmov 64  }
 0x917   :  { %v3410_v42 = vmax.f32 %v3378_v32, 0.0  ;;  %v3439_v41 = vmax.f32 %v3407_v19, 0.0  ;;  %v3440_v52 = vmax.f32 %v3408_v58, 0.0  ;;  %4523 = vset.pattern.permute.xlu1 %v4535_v21  ;;  %4524 = vset.pattern.permute.xlu2 %v4535_v21  ;;  %v3508_v7 = vsel %vm464_vm0, %v3453_v37, 0 }
 0x918   :  { %v3454_v24 = vpack.c.bf16 %v3432_v14, %v3431_v25  ;;  %3461 = vperm.xlu1 %4523, %v6342_v0   ;;  %3466 = vperm.xlu2 %4524, %v22_v31   ;;  %v3502_v27 = vsel %vm464_vm0, %v3451_v49, 0 }
 0x919   :  { %v3443_v29 = vpack.c.bf16 %v3410_v42, %v3409_v47  ;;  %v3458_v18 = vpack.c.bf16 %v3440_v52, %v3439_v41  ;;  %4525 = vset.pattern.permute.xlu0 %v4535_v21 }
 0x91a   :  { %v3511_v13 = vsel %vm464_vm0, %v3454_v24, 0 }
 0x91b   :  { %v3478_v62 = vsel %vm464_vm0, %v3443_v29, 0  ;;  %v3523_v34 = vsel %vm464_vm0, %v3458_v18, 0 }
 0x91e   :  { %3528 = vmatpush.bf16.xpose.msrb.mxu2 %v3490_v20  ;;  %v3428_v20 = vmax.f32 %v3396_v50, 0.0 }
 0x920   :  { %v3452_v56 = vpack.c.bf16 %v3428_v20, %v3427_v11 }
 0x926   :  { %3529 = vmatpush.bf16.xpose.msrb.mxu2 %v3487_v38  ;;  %v3505_v38 = vsel %vm464_vm0, %v3452_v56, 0 }
 0x92e   :  { %3530 = vmatpush.bf16.xpose.msrb.mxu2 %v3484_v28 }
 0x936   :  { %3531 = vmatpush.bf16.xpose.msrb.mxu2 %v3481_v60 }
 0x93e   :  { %3532 = vmatpush.bf16.xpose.msrb.mxu2 %v3478_v62 }
 0x945   :  { %4149 = vmatmul.msk.bf16.vlgmr.msrb.gmra.mxu2 %vm464_vm0, %v4277_v48 }
 0x946   :  { %3539 = vmatpush.bf16.xpose.msra.mxu2 %v3523_v34 }
 0x94e   :  { %3540 = vmatpush.bf16.xpose.msra.mxu2 %v3520_v2 }
 0x956   :  { %3541 = vmatpush.bf16.xpose.msra.mxu2 %v3517_v59 }
 0x95e   :  { %3542 = vmatpush.bf16.xpose.msra.mxu2 %v3514_v46 }
 0x966   :  { %3543 = vmatpush.bf16.xpose.msra.mxu2 %v3511_v13 }
 0x96e   :  { %3544 = vmatpush.bf16.xpose.msra.mxu2 %v3508_v7 }
 0x972   :  { %v3467_v0 = vpop.permute.xlu2 %3466 }
 0x976   :  { %3545 = vmatpush.bf16.xpose.msra.mxu2 %v3505_v38 }
 0x97e   :  { %3546 = vmatpush.bf16.xpose.msra.mxu2 %v3502_v27 }
 0x985   :  { %4150 = vmatmul.msk.bf16.vlgmr.msra.gmra.mxu2 %vm464_vm0, %v4277_v48 }
 0x98a   :  { %v3462_v28 = vpop.permute.xlu1 %3461 }
 0x9c8   :  { %v3534_v16 = vpop.f32.mrf.mxu2 }
 0x9c9   :  { %v3535_v9 = vadd.f32 %v3534_v16, %v3462_v28 }
 0x9cb   :  { %3553 = vst [vmem:[%s6491_s5] sm:$0xff] %v3535_v9 }
 0x9d0   :  { %v3536_v54 = vpop.f32.mrf.mxu2 }
 0x9d1   :  { %v3537_v35 = vadd.f32 %v3536_v54, %v3467_v0 }
 0x9d3   :  { %3555 = vst [vmem:[%s6491_s5 + $0x10] sm:$0xff] %v3537_v35 }
 0xa08   :  { %v3548_v44 = vpop.f32.mrf.mxu2 }
 0xa09   :  { %v3549_v43 = vadd.f32 %v3548_v44, %v3462_v28 }
 0xa0b   :  { %3554 = vst [vmem:[%s6491_s5 + $0x8] sm:$0xff] %v3549_v43 }
 0xa10   :  { %v3550_v6 = vpop.f32.mrf.mxu2 }
 0xa11   :  { %v3551_v3 = vadd.f32 %v3550_v6, %v3467_v0 }
 0xa13   :  { %3556 = vst [vmem:[%s6491_s5 + $0x18] sm:$0xff] %v3551_v3 }

</bundles_post_ra>
